<compile_context>
chip_gen: v6e
topology: v6e:2x2x1
jax: 0.10.0
libtpu: 0.0.40
codegen_flags: <defaults>
</compile_context>

<pallas_src>
import functools

import jax
import jax.numpy as jnp
from jax import lax
from jax.experimental import pallas as pl
from jax.experimental.pallas import tpu as pltpu

NUM_LAYERS = 3
LANE = 128
SUBLANE = 8


def _round_up(n, m):
    return ((n + m - 1) // m) * m


def _pad_last(a, target):
    pad = target - a.shape[-1]
    if pad == 0:
        return a
    widths = [(0, 0)] * (a.ndim - 1) + [(0, pad)]
    return jnp.pad(a, widths)


def rnn_kernel(emb_ref,                       # (seq*bp, Ep) f32 padded embeddings, time-major
               wih0t_ref, whh0t_ref, b0_ref,  # (Ep,Hp), (Hp,Hp), (1,Hp)   layer 0
               wih1t_ref, whh1t_ref, b1_ref,  # (Hp,Hp), (Hp,Hp), (1,Hp)   layer 1
               wih2t_ref, whh2t_ref, b2_ref,  # (Hp,Hp), (Hp,Hp), (1,Hp)   layer 2
               wfct_ref, bfc_ref,             # (Hp,Op), (1,Op)            fc
               out_ref,                       # (bp, Op)
               xproj_ref):                    # VMEM scratch (seq*bp, Hp)
    rows, _ = emb_ref.shape
    bp, _ = out_ref.shape
    hp = whh0t_ref.shape[0]
    seq = rows // bp

    # Layer-0 input projection for ALL timesteps in one MXU matmul (biases folded
    # in), parked in VMEM scratch -- not carried in vregs across the loop.
    xproj_ref[...] = (
        jnp.dot(emb_ref[...], wih0t_ref[...], preferred_element_type=jnp.float32)
        + b0_ref[...])

    # Tiny bias broadcasts hoisted once (1 vreg each); big weights are NOT hoisted.
    b1 = jnp.broadcast_to(b1_ref[...], (bp, hp))
    b2 = jnp.broadcast_to(b2_ref[...], (bp, hp))

    zeros = jnp.zeros((bp, hp), jnp.float32)

    def wave_step(w, carry):
        h0, h1, h2 = carry
        # Wavefront: layer0 processes timestep w, layer1 timestep w-1, layer2
        # timestep w-2.  All three read only carry values -> independent within
        # a step -> one matmul->tanh latency per wavefront step.
        t0 = jnp.minimum(w, seq - 1)            # clamp; result masked below
        row = pl.multiple_of(t0 * bp, bp)       # bp is a multiple of 8 -> aligned
        x0 = xproj_ref[pl.ds(row, bp), :]

        h0_cand = jnp.tanh(
            x0 + jnp.dot(h0, whh0t_ref[...], preferred_element_type=jnp.float32))
        h1_cand = jnp.tanh(
            jnp.dot(h0, wih1t_ref[...], preferred_element_type=jnp.float32)
            + jnp.dot(h1, whh1t_ref[...], preferred_element_type=jnp.float32)
            + b1)
        h2_cand = jnp.tanh(
            jnp.dot(h1, wih2t_ref[...], preferred_element_type=jnp.float32)
            + jnp.dot(h2, whh2t_ref[...], preferred_element_type=jnp.float32)
            + b2)

        h0_new = jnp.where(w < seq, h0_cand, h0)
        h1_new = jnp.where((w >= 1) & (w < seq + 1), h1_cand, h1)
        h2_new = jnp.where(w >= 2, h2_cand, h2)
        return h0_new, h1_new, h2_new

    # seq + 2 wavefront steps cover all layers.  Full unroll only for short
    # sequences; partial unroll keeps code size bounded at production seq.
    unroll = True if seq + 2 <= 16 else 4
    _, _, h2 = lax.fori_loop(0, seq + 2, wave_step, (zeros, zeros, zeros),
                             unroll=unroll)

    # fc on the final top-layer hidden state (== hidden[-1] in the torch module).
    out = jnp.dot(h2, wfct_ref[...], preferred_element_type=jnp.float32) + bfc_ref[...]
    out_ref[...] = out.astype(out_ref.dtype)


def prepare_params(params):
    """One-time preprocessing: pad / transpose weights, sum biases (cache the result)."""
    hidden = params["w_hh0"].shape[0]
    edim = params["embedding"].shape[1]
    out_dim = params["fc_w"].shape[0]
    ep = _round_up(edim, LANE)
    hp = _round_up(hidden, LANE)
    op = _round_up(out_dim, LANE)

    def pad_t(w, rows, cols):
        # torch layout (out, in) -> transposed + zero-padded (rows, cols)
        w = w.astype(jnp.float32)
        return jnp.zeros((rows, cols), jnp.float32).at[:w.shape[1], :w.shape[0]].set(w.T)

    def pad_b(b, cols):
        return _pad_last(b.astype(jnp.float32)[None, :], cols)

    return {
        "emb_table": _pad_last(params["embedding"].astype(jnp.float32), ep),
        "wih0t": pad_t(params["w_ih0"], ep, hp),
        "whh0t": pad_t(params["w_hh0"], hp, hp),
        "b0": pad_b(params["b_ih0"] + params["b_hh0"], hp),
        "wih1t": pad_t(params["w_ih1"], hp, hp),
        "whh1t": pad_t(params["w_hh1"], hp, hp),
        "b1": pad_b(params["b_ih1"] + params["b_hh1"], hp),
        "wih2t": pad_t(params["w_ih2"], hp, hp),
        "whh2t": pad_t(params["w_hh2"], hp, hp),
        "b2": pad_b(params["b_ih2"] + params["b_hh2"], hp),
        "wfct": pad_t(params["fc_w"], hp, op),
        "bfc": pad_b(params["fc_b"], op),
    }


@functools.partial(jax.jit, static_argnames=("out_dim",))
def raw_rnn_forward(x_tokens, prepped, *, out_dim):
    """x_tokens: (batch, seq) int32 token ids; prepped: output of prepare_params."""
    batch, seq = x_tokens.shape
    ep = prepped["wih0t"].shape[0]
    hp = prepped["whh0t"].shape[0]
    op = prepped["wfct"].shape[1]
    bp = _round_up(max(batch, 1), SUBLANE)   # full sublane group -> unmasked stores

    # Gather embeddings directly time-major, pad batch + lane dims, flatten to 2D
    # so the kernel's projection matmul needs no in-kernel reshape.
    emb = jnp.take(prepped["emb_table"], x_tokens.T, axis=0)     # (seq, batch, Ep)
    if bp != batch:
        emb = jnp.pad(emb, ((0, 0), (0, bp - batch), (0, 0)))
    emb2d = emb.reshape(seq * bp, ep).astype(jnp.float32)

    weight_args = (prepped["wih0t"], prepped["whh0t"], prepped["b0"],
                   prepped["wih1t"], prepped["whh1t"], prepped["b1"],
                   prepped["wih2t"], prepped["whh2t"], prepped["b2"],
                   prepped["wfct"], prepped["bfc"])

    # Size the scoped-VMEM limit from the actual buffers (not a flat 32 MiB).
    in_bytes = emb2d.size * 4 + sum(int(a.size) * 4 for a in weight_args)
    scratch_bytes = seq * bp * hp * 4
    out_bytes = bp * op * 4
    vmem_limit = int(max(2 * (in_bytes + scratch_bytes + out_bytes), 4 * 1024 * 1024))

    out_padded = pl.pallas_call(
        rnn_kernel,
        out_shape=jax.ShapeDtypeStruct((bp, op), jnp.float32),
        in_specs=[pl.BlockSpec(memory_space=pltpu.MemorySpace.VMEM)] * 12,
        out_specs=pl.BlockSpec(memory_space=pltpu.MemorySpace.VMEM),
        scratch_shapes=[pltpu.VMEM((seq * bp, hp), jnp.float32)],
        compiler_params=pltpu.CompilerParams(vmem_limit_bytes=vmem_limit),
    )(emb2d, *weight_args)

    return out_padded[:batch, :out_dim]


def reference_forward(x_tokens, params):
    """Pure-JAX reference matching torch semantics (embedding -> 3-layer tanh RNN -> fc)."""
    emb = jnp.take(params["embedding"], x_tokens, axis=0)        # (batch, seq, edim)
    batch, seq, _ = emb.shape
    hidden = params["w_hh0"].shape[0]
    layer_in = emb
    h_final = None
    for l in range(NUM_LAYERS):
        wih, whh = params[f"w_ih{l}"], params[f"w_hh{l}"]
        bih, bhh = params[f"b_ih{l}"], params[f"b_hh{l}"]
        h = jnp.zeros((batch, hidden), jnp.float32)
        outs = []
        for t in range(seq):
            h = jnp.tanh(layer_in[:, t, :] @ wih.T + bih + h @ whh.T + bhh)
            outs.append(h)
        layer_in = jnp.stack(outs, axis=1)
        h_final = h
    return h_final @ params["fc_w"].T + params["fc_b"]


def init_params(key, vocab_size, embedding_dim, hidden_dim, output_dim):
    keys = jax.random.split(key, 4 * NUM_LAYERS + 3)
    p = {}
    p["embedding"] = jax.random.normal(keys[0], (vocab_size, embedding_dim), jnp.float32)
    bound = 1.0 / jnp.sqrt(hidden_dim)
    ki = 1
    for l in range(NUM_LAYERS):
        in_dim = embedding_dim if l == 0 else hidden_dim
        p[f"w_ih{l}"] = jax.random.uniform(keys[ki + 0], (hidden_dim, in_dim), jnp.float32, -bound, bound)
        p[f"w_hh{l}"] = jax.random.uniform(keys[ki + 1], (hidden_dim, hidden_dim), jnp.float32, -bound, bound)
        p[f"b_ih{l}"] = jax.random.uniform(keys[ki + 2], (hidden_dim,), jnp.float32, -bound, bound)
        p[f"b_hh{l}"] = jax.random.uniform(keys[ki + 3], (hidden_dim,), jnp.float32, -bound, bound)
        ki += 4
    p["fc_w"] = jax.random.uniform(keys[ki], (output_dim, hidden_dim), jnp.float32, -bound, bound)
    p["fc_b"] = jax.random.uniform(keys[ki + 1], (output_dim,), jnp.float32, -bound, bound)
    return p


if __name__ == "__main__":
    vocab_size, embedding_dim, hidden_dim, output_dim = 50, 16, 32, 8
    batch, seq = 2, 8

    key = jax.random.PRNGKey(0)
    pkey, xkey = jax.random.split(key)
    params = init_params(pkey, vocab_size, embedding_dim, hidden_dim, output_dim)
    x = jax.random.randint(xkey, (batch, seq), 0, vocab_size, dtype=jnp.int32)

    # One-time weight prep (cached across calls); per-call forward is jit'ed.
    prepped = jax.tree_util.tree_map(jax.block_until_ready, prepare_params(params))

    out = raw_rnn_forward(x, prepped, out_dim=output_dim)
    out = jax.block_until_ready(out)

    ref = reference_forward(x, params)
    assert out.shape == (batch, output_dim), out.shape
    assert jnp.allclose(out, ref, atol=1e-4, rtol=1e-4), (out, ref)

    print("KERNEL_OK")
</pallas_src>

<mosaic_0001>
module attributes {stable_mosaic.version = 11 : i64} {
  func.func @rnn_kernel(%arg0: memref<64x128xf32, #tpu.memory_space<vmem>>, %arg1: memref<128x128xf32, #tpu.memory_space<vmem>>, %arg2: memref<128x128xf32, #tpu.memory_space<vmem>>, %arg3: memref<1x128xf32, #tpu.memory_space<vmem>>, %arg4: memref<128x128xf32, #tpu.memory_space<vmem>>, %arg5: memref<128x128xf32, #tpu.memory_space<vmem>>, %arg6: memref<1x128xf32, #tpu.memory_space<vmem>>, %arg7: memref<128x128xf32, #tpu.memory_space<vmem>>, %arg8: memref<128x128xf32, #tpu.memory_space<vmem>>, %arg9: memref<1x128xf32, #tpu.memory_space<vmem>>, %arg10: memref<128x128xf32, #tpu.memory_space<vmem>>, %arg11: memref<1x128xf32, #tpu.memory_space<vmem>>, %arg12: memref<8x128xf32, #tpu.memory_space<vmem>>, %arg13: memref<64x128xf32, #tpu.memory_space<vmem>>) attributes {dimension_semantics = [], scalar_prefetch = 0 : i64, scratch_operands = 1 : i64, tpu.core_type = #tpu.core_type<tc>} {
    %c0 = arith.constant 0 : index
    %c0_0 = arith.constant 0 : index
    %0 = vector.load %arg0[%c0, %c0_0] : memref<64x128xf32, #tpu.memory_space<vmem>>, vector<64x128xf32>
    %c0_1 = arith.constant 0 : index
    %c0_2 = arith.constant 0 : index
    %1 = vector.load %arg1[%c0_1, %c0_2] : memref<128x128xf32, #tpu.memory_space<vmem>>, vector<128x128xf32>
    %cst = arith.constant dense<0.000000e+00> : vector<64x128xf32>
    %2 = tpu.matmul %0, %1, %cst {dimension_numbers = #tpu.dot_dimension_numbers<[1], [0], [0], [1], [0, 0, 1, 1], [], []>} : vector<64x128xf32>, vector<128x128xf32>, vector<64x128xf32> -> vector<64x128xf32>
    %c0_3 = arith.constant 0 : index
    %c0_4 = arith.constant 0 : index
    %3 = vector.load %arg3[%c0_3, %c0_4] : memref<1x128xf32, #tpu.memory_space<vmem>>, vector<1x128xf32>
    %4 = vector.broadcast %3 : vector<1x128xf32> to vector<64x128xf32>
    %5 = arith.addf %2, %4 : vector<64x128xf32>
    %c0_5 = arith.constant 0 : index
    %c0_6 = arith.constant 0 : index
    %6 = vector.load %arg13[%c0_5, %c0_6] : memref<64x128xf32, #tpu.memory_space<vmem>>, vector<64x128xf32>
    tpu.vector_store %arg13[%c0_5, %c0_6], %5 {strides = array<i32>} : memref<64x128xf32, #tpu.memory_space<vmem>>, vector<64x128xf32>,
    %c0_7 = arith.constant 0 : index
    %c0_8 = arith.constant 0 : index
    %7 = vector.load %arg6[%c0_7, %c0_8] : memref<1x128xf32, #tpu.memory_space<vmem>>, vector<1x128xf32>
    %8 = vector.shape_cast %7 : vector<1x128xf32> to vector<1x128xf32>
    %9 = vector.broadcast %8 : vector<1x128xf32> to vector<8x128xf32>
    %c0_9 = arith.constant 0 : index
    %c0_10 = arith.constant 0 : index
    %10 = vector.load %arg9[%c0_9, %c0_10] : memref<1x128xf32, #tpu.memory_space<vmem>>, vector<1x128xf32>
    %11 = vector.shape_cast %10 : vector<1x128xf32> to vector<1x128xf32>
    %12 = vector.broadcast %11 : vector<1x128xf32> to vector<8x128xf32>
    %cst_11 = arith.constant 0.000000e+00 : f32
    %13 = vector.broadcast %cst_11 : f32 to vector<8x128xf32>
    %c0_i32 = arith.constant 0 : i32
    %c7_i32 = arith.constant 7 : i32
    %14 = arith.minsi %c0_i32, %c7_i32 : i32
    %c8_i32 = arith.constant 8 : i32
    %15 = arith.muli %14, %c8_i32 : i32
    %16 = tpu.assume_multiple %15, 8 : i32
    %17 = arith.index_cast %16 : i32 to index
    %c0_12 = arith.constant 0 : index
    %18 = vector.load %arg13[%17, %c0_12] : memref<64x128xf32, #tpu.memory_space<vmem>>, vector<8x128xf32>
    %c0_13 = arith.constant 0 : index
    %c0_14 = arith.constant 0 : index
    %19 = vector.load %arg2[%c0_13, %c0_14] : memref<128x128xf32, #tpu.memory_space<vmem>>, vector<128x128xf32>
    %cst_15 = arith.constant dense<0.000000e+00> : vector<8x128xf32>
    %20 = tpu.matmul %13, %19, %cst_15 {dimension_numbers = #tpu.dot_dimension_numbers<[1], [0], [0], [1], [0, 0, 1, 1], [], []>} : vector<8x128xf32>, vector<128x128xf32>, vector<8x128xf32> -> vector<8x128xf32>
    %21 = arith.addf %18, %20 : vector<8x128xf32>
    %22 = math.tanh %21 : vector<8x128xf32>
    %c0_16 = arith.constant 0 : index
    %c0_17 = arith.constant 0 : index
    %23 = vector.load %arg4[%c0_16, %c0_17] : memref<128x128xf32, #tpu.memory_space<vmem>>, vector<128x128xf32>
    %cst_18 = arith.constant dense<0.000000e+00> : vector<8x128xf32>
    %24 = tpu.matmul %13, %23, %cst_18 {dimension_numbers = #tpu.dot_dimension_numbers<[1], [0], [0], [1], [0, 0, 1, 1], [], []>} : vector<8x128xf32>, vector<128x128xf32>, vector<8x128xf32> -> vector<8x128xf32>
    %c0_19 = arith.constant 0 : index
    %c0_20 = arith.constant 0 : index
    %25 = vector.load %arg5[%c0_19, %c0_20] : memref<128x128xf32, #tpu.memory_space<vmem>>, vector<128x128xf32>
    %cst_21 = arith.constant dense<0.000000e+00> : vector<8x128xf32>
    %26 = tpu.matmul %13, %25, %cst_21 {dimension_numbers = #tpu.dot_dimension_numbers<[1], [0], [0], [1], [0, 0, 1, 1], [], []>} : vector<8x128xf32>, vector<128x128xf32>, vector<8x128xf32> -> vector<8x128xf32>
    %27 = arith.addf %24, %26 : vector<8x128xf32>
    %28 = arith.addf %27, %9 : vector<8x128xf32>
    %29 = math.tanh %28 : vector<8x128xf32>
    %c0_22 = arith.constant 0 : index
    %c0_23 = arith.constant 0 : index
    %30 = vector.load %arg7[%c0_22, %c0_23] : memref<128x128xf32, #tpu.memory_space<vmem>>, vector<128x128xf32>
    %cst_24 = arith.constant dense<0.000000e+00> : vector<8x128xf32>
    %31 = tpu.matmul %13, %30, %cst_24 {dimension_numbers = #tpu.dot_dimension_numbers<[1], [0], [0], [1], [0, 0, 1, 1], [], []>} : vector<8x128xf32>, vector<128x128xf32>, vector<8x128xf32> -> vector<8x128xf32>
    %c0_25 = arith.constant 0 : index
    %c0_26 = arith.constant 0 : index
    %32 = vector.load %arg8[%c0_25, %c0_26] : memref<128x128xf32, #tpu.memory_space<vmem>>, vector<128x128xf32>
    %cst_27 = arith.constant dense<0.000000e+00> : vector<8x128xf32>
    %33 = tpu.matmul %13, %32, %cst_27 {dimension_numbers = #tpu.dot_dimension_numbers<[1], [0], [0], [1], [0, 0, 1, 1], [], []>} : vector<8x128xf32>, vector<128x128xf32>, vector<8x128xf32> -> vector<8x128xf32>
    %34 = arith.addf %31, %33 : vector<8x128xf32>
    %35 = arith.addf %34, %12 : vector<8x128xf32>
    %36 = math.tanh %35 : vector<8x128xf32>
    %c8_i32_28 = arith.constant 8 : i32
    %37 = arith.cmpi slt, %c0_i32, %c8_i32_28 : i32
    %38 = arith.select %37, %22, %13 : vector<8x128xf32>
    %c1_i32 = arith.constant 1 : i32
    %39 = arith.cmpi sge, %c0_i32, %c1_i32 : i32
    %c9_i32 = arith.constant 9 : i32
    %40 = arith.cmpi slt, %c0_i32, %c9_i32 : i32
    %41 = arith.andi %39, %40 : i1
    %42 = arith.select %41, %29, %13 : vector<8x128xf32>
    %c2_i32 = arith.constant 2 : i32
    %43 = arith.cmpi sge, %c0_i32, %c2_i32 : i32
    %44 = arith.select %43, %36, %13 : vector<8x128xf32>
    %c1_i32_29 = arith.constant 1 : i32
    %c7_i32_30 = arith.constant 7 : i32
    %45 = arith.minsi %c1_i32_29, %c7_i32_30 : i32
    %c8_i32_31 = arith.constant 8 : i32
    %46 = arith.muli %45, %c8_i32_31 : i32
    %47 = tpu.assume_multiple %46, 8 : i32
    %48 = arith.index_cast %47 : i32 to index
    %c0_32 = arith.constant 0 : index
    %49 = vector.load %arg13[%48, %c0_32] : memref<64x128xf32, #tpu.memory_space<vmem>>, vector<8x128xf32>
    %c0_33 = arith.constant 0 : index
    %c0_34 = arith.constant 0 : index
    %50 = vector.load %arg2[%c0_33, %c0_34] : memref<128x128xf32, #tpu.memory_space<vmem>>, vector<128x128xf32>
    %cst_35 = arith.constant dense<0.000000e+00> : vector<8x128xf32>
    %51 = tpu.matmul %38, %50, %cst_35 {dimension_numbers = #tpu.dot_dimension_numbers<[1], [0], [0], [1], [0, 0, 1, 1], [], []>} : vector<8x128xf32>, vector<128x128xf32>, vector<8x128xf32> -> vector<8x128xf32>
    %52 = arith.addf %49, %51 : vector<8x128xf32>
    %53 = math.tanh %52 : vector<8x128xf32>
    %c0_36 = arith.constant 0 : index
    %c0_37 = arith.constant 0 : index
    %54 = vector.load %arg4[%c0_36, %c0_37] : memref<128x128xf32, #tpu.memory_space<vmem>>, vector<128x128xf32>
    %cst_38 = arith.constant dense<0.000000e+00> : vector<8x128xf32>
    %55 = tpu.matmul %38, %54, %cst_38 {dimension_numbers = #tpu.dot_dimension_numbers<[1], [0], [0], [1], [0, 0, 1, 1], [], []>} : vector<8x128xf32>, vector<128x128xf32>, vector<8x128xf32> -> vector<8x128xf32>
    %c0_39 = arith.constant 0 : index
    %c0_40 = arith.constant 0 : index
    %56 = vector.load %arg5[%c0_39, %c0_40] : memref<128x128xf32, #tpu.memory_space<vmem>>, vector<128x128xf32>
    %cst_41 = arith.constant dense<0.000000e+00> : vector<8x128xf32>
    %57 = tpu.matmul %42, %56, %cst_41 {dimension_numbers = #tpu.dot_dimension_numbers<[1], [0], [0], [1], [0, 0, 1, 1], [], []>} : vector<8x128xf32>, vector<128x128xf32>, vector<8x128xf32> -> vector<8x128xf32>
    %58 = arith.addf %55, %57 : vector<8x128xf32>
    %59 = arith.addf %58, %9 : vector<8x128xf32>
    %60 = math.tanh %59 : vector<8x128xf32>
    %c0_42 = arith.constant 0 : index
    %c0_43 = arith.constant 0 : index
    %61 = vector.load %arg7[%c0_42, %c0_43] : memref<128x128xf32, #tpu.memory_space<vmem>>, vector<128x128xf32>
    %cst_44 = arith.constant dense<0.000000e+00> : vector<8x128xf32>
    %62 = tpu.matmul %42, %61, %cst_44 {dimension_numbers = #tpu.dot_dimension_numbers<[1], [0], [0], [1], [0, 0, 1, 1], [], []>} : vector<8x128xf32>, vector<128x128xf32>, vector<8x128xf32> -> vector<8x128xf32>
    %c0_45 = arith.constant 0 : index
    %c0_46 = arith.constant 0 : index
    %63 = vector.load %arg8[%c0_45, %c0_46] : memref<128x128xf32, #tpu.memory_space<vmem>>, vector<128x128xf32>
    %cst_47 = arith.constant dense<0.000000e+00> : vector<8x128xf32>
    %64 = tpu.matmul %44, %63, %cst_47 {dimension_numbers = #tpu.dot_dimension_numbers<[1], [0], [0], [1], [0, 0, 1, 1], [], []>} : vector<8x128xf32>, vector<128x128xf32>, vector<8x128xf32> -> vector<8x128xf32>
    %65 = arith.addf %62, %64 : vector<8x128xf32>
    %66 = arith.addf %65, %12 : vector<8x128xf32>
    %67 = math.tanh %66 : vector<8x128xf32>
    %c8_i32_48 = arith.constant 8 : i32
    %68 = arith.cmpi slt, %c1_i32_29, %c8_i32_48 : i32
    %69 = arith.select %68, %53, %38 : vector<8x128xf32>
    %c1_i32_49 = arith.constant 1 : i32
    %70 = arith.cmpi sge, %c1_i32_29, %c1_i32_49 : i32
    %c9_i32_50 = arith.constant 9 : i32
    %71 = arith.cmpi slt, %c1_i32_29, %c9_i32_50 : i32
    %72 = arith.andi %70, %71 : i1
    %73 = arith.select %72, %60, %42 : vector<8x128xf32>
    %c2_i32_51 = arith.constant 2 : i32
    %74 = arith.cmpi sge, %c1_i32_29, %c2_i32_51 : i32
    %75 = arith.select %74, %67, %44 : vector<8x128xf32>
    %c2_i32_52 = arith.constant 2 : i32
    %c7_i32_53 = arith.constant 7 : i32
    %76 = arith.minsi %c2_i32_52, %c7_i32_53 : i32
    %c8_i32_54 = arith.constant 8 : i32
    %77 = arith.muli %76, %c8_i32_54 : i32
    %78 = tpu.assume_multiple %77, 8 : i32
    %79 = arith.index_cast %78 : i32 to index
    %c0_55 = arith.constant 0 : index
    %80 = vector.load %arg13[%79, %c0_55] : memref<64x128xf32, #tpu.memory_space<vmem>>, vector<8x128xf32>
    %c0_56 = arith.constant 0 : index
    %c0_57 = arith.constant 0 : index
    %81 = vector.load %arg2[%c0_56, %c0_57] : memref<128x128xf32, #tpu.memory_space<vmem>>, vector<128x128xf32>
    %cst_58 = arith.constant dense<0.000000e+00> : vector<8x128xf32>
    %82 = tpu.matmul %69, %81, %cst_58 {dimension_numbers = #tpu.dot_dimension_numbers<[1], [0], [0], [1], [0, 0, 1, 1], [], []>} : vector<8x128xf32>, vector<128x128xf32>, vector<8x128xf32> -> vector<8x128xf32>
    %83 = arith.addf %80, %82 : vector<8x128xf32>
    %84 = math.tanh %83 : vector<8x128xf32>
    %c0_59 = arith.constant 0 : index
    %c0_60 = arith.constant 0 : index
    %85 = vector.load %arg4[%c0_59, %c0_60] : memref<128x128xf32, #tpu.memory_space<vmem>>, vector<128x128xf32>
    %cst_61 = arith.constant dense<0.000000e+00> : vector<8x128xf32>
    %86 = tpu.matmul %69, %85, %cst_61 {dimension_numbers = #tpu.dot_dimension_numbers<[1], [0], [0], [1], [0, 0, 1, 1], [], []>} : vector<8x128xf32>, vector<128x128xf32>, vector<8x128xf32> -> vector<8x128xf32>
    %c0_62 = arith.constant 0 : index
    %c0_63 = arith.constant 0 : index
    %87 = vector.load %arg5[%c0_62, %c0_63] : memref<128x128xf32, #tpu.memory_space<vmem>>, vector<128x128xf32>
    %cst_64 = arith.constant dense<0.000000e+00> : vector<8x128xf32>
    %88 = tpu.matmul %73, %87, %cst_64 {dimension_numbers = #tpu.dot_dimension_numbers<[1], [0], [0], [1], [0, 0, 1, 1], [], []>} : vector<8x128xf32>, vector<128x128xf32>, vector<8x128xf32> -> vector<8x128xf32>
    %89 = arith.addf %86, %88 : vector<8x128xf32>
    %90 = arith.addf %89, %9 : vector<8x128xf32>
    %91 = math.tanh %90 : vector<8x128xf32>
    %c0_65 = arith.constant 0 : index
    %c0_66 = arith.constant 0 : index
    %92 = vector.load %arg7[%c0_65, %c0_66] : memref<128x128xf32, #tpu.memory_space<vmem>>, vector<128x128xf32>
    %cst_67 = arith.constant dense<0.000000e+00> : vector<8x128xf32>
    %93 = tpu.matmul %73, %92, %cst_67 {dimension_numbers = #tpu.dot_dimension_numbers<[1], [0], [0], [1], [0, 0, 1, 1], [], []>} : vector<8x128xf32>, vector<128x128xf32>, vector<8x128xf32> -> vector<8x128xf32>
    %c0_68 = arith.constant 0 : index
    %c0_69 = arith.constant 0 : index
    %94 = vector.load %arg8[%c0_68, %c0_69] : memref<128x128xf32, #tpu.memory_space<vmem>>, vector<128x128xf32>
    %cst_70 = arith.constant dense<0.000000e+00> : vector<8x128xf32>
    %95 = tpu.matmul %75, %94, %cst_70 {dimension_numbers = #tpu.dot_dimension_numbers<[1], [0], [0], [1], [0, 0, 1, 1], [], []>} : vector<8x128xf32>, vector<128x128xf32>, vector<8x128xf32> -> vector<8x128xf32>
    %96 = arith.addf %93, %95 : vector<8x128xf32>
    %97 = arith.addf %96, %12 : vector<8x128xf32>
    %98 = math.tanh %97 : vector<8x128xf32>
    %c8_i32_71 = arith.constant 8 : i32
    %99 = arith.cmpi slt, %c2_i32_52, %c8_i32_71 : i32
    %100 = arith.select %99, %84, %69 : vector<8x128xf32>
    %c1_i32_72 = arith.constant 1 : i32
    %101 = arith.cmpi sge, %c2_i32_52, %c1_i32_72 : i32
    %c9_i32_73 = arith.constant 9 : i32
    %102 = arith.cmpi slt, %c2_i32_52, %c9_i32_73 : i32
    %103 = arith.andi %101, %102 : i1
    %104 = arith.select %103, %91, %73 : vector<8x128xf32>
    %c2_i32_74 = arith.constant 2 : i32
    %105 = arith.cmpi sge, %c2_i32_52, %c2_i32_74 : i32
    %106 = arith.select %105, %98, %75 : vector<8x128xf32>
    %c3_i32 = arith.constant 3 : i32
    %c7_i32_75 = arith.constant 7 : i32
    %107 = arith.minsi %c3_i32, %c7_i32_75 : i32
    %c8_i32_76 = arith.constant 8 : i32
    %108 = arith.muli %107, %c8_i32_76 : i32
    %109 = tpu.assume_multiple %108, 8 : i32
    %110 = arith.index_cast %109 : i32 to index
    %c0_77 = arith.constant 0 : index
    %111 = vector.load %arg13[%110, %c0_77] : memref<64x128xf32, #tpu.memory_space<vmem>>, vector<8x128xf32>
    %c0_78 = arith.constant 0 : index
    %c0_79 = arith.constant 0 : index
    %112 = vector.load %arg2[%c0_78, %c0_79] : memref<128x128xf32, #tpu.memory_space<vmem>>, vector<128x128xf32>
    %cst_80 = arith.constant dense<0.000000e+00> : vector<8x128xf32>
    %113 = tpu.matmul %100, %112, %cst_80 {dimension_numbers = #tpu.dot_dimension_numbers<[1], [0], [0], [1], [0, 0, 1, 1], [], []>} : vector<8x128xf32>, vector<128x128xf32>, vector<8x128xf32> -> vector<8x128xf32>
    %114 = arith.addf %111, %113 : vector<8x128xf32>
    %115 = math.tanh %114 : vector<8x128xf32>
    %c0_81 = arith.constant 0 : index
    %c0_82 = arith.constant 0 : index
    %116 = vector.load %arg4[%c0_81, %c0_82] : memref<128x128xf32, #tpu.memory_space<vmem>>, vector<128x128xf32>
    %cst_83 = arith.constant dense<0.000000e+00> : vector<8x128xf32>
    %117 = tpu.matmul %100, %116, %cst_83 {dimension_numbers = #tpu.dot_dimension_numbers<[1], [0], [0], [1], [0, 0, 1, 1], [], []>} : vector<8x128xf32>, vector<128x128xf32>, vector<8x128xf32> -> vector<8x128xf32>
    %c0_84 = arith.constant 0 : index
    %c0_85 = arith.constant 0 : index
    %118 = vector.load %arg5[%c0_84, %c0_85] : memref<128x128xf32, #tpu.memory_space<vmem>>, vector<128x128xf32>
    %cst_86 = arith.constant dense<0.000000e+00> : vector<8x128xf32>
    %119 = tpu.matmul %104, %118, %cst_86 {dimension_numbers = #tpu.dot_dimension_numbers<[1], [0], [0], [1], [0, 0, 1, 1], [], []>} : vector<8x128xf32>, vector<128x128xf32>, vector<8x128xf32> -> vector<8x128xf32>
    %120 = arith.addf %117, %119 : vector<8x128xf32>
    %121 = arith.addf %120, %9 : vector<8x128xf32>
    %122 = math.tanh %121 : vector<8x128xf32>
    %c0_87 = arith.constant 0 : index
    %c0_88 = arith.constant 0 : index
    %123 = vector.load %arg7[%c0_87, %c0_88] : memref<128x128xf32, #tpu.memory_space<vmem>>, vector<128x128xf32>
    %cst_89 = arith.constant dense<0.000000e+00> : vector<8x128xf32>
    %124 = tpu.matmul %104, %123, %cst_89 {dimension_numbers = #tpu.dot_dimension_numbers<[1], [0], [0], [1], [0, 0, 1, 1], [], []>} : vector<8x128xf32>, vector<128x128xf32>, vector<8x128xf32> -> vector<8x128xf32>
    %c0_90 = arith.constant 0 : index
    %c0_91 = arith.constant 0 : index
    %125 = vector.load %arg8[%c0_90, %c0_91] : memref<128x128xf32, #tpu.memory_space<vmem>>, vector<128x128xf32>
    %cst_92 = arith.constant dense<0.000000e+00> : vector<8x128xf32>
    %126 = tpu.matmul %106, %125, %cst_92 {dimension_numbers = #tpu.dot_dimension_numbers<[1], [0], [0], [1], [0, 0, 1, 1], [], []>} : vector<8x128xf32>, vector<128x128xf32>, vector<8x128xf32> -> vector<8x128xf32>
    %127 = arith.addf %124, %126 : vector<8x128xf32>
    %128 = arith.addf %127, %12 : vector<8x128xf32>
    %129 = math.tanh %128 : vector<8x128xf32>
    %c8_i32_93 = arith.constant 8 : i32
    %130 = arith.cmpi slt, %c3_i32, %c8_i32_93 : i32
    %131 = arith.select %130, %115, %100 : vector<8x128xf32>
    %c1_i32_94 = arith.constant 1 : i32
    %132 = arith.cmpi sge, %c3_i32, %c1_i32_94 : i32
    %c9_i32_95 = arith.constant 9 : i32
    %133 = arith.cmpi slt, %c3_i32, %c9_i32_95 : i32
    %134 = arith.andi %132, %133 : i1
    %135 = arith.select %134, %122, %104 : vector<8x128xf32>
    %c2_i32_96 = arith.constant 2 : i32
    %136 = arith.cmpi sge, %c3_i32, %c2_i32_96 : i32
    %137 = arith.select %136, %129, %106 : vector<8x128xf32>
    %c4_i32 = arith.constant 4 : i32
    %c7_i32_97 = arith.constant 7 : i32
    %138 = arith.minsi %c4_i32, %c7_i32_97 : i32
    %c8_i32_98 = arith.constant 8 : i32
    %139 = arith.muli %138, %c8_i32_98 : i32
    %140 = tpu.assume_multiple %139, 8 : i32
    %141 = arith.index_cast %140 : i32 to index
    %c0_99 = arith.constant 0 : index
    %142 = vector.load %arg13[%141, %c0_99] : memref<64x128xf32, #tpu.memory_space<vmem>>, vector<8x128xf32>
    %c0_100 = arith.constant 0 : index
    %c0_101 = arith.constant 0 : index
    %143 = vector.load %arg2[%c0_100, %c0_101] : memref<128x128xf32, #tpu.memory_space<vmem>>, vector<128x128xf32>
    %cst_102 = arith.constant dense<0.000000e+00> : vector<8x128xf32>
    %144 = tpu.matmul %131, %143, %cst_102 {dimension_numbers = #tpu.dot_dimension_numbers<[1], [0], [0], [1], [0, 0, 1, 1], [], []>} : vector<8x128xf32>, vector<128x128xf32>, vector<8x128xf32> -> vector<8x128xf32>
    %145 = arith.addf %142, %144 : vector<8x128xf32>
    %146 = math.tanh %145 : vector<8x128xf32>
    %c0_103 = arith.constant 0 : index
    %c0_104 = arith.constant 0 : index
    %147 = vector.load %arg4[%c0_103, %c0_104] : memref<128x128xf32, #tpu.memory_space<vmem>>, vector<128x128xf32>
    %cst_105 = arith.constant dense<0.000000e+00> : vector<8x128xf32>
    %148 = tpu.matmul %131, %147, %cst_105 {dimension_numbers = #tpu.dot_dimension_numbers<[1], [0], [0], [1], [0, 0, 1, 1], [], []>} : vector<8x128xf32>, vector<128x128xf32>, vector<8x128xf32> -> vector<8x128xf32>
    %c0_106 = arith.constant 0 : index
    %c0_107 = arith.constant 0 : index
    %149 = vector.load %arg5[%c0_106, %c0_107] : memref<128x128xf32, #tpu.memory_space<vmem>>, vector<128x128xf32>
    %cst_108 = arith.constant dense<0.000000e+00> : vector<8x128xf32>
    %150 = tpu.matmul %135, %149, %cst_108 {dimension_numbers = #tpu.dot_dimension_numbers<[1], [0], [0], [1], [0, 0, 1, 1], [], []>} : vector<8x128xf32>, vector<128x128xf32>, vector<8x128xf32> -> vector<8x128xf32>
    %151 = arith.addf %148, %150 : vector<8x128xf32>
    %152 = arith.addf %151, %9 : vector<8x128xf32>
    %153 = math.tanh %152 : vector<8x128xf32>
    %c0_109 = arith.constant 0 : index
    %c0_110 = arith.constant 0 : index
    %154 = vector.load %arg7[%c0_109, %c0_110] : memref<128x128xf32, #tpu.memory_space<vmem>>, vector<128x128xf32>
    %cst_111 = arith.constant dense<0.000000e+00> : vector<8x128xf32>
    %155 = tpu.matmul %135, %154, %cst_111 {dimension_numbers = #tpu.dot_dimension_numbers<[1], [0], [0], [1], [0, 0, 1, 1], [], []>} : vector<8x128xf32>, vector<128x128xf32>, vector<8x128xf32> -> vector<8x128xf32>
    %c0_112 = arith.constant 0 : index
    %c0_113 = arith.constant 0 : index
    %156 = vector.load %arg8[%c0_112, %c0_113] : memref<128x128xf32, #tpu.memory_space<vmem>>, vector<128x128xf32>
    %cst_114 = arith.constant dense<0.000000e+00> : vector<8x128xf32>
    %157 = tpu.matmul %137, %156, %cst_114 {dimension_numbers = #tpu.dot_dimension_numbers<[1], [0], [0], [1], [0, 0, 1, 1], [], []>} : vector<8x128xf32>, vector<128x128xf32>, vector<8x128xf32> -> vector<8x128xf32>
    %158 = arith.addf %155, %157 : vector<8x128xf32>
    %159 = arith.addf %158, %12 : vector<8x128xf32>
    %160 = math.tanh %159 : vector<8x128xf32>
    %c8_i32_115 = arith.constant 8 : i32
    %161 = arith.cmpi slt, %c4_i32, %c8_i32_115 : i32
    %162 = arith.select %161, %146, %131 : vector<8x128xf32>
    %c1_i32_116 = arith.constant 1 : i32
    %163 = arith.cmpi sge, %c4_i32, %c1_i32_116 : i32
    %c9_i32_117 = arith.constant 9 : i32
    %164 = arith.cmpi slt, %c4_i32, %c9_i32_117 : i32
    %165 = arith.andi %163, %164 : i1
    %166 = arith.select %165, %153, %135 : vector<8x128xf32>
    %c2_i32_118 = arith.constant 2 : i32
    %167 = arith.cmpi sge, %c4_i32, %c2_i32_118 : i32
    %168 = arith.select %167, %160, %137 : vector<8x128xf32>
    %c5_i32 = arith.constant 5 : i32
    %c7_i32_119 = arith.constant 7 : i32
    %169 = arith.minsi %c5_i32, %c7_i32_119 : i32
    %c8_i32_120 = arith.constant 8 : i32
    %170 = arith.muli %169, %c8_i32_120 : i32
    %171 = tpu.assume_multiple %170, 8 : i32
    %172 = arith.index_cast %171 : i32 to index
    %c0_121 = arith.constant 0 : index
    %173 = vector.load %arg13[%172, %c0_121] : memref<64x128xf32, #tpu.memory_space<vmem>>, vector<8x128xf32>
    %c0_122 = arith.constant 0 : index
    %c0_123 = arith.constant 0 : index
    %174 = vector.load %arg2[%c0_122, %c0_123] : memref<128x128xf32, #tpu.memory_space<vmem>>, vector<128x128xf32>
    %cst_124 = arith.constant dense<0.000000e+00> : vector<8x128xf32>
    %175 = tpu.matmul %162, %174, %cst_124 {dimension_numbers = #tpu.dot_dimension_numbers<[1], [0], [0], [1], [0, 0, 1, 1], [], []>} : vector<8x128xf32>, vector<128x128xf32>, vector<8x128xf32> -> vector<8x128xf32>
    %176 = arith.addf %173, %175 : vector<8x128xf32>
    %177 = math.tanh %176 : vector<8x128xf32>
    %c0_125 = arith.constant 0 : index
    %c0_126 = arith.constant 0 : index
    %178 = vector.load %arg4[%c0_125, %c0_126] : memref<128x128xf32, #tpu.memory_space<vmem>>, vector<128x128xf32>
    %cst_127 = arith.constant dense<0.000000e+00> : vector<8x128xf32>
    %179 = tpu.matmul %162, %178, %cst_127 {dimension_numbers = #tpu.dot_dimension_numbers<[1], [0], [0], [1], [0, 0, 1, 1], [], []>} : vector<8x128xf32>, vector<128x128xf32>, vector<8x128xf32> -> vector<8x128xf32>
    %c0_128 = arith.constant 0 : index
    %c0_129 = arith.constant 0 : index
    %180 = vector.load %arg5[%c0_128, %c0_129] : memref<128x128xf32, #tpu.memory_space<vmem>>, vector<128x128xf32>
    %cst_130 = arith.constant dense<0.000000e+00> : vector<8x128xf32>
    %181 = tpu.matmul %166, %180, %cst_130 {dimension_numbers = #tpu.dot_dimension_numbers<[1], [0], [0], [1], [0, 0, 1, 1], [], []>} : vector<8x128xf32>, vector<128x128xf32>, vector<8x128xf32> -> vector<8x128xf32>
    %182 = arith.addf %179, %181 : vector<8x128xf32>
    %183 = arith.addf %182, %9 : vector<8x128xf32>
    %184 = math.tanh %183 : vector<8x128xf32>
    %c0_131 = arith.constant 0 : index
    %c0_132 = arith.constant 0 : index
    %185 = vector.load %arg7[%c0_131, %c0_132] : memref<128x128xf32, #tpu.memory_space<vmem>>, vector<128x128xf32>
    %cst_133 = arith.constant dense<0.000000e+00> : vector<8x128xf32>
    %186 = tpu.matmul %166, %185, %cst_133 {dimension_numbers = #tpu.dot_dimension_numbers<[1], [0], [0], [1], [0, 0, 1, 1], [], []>} : vector<8x128xf32>, vector<128x128xf32>, vector<8x128xf32> -> vector<8x128xf32>
    %c0_134 = arith.constant 0 : index
    %c0_135 = arith.constant 0 : index
    %187 = vector.load %arg8[%c0_134, %c0_135] : memref<128x128xf32, #tpu.memory_space<vmem>>, vector<128x128xf32>
    %cst_136 = arith.constant dense<0.000000e+00> : vector<8x128xf32>
    %188 = tpu.matmul %168, %187, %cst_136 {dimension_numbers = #tpu.dot_dimension_numbers<[1], [0], [0], [1], [0, 0, 1, 1], [], []>} : vector<8x128xf32>, vector<128x128xf32>, vector<8x128xf32> -> vector<8x128xf32>
    %189 = arith.addf %186, %188 : vector<8x128xf32>
    %190 = arith.addf %189, %12 : vector<8x128xf32>
    %191 = math.tanh %190 : vector<8x128xf32>
    %c8_i32_137 = arith.constant 8 : i32
    %192 = arith.cmpi slt, %c5_i32, %c8_i32_137 : i32
    %193 = arith.select %192, %177, %162 : vector<8x128xf32>
    %c1_i32_138 = arith.constant 1 : i32
    %194 = arith.cmpi sge, %c5_i32, %c1_i32_138 : i32
    %c9_i32_139 = arith.constant 9 : i32
    %195 = arith.cmpi slt, %c5_i32, %c9_i32_139 : i32
    %196 = arith.andi %194, %195 : i1
    %197 = arith.select %196, %184, %166 : vector<8x128xf32>
    %c2_i32_140 = arith.constant 2 : i32
    %198 = arith.cmpi sge, %c5_i32, %c2_i32_140 : i32
    %199 = arith.select %198, %191, %168 : vector<8x128xf32>
    %c6_i32 = arith.constant 6 : i32
    %c7_i32_141 = arith.constant 7 : i32
    %200 = arith.minsi %c6_i32, %c7_i32_141 : i32
    %c8_i32_142 = arith.constant 8 : i32
    %201 = arith.muli %200, %c8_i32_142 : i32
    %202 = tpu.assume_multiple %201, 8 : i32
    %203 = arith.index_cast %202 : i32 to index
    %c0_143 = arith.constant 0 : index
    %204 = vector.load %arg13[%203, %c0_143] : memref<64x128xf32, #tpu.memory_space<vmem>>, vector<8x128xf32>
    %c0_144 = arith.constant 0 : index
    %c0_145 = arith.constant 0 : index
    %205 = vector.load %arg2[%c0_144, %c0_145] : memref<128x128xf32, #tpu.memory_space<vmem>>, vector<128x128xf32>
    %cst_146 = arith.constant dense<0.000000e+00> : vector<8x128xf32>
    %206 = tpu.matmul %193, %205, %cst_146 {dimension_numbers = #tpu.dot_dimension_numbers<[1], [0], [0], [1], [0, 0, 1, 1], [], []>} : vector<8x128xf32>, vector<128x128xf32>, vector<8x128xf32> -> vector<8x128xf32>
    %207 = arith.addf %204, %206 : vector<8x128xf32>
    %208 = math.tanh %207 : vector<8x128xf32>
    %c0_147 = arith.constant 0 : index
    %c0_148 = arith.constant 0 : index
    %209 = vector.load %arg4[%c0_147, %c0_148] : memref<128x128xf32, #tpu.memory_space<vmem>>, vector<128x128xf32>
    %cst_149 = arith.constant dense<0.000000e+00> : vector<8x128xf32>
    %210 = tpu.matmul %193, %209, %cst_149 {dimension_numbers = #tpu.dot_dimension_numbers<[1], [0], [0], [1], [0, 0, 1, 1], [], []>} : vector<8x128xf32>, vector<128x128xf32>, vector<8x128xf32> -> vector<8x128xf32>
    %c0_150 = arith.constant 0 : index
    %c0_151 = arith.constant 0 : index
    %211 = vector.load %arg5[%c0_150, %c0_151] : memref<128x128xf32, #tpu.memory_space<vmem>>, vector<128x128xf32>
    %cst_152 = arith.constant dense<0.000000e+00> : vector<8x128xf32>
    %212 = tpu.matmul %197, %211, %cst_152 {dimension_numbers = #tpu.dot_dimension_numbers<[1], [0], [0], [1], [0, 0, 1, 1], [], []>} : vector<8x128xf32>, vector<128x128xf32>, vector<8x128xf32> -> vector<8x128xf32>
    %213 = arith.addf %210, %212 : vector<8x128xf32>
    %214 = arith.addf %213, %9 : vector<8x128xf32>
    %215 = math.tanh %214 : vector<8x128xf32>
    %c0_153 = arith.constant 0 : index
    %c0_154 = arith.constant 0 : index
    %216 = vector.load %arg7[%c0_153, %c0_154] : memref<128x128xf32, #tpu.memory_space<vmem>>, vector<128x128xf32>
    %cst_155 = arith.constant dense<0.000000e+00> : vector<8x128xf32>
    %217 = tpu.matmul %197, %216, %cst_155 {dimension_numbers = #tpu.dot_dimension_numbers<[1], [0], [0], [1], [0, 0, 1, 1], [], []>} : vector<8x128xf32>, vector<128x128xf32>, vector<8x128xf32> -> vector<8x128xf32>
    %c0_156 = arith.constant 0 : index
    %c0_157 = arith.constant 0 : index
    %218 = vector.load %arg8[%c0_156, %c0_157] : memref<128x128xf32, #tpu.memory_space<vmem>>, vector<128x128xf32>
    %cst_158 = arith.constant dense<0.000000e+00> : vector<8x128xf32>
    %219 = tpu.matmul %199, %218, %cst_158 {dimension_numbers = #tpu.dot_dimension_numbers<[1], [0], [0], [1], [0, 0, 1, 1], [], []>} : vector<8x128xf32>, vector<128x128xf32>, vector<8x128xf32> -> vector<8x128xf32>
    %220 = arith.addf %217, %219 : vector<8x128xf32>
    %221 = arith.addf %220, %12 : vector<8x128xf32>
    %222 = math.tanh %221 : vector<8x128xf32>
    %c8_i32_159 = arith.constant 8 : i32
    %223 = arith.cmpi slt, %c6_i32, %c8_i32_159 : i32
    %224 = arith.select %223, %208, %193 : vector<8x128xf32>
    %c1_i32_160 = arith.constant 1 : i32
    %225 = arith.cmpi sge, %c6_i32, %c1_i32_160 : i32
    %c9_i32_161 = arith.constant 9 : i32
    %226 = arith.cmpi slt, %c6_i32, %c9_i32_161 : i32
    %227 = arith.andi %225, %226 : i1
    %228 = arith.select %227, %215, %197 : vector<8x128xf32>
    %c2_i32_162 = arith.constant 2 : i32
    %229 = arith.cmpi sge, %c6_i32, %c2_i32_162 : i32
    %230 = arith.select %229, %222, %199 : vector<8x128xf32>
    %c7_i32_163 = arith.constant 7 : i32
    %c7_i32_164 = arith.constant 7 : i32
    %231 = arith.minsi %c7_i32_163, %c7_i32_164 : i32
    %c8_i32_165 = arith.constant 8 : i32
    %232 = arith.muli %231, %c8_i32_165 : i32
    %233 = tpu.assume_multiple %232, 8 : i32
    %234 = arith.index_cast %233 : i32 to index
    %c0_166 = arith.constant 0 : index
    %235 = vector.load %arg13[%234, %c0_166] : memref<64x128xf32, #tpu.memory_space<vmem>>, vector<8x128xf32>
    %c0_167 = arith.constant 0 : index
    %c0_168 = arith.constant 0 : index
    %236 = vector.load %arg2[%c0_167, %c0_168] : memref<128x128xf32, #tpu.memory_space<vmem>>, vector<128x128xf32>
    %cst_169 = arith.constant dense<0.000000e+00> : vector<8x128xf32>
    %237 = tpu.matmul %224, %236, %cst_169 {dimension_numbers = #tpu.dot_dimension_numbers<[1], [0], [0], [1], [0, 0, 1, 1], [], []>} : vector<8x128xf32>, vector<128x128xf32>, vector<8x128xf32> -> vector<8x128xf32>
    %238 = arith.addf %235, %237 : vector<8x128xf32>
    %239 = math.tanh %238 : vector<8x128xf32>
    %c0_170 = arith.constant 0 : index
    %c0_171 = arith.constant 0 : index
    %240 = vector.load %arg4[%c0_170, %c0_171] : memref<128x128xf32, #tpu.memory_space<vmem>>, vector<128x128xf32>
    %cst_172 = arith.constant dense<0.000000e+00> : vector<8x128xf32>
    %241 = tpu.matmul %224, %240, %cst_172 {dimension_numbers = #tpu.dot_dimension_numbers<[1], [0], [0], [1], [0, 0, 1, 1], [], []>} : vector<8x128xf32>, vector<128x128xf32>, vector<8x128xf32> -> vector<8x128xf32>
    %c0_173 = arith.constant 0 : index
    %c0_174 = arith.constant 0 : index
    %242 = vector.load %arg5[%c0_173, %c0_174] : memref<128x128xf32, #tpu.memory_space<vmem>>, vector<128x128xf32>
    %cst_175 = arith.constant dense<0.000000e+00> : vector<8x128xf32>
    %243 = tpu.matmul %228, %242, %cst_175 {dimension_numbers = #tpu.dot_dimension_numbers<[1], [0], [0], [1], [0, 0, 1, 1], [], []>} : vector<8x128xf32>, vector<128x128xf32>, vector<8x128xf32> -> vector<8x128xf32>
    %244 = arith.addf %241, %243 : vector<8x128xf32>
    %245 = arith.addf %244, %9 : vector<8x128xf32>
    %246 = math.tanh %245 : vector<8x128xf32>
    %c0_176 = arith.constant 0 : index
    %c0_177 = arith.constant 0 : index
    %247 = vector.load %arg7[%c0_176, %c0_177] : memref<128x128xf32, #tpu.memory_space<vmem>>, vector<128x128xf32>
    %cst_178 = arith.constant dense<0.000000e+00> : vector<8x128xf32>
    %248 = tpu.matmul %228, %247, %cst_178 {dimension_numbers = #tpu.dot_dimension_numbers<[1], [0], [0], [1], [0, 0, 1, 1], [], []>} : vector<8x128xf32>, vector<128x128xf32>, vector<8x128xf32> -> vector<8x128xf32>
    %c0_179 = arith.constant 0 : index
    %c0_180 = arith.constant 0 : index
    %249 = vector.load %arg8[%c0_179, %c0_180] : memref<128x128xf32, #tpu.memory_space<vmem>>, vector<128x128xf32>
    %cst_181 = arith.constant dense<0.000000e+00> : vector<8x128xf32>
    %250 = tpu.matmul %230, %249, %cst_181 {dimension_numbers = #tpu.dot_dimension_numbers<[1], [0], [0], [1], [0, 0, 1, 1], [], []>} : vector<8x128xf32>, vector<128x128xf32>, vector<8x128xf32> -> vector<8x128xf32>
    %251 = arith.addf %248, %250 : vector<8x128xf32>
    %252 = arith.addf %251, %12 : vector<8x128xf32>
    %253 = math.tanh %252 : vector<8x128xf32>
    %c8_i32_182 = arith.constant 8 : i32
    %254 = arith.cmpi slt, %c7_i32_163, %c8_i32_182 : i32
    %255 = arith.select %254, %239, %224 : vector<8x128xf32>
    %c1_i32_183 = arith.constant 1 : i32
    %256 = arith.cmpi sge, %c7_i32_163, %c1_i32_183 : i32
    %c9_i32_184 = arith.constant 9 : i32
    %257 = arith.cmpi slt, %c7_i32_163, %c9_i32_184 : i32
    %258 = arith.andi %256, %257 : i1
    %259 = arith.select %258, %246, %228 : vector<8x128xf32>
    %c2_i32_185 = arith.constant 2 : i32
    %260 = arith.cmpi sge, %c7_i32_163, %c2_i32_185 : i32
    %261 = arith.select %260, %253, %230 : vector<8x128xf32>
    %c8_i32_186 = arith.constant 8 : i32
    %c7_i32_187 = arith.constant 7 : i32
    %262 = arith.minsi %c8_i32_186, %c7_i32_187 : i32
    %c8_i32_188 = arith.constant 8 : i32
    %263 = arith.muli %262, %c8_i32_188 : i32
    %264 = tpu.assume_multiple %263, 8 : i32
    %265 = arith.index_cast %264 : i32 to index
    %c0_189 = arith.constant 0 : index
    %266 = vector.load %arg13[%265, %c0_189] : memref<64x128xf32, #tpu.memory_space<vmem>>, vector<8x128xf32>
    %c0_190 = arith.constant 0 : index
    %c0_191 = arith.constant 0 : index
    %267 = vector.load %arg2[%c0_190, %c0_191] : memref<128x128xf32, #tpu.memory_space<vmem>>, vector<128x128xf32>
    %cst_192 = arith.constant dense<0.000000e+00> : vector<8x128xf32>
    %268 = tpu.matmul %255, %267, %cst_192 {dimension_numbers = #tpu.dot_dimension_numbers<[1], [0], [0], [1], [0, 0, 1, 1], [], []>} : vector<8x128xf32>, vector<128x128xf32>, vector<8x128xf32> -> vector<8x128xf32>
    %269 = arith.addf %266, %268 : vector<8x128xf32>
    %270 = math.tanh %269 : vector<8x128xf32>
    %c0_193 = arith.constant 0 : index
    %c0_194 = arith.constant 0 : index
    %271 = vector.load %arg4[%c0_193, %c0_194] : memref<128x128xf32, #tpu.memory_space<vmem>>, vector<128x128xf32>
    %cst_195 = arith.constant dense<0.000000e+00> : vector<8x128xf32>
    %272 = tpu.matmul %255, %271, %cst_195 {dimension_numbers = #tpu.dot_dimension_numbers<[1], [0], [0], [1], [0, 0, 1, 1], [], []>} : vector<8x128xf32>, vector<128x128xf32>, vector<8x128xf32> -> vector<8x128xf32>
    %c0_196 = arith.constant 0 : index
    %c0_197 = arith.constant 0 : index
    %273 = vector.load %arg5[%c0_196, %c0_197] : memref<128x128xf32, #tpu.memory_space<vmem>>, vector<128x128xf32>
    %cst_198 = arith.constant dense<0.000000e+00> : vector<8x128xf32>
    %274 = tpu.matmul %259, %273, %cst_198 {dimension_numbers = #tpu.dot_dimension_numbers<[1], [0], [0], [1], [0, 0, 1, 1], [], []>} : vector<8x128xf32>, vector<128x128xf32>, vector<8x128xf32> -> vector<8x128xf32>
    %275 = arith.addf %272, %274 : vector<8x128xf32>
    %276 = arith.addf %275, %9 : vector<8x128xf32>
    %277 = math.tanh %276 : vector<8x128xf32>
    %c0_199 = arith.constant 0 : index
    %c0_200 = arith.constant 0 : index
    %278 = vector.load %arg7[%c0_199, %c0_200] : memref<128x128xf32, #tpu.memory_space<vmem>>, vector<128x128xf32>
    %cst_201 = arith.constant dense<0.000000e+00> : vector<8x128xf32>
    %279 = tpu.matmul %259, %278, %cst_201 {dimension_numbers = #tpu.dot_dimension_numbers<[1], [0], [0], [1], [0, 0, 1, 1], [], []>} : vector<8x128xf32>, vector<128x128xf32>, vector<8x128xf32> -> vector<8x128xf32>
    %c0_202 = arith.constant 0 : index
    %c0_203 = arith.constant 0 : index
    %280 = vector.load %arg8[%c0_202, %c0_203] : memref<128x128xf32, #tpu.memory_space<vmem>>, vector<128x128xf32>
    %cst_204 = arith.constant dense<0.000000e+00> : vector<8x128xf32>
    %281 = tpu.matmul %261, %280, %cst_204 {dimension_numbers = #tpu.dot_dimension_numbers<[1], [0], [0], [1], [0, 0, 1, 1], [], []>} : vector<8x128xf32>, vector<128x128xf32>, vector<8x128xf32> -> vector<8x128xf32>
    %282 = arith.addf %279, %281 : vector<8x128xf32>
    %283 = arith.addf %282, %12 : vector<8x128xf32>
    %284 = math.tanh %283 : vector<8x128xf32>
    %c8_i32_205 = arith.constant 8 : i32
    %285 = arith.cmpi slt, %c8_i32_186, %c8_i32_205 : i32
    %286 = arith.select %285, %270, %255 : vector<8x128xf32>
    %c1_i32_206 = arith.constant 1 : i32
    %287 = arith.cmpi sge, %c8_i32_186, %c1_i32_206 : i32
    %c9_i32_207 = arith.constant 9 : i32
    %288 = arith.cmpi slt, %c8_i32_186, %c9_i32_207 : i32
    %289 = arith.andi %287, %288 : i1
    %290 = arith.select %289, %277, %259 : vector<8x128xf32>
    %c2_i32_208 = arith.constant 2 : i32
    %291 = arith.cmpi sge, %c8_i32_186, %c2_i32_208 : i32
    %292 = arith.select %291, %284, %261 : vector<8x128xf32>
    %c9_i32_209 = arith.constant 9 : i32
    %c7_i32_210 = arith.constant 7 : i32
    %293 = arith.minsi %c9_i32_209, %c7_i32_210 : i32
    %c8_i32_211 = arith.constant 8 : i32
    %294 = arith.muli %293, %c8_i32_211 : i32
    %295 = tpu.assume_multiple %294, 8 : i32
    %296 = arith.index_cast %295 : i32 to index
    %c0_212 = arith.constant 0 : index
    %297 = vector.load %arg13[%296, %c0_212] : memref<64x128xf32, #tpu.memory_space<vmem>>, vector<8x128xf32>
    %c0_213 = arith.constant 0 : index
    %c0_214 = arith.constant 0 : index
    %298 = vector.load %arg2[%c0_213, %c0_214] : memref<128x128xf32, #tpu.memory_space<vmem>>, vector<128x128xf32>
    %cst_215 = arith.constant dense<0.000000e+00> : vector<8x128xf32>
    %299 = tpu.matmul %286, %298, %cst_215 {dimension_numbers = #tpu.dot_dimension_numbers<[1], [0], [0], [1], [0, 0, 1, 1], [], []>} : vector<8x128xf32>, vector<128x128xf32>, vector<8x128xf32> -> vector<8x128xf32>
    %300 = arith.addf %297, %299 : vector<8x128xf32>
    %301 = math.tanh %300 : vector<8x128xf32>
    %c0_216 = arith.constant 0 : index
    %c0_217 = arith.constant 0 : index
    %302 = vector.load %arg4[%c0_216, %c0_217] : memref<128x128xf32, #tpu.memory_space<vmem>>, vector<128x128xf32>
    %cst_218 = arith.constant dense<0.000000e+00> : vector<8x128xf32>
    %303 = tpu.matmul %286, %302, %cst_218 {dimension_numbers = #tpu.dot_dimension_numbers<[1], [0], [0], [1], [0, 0, 1, 1], [], []>} : vector<8x128xf32>, vector<128x128xf32>, vector<8x128xf32> -> vector<8x128xf32>
    %c0_219 = arith.constant 0 : index
    %c0_220 = arith.constant 0 : index
    %304 = vector.load %arg5[%c0_219, %c0_220] : memref<128x128xf32, #tpu.memory_space<vmem>>, vector<128x128xf32>
    %cst_221 = arith.constant dense<0.000000e+00> : vector<8x128xf32>
    %305 = tpu.matmul %290, %304, %cst_221 {dimension_numbers = #tpu.dot_dimension_numbers<[1], [0], [0], [1], [0, 0, 1, 1], [], []>} : vector<8x128xf32>, vector<128x128xf32>, vector<8x128xf32> -> vector<8x128xf32>
    %306 = arith.addf %303, %305 : vector<8x128xf32>
    %307 = arith.addf %306, %9 : vector<8x128xf32>
    %308 = math.tanh %307 : vector<8x128xf32>
    %c0_222 = arith.constant 0 : index
    %c0_223 = arith.constant 0 : index
    %309 = vector.load %arg7[%c0_222, %c0_223] : memref<128x128xf32, #tpu.memory_space<vmem>>, vector<128x128xf32>
    %cst_224 = arith.constant dense<0.000000e+00> : vector<8x128xf32>
    %310 = tpu.matmul %290, %309, %cst_224 {dimension_numbers = #tpu.dot_dimension_numbers<[1], [0], [0], [1], [0, 0, 1, 1], [], []>} : vector<8x128xf32>, vector<128x128xf32>, vector<8x128xf32> -> vector<8x128xf32>
    %c0_225 = arith.constant 0 : index
    %c0_226 = arith.constant 0 : index
    %311 = vector.load %arg8[%c0_225, %c0_226] : memref<128x128xf32, #tpu.memory_space<vmem>>, vector<128x128xf32>
    %cst_227 = arith.constant dense<0.000000e+00> : vector<8x128xf32>
    %312 = tpu.matmul %292, %311, %cst_227 {dimension_numbers = #tpu.dot_dimension_numbers<[1], [0], [0], [1], [0, 0, 1, 1], [], []>} : vector<8x128xf32>, vector<128x128xf32>, vector<8x128xf32> -> vector<8x128xf32>
    %313 = arith.addf %310, %312 : vector<8x128xf32>
    %314 = arith.addf %313, %12 : vector<8x128xf32>
    %315 = math.tanh %314 : vector<8x128xf32>
    %c8_i32_228 = arith.constant 8 : i32
    %316 = arith.cmpi slt, %c9_i32_209, %c8_i32_228 : i32
    %317 = arith.select %316, %301, %286 : vector<8x128xf32>
    %c1_i32_229 = arith.constant 1 : i32
    %318 = arith.cmpi sge, %c9_i32_209, %c1_i32_229 : i32
    %c9_i32_230 = arith.constant 9 : i32
    %319 = arith.cmpi slt, %c9_i32_209, %c9_i32_230 : i32
    %320 = arith.andi %318, %319 : i1
    %321 = arith.select %320, %308, %290 : vector<8x128xf32>
    %c2_i32_231 = arith.constant 2 : i32
    %322 = arith.cmpi sge, %c9_i32_209, %c2_i32_231 : i32
    %323 = arith.select %322, %315, %292 : vector<8x128xf32>
    %c10_i32 = arith.constant 10 : i32
    %c0_232 = arith.constant 0 : index
    %c0_233 = arith.constant 0 : index
    %324 = vector.load %arg10[%c0_232, %c0_233] : memref<128x128xf32, #tpu.memory_space<vmem>>, vector<128x128xf32>
    %cst_234 = arith.constant dense<0.000000e+00> : vector<8x128xf32>
    %325 = tpu.matmul %323, %324, %cst_234 {dimension_numbers = #tpu.dot_dimension_numbers<[1], [0], [0], [1], [0, 0, 1, 1], [], []>} : vector<8x128xf32>, vector<128x128xf32>, vector<8x128xf32> -> vector<8x128xf32>
    %c0_235 = arith.constant 0 : index
    %c0_236 = arith.constant 0 : index
    %326 = vector.load %arg11[%c0_235, %c0_236] : memref<1x128xf32, #tpu.memory_space<vmem>>, vector<1x128xf32>
    %327 = vector.broadcast %326 : vector<1x128xf32> to vector<8x128xf32>
    %328 = arith.addf %325, %327 : vector<8x128xf32>
    %c0_237 = arith.constant 0 : index
    %c0_238 = arith.constant 0 : index
    %329 = vector.load %arg12[%c0_237, %c0_238] : memref<8x128xf32, #tpu.memory_space<vmem>>, vector<8x128xf32>
    tpu.vector_store %arg12[%c0_237, %c0_238], %328 {strides = array<i32>} : memref<8x128xf32, #tpu.memory_space<vmem>>, vector<8x128xf32>,
    return
  }
}

</mosaic_0001>

<bundles_post_ra>
// kernel: raw_rnn_forward.1
= control target key start
LH: loop header
LB: loop body
LE: loop exit
PB: predicated region body
PF: predicated region fallthrough
CT: control target
= control target key end

     0   :  { %17 = vsyncpa [#allocation4], 0  ;;  %s7990_s0 = inlined_call_operand.vmem [shape: f32[64,128], index: 0, kind: input, shape index: {}]   ;;  %s7991_s1 = inlined_call_operand.vmem [shape: f32[128,128], index: 1, kind: input, shape index: {}]   ;;  %s7992_s2 = inlined_call_operand.vmem [shape: f32[128,128], index: 2, kind: input, shape index: {}]   ;;  %s7993_s3 = inlined_call_operand.vmem [shape: f32[1,128], index: 3, kind: input, shape index: {}]   ;;  %s7994_s4 = inlined_call_operand.hbm [shape: f32[128,128], index: 4, kind: input, shape index: {}]   ;;  %s7995_s5 = inlined_call_operand.hbm [shape: f32[128,128], index: 5, kind: input, shape index: {}]   ;;  %s7996_s6 = inlined_call_operand.vmem [shape: f32[1,128], index: 6, kind: input, shape index: {}]   ;;  %s7997_s7 = inlined_call_operand.hbm [shape: f32[128,128], index: 7, kind: input, shape index: {}]   ;;  %s7998_s8 = inlined_call_operand.hbm [shape: f32[128,128], index: 8, kind: input, shape index: {}]   ;;  %s7999_s9 = inlined_call_operand.vmem [shape: f32[1,128], index: 9, kind: input, shape index: {}]   ;;  %s8000_s10 = inlined_call_operand.hbm [shape: f32[128,128], index: 10, kind: input, shape index: {}]   ;;  %s8001_s11 = inlined_call_operand.vmem [shape: f32[1,128], index: 11, kind: input, shape index: {}]   ;;  %s8002_s12 = inlined_call_operand.vmem [shape: f32[8,128], index: 12, kind: output, shape index: {}]  }
   0x1   :  { %18 = vsyncpa [#allocation6], 0 }
   0x2   :  { %19 = vsyncpa [#allocation9], 0  ;;  %s5830_s21 = smov [#allocation5]   ;;  %s5831_s23 = smov [#allocation8]  }
   0x3   :  { %s45_s22 = sshll.u32 %s5830_s21, 4  ;;  %s71_s24 = sshll.u32 %s5831_s23, 4  ;;  %s46_s22 = int_to_ptr.vmem [resolvable:$true] %s45_s22  ;;  %s72_s24 = int_to_ptr.vmem [resolvable:$true] %s71_s24 }
   0x4   :  { %s5732_s25 = scalar_lea.vmem %s46_s22, 2048  ;;  %p5737_p1 = scmp.lt.s32.totalorder %s46_s22, %s46_s22 }
   0x5   :  { %p5733_p0 = scmp.ne.s32.totalorder %s46_s22, %s5732_s25  ;;  %p5738_p2 = scmp.lt.s32.totalorder %s5732_s25, %s5732_s25 }
   0x7   :  { %p5739_p3 = por %p5738_p2, %p5737_p1 }
   0x9   :  { %p5740_p4 = pnand %p5739_p3, %p5733_p0 }
   0xb   :  { %5743 = shalt.err (!%p5740_p4)
}
   0xc   :  { %s5832_s26 = smov 128   ;;  %s5833_s27 = smov 8  }
   0xd   :  { %51 = dma.hbm_to_vmem [thread:$0]  %s7995_s5, 2048, %s46_s22, [#allocation6], %s5832_s26, %s5832_s26, %s5833_s27  }
   0xe   :  { %s5752_s30 = scalar_lea.vmem %s72_s24, 2048  ;;  %p5757_p6 = scmp.lt.s32.totalorder %s72_s24, %s72_s24 }
   0xf   :  { %p5753_p5 = scmp.ne.s32.totalorder %s72_s24, %s5752_s30  ;;  %p5758_p7 = scmp.lt.s32.totalorder %s5752_s30, %s5752_s30 }
  0x11   :  { %p5759_p8 = por %p5758_p7, %p5757_p6 }
  0x13   :  { %p5760_p9 = pnand %p5759_p8, %p5753_p5 }
  0x15   :  { %5763 = shalt.err (!%p5760_p9)
}
  0x16   :  { %77 = dma.hbm_to_vmem [thread:$0]  %s7998_s8, 2048, %s72_s24, [#allocation9], %s5832_s26, %s5832_s26, %s5833_s27  }
  0x17   :  { %s5834_s15 = smov [#allocation3]   ;;  %s5835_s17 = smov [#allocation7]  }
  0x18   :  { %s33_s16 = sshll.u32 %s5834_s15, 4  ;;  %s59_s18 = sshll.u32 %s5835_s17, 4  ;;  %s34_s16 = int_to_ptr.vmem [resolvable:$true] %s33_s16  ;;  %s60_s18 = int_to_ptr.vmem [resolvable:$true] %s59_s18 }
  0x19   :  { %s5772_s5 = scalar_lea.vmem %s34_s16, 2048  ;;  %p5777_p11 = scmp.lt.s32.totalorder %s34_s16, %s34_s16 }
  0x1a   :  { %p5773_p10 = scmp.ne.s32.totalorder %s34_s16, %s5772_s5  ;;  %p5778_p12 = scmp.lt.s32.totalorder %s5772_s5, %s5772_s5 }
  0x1c   :  { %p5779_p13 = por %p5778_p12, %p5777_p11 }
  0x1e   :  { %p5780_p0 = pnand %p5779_p13, %p5773_p10 }
  0x20   :  { %5783 = shalt.err (!%p5780_p0)
}
  0x21   :  { %39 = dma.hbm_to_vmem [thread:$0]  %s7994_s4, 2048, %s34_s16, [#allocation4], %s5832_s26, %s5832_s26, %s5833_s27  }
  0x22   :  { %s5792_s8 = scalar_lea.vmem %s60_s18, 2048  ;;  %p5797_p2 = scmp.lt.s32.totalorder %s60_s18, %s60_s18 }
  0x23   :  { %p5793_p1 = scmp.ne.s32.totalorder %s60_s18, %s5792_s8  ;;  %p5798_p3 = scmp.lt.s32.totalorder %s5792_s8, %s5792_s8 }
  0x25   :  { %p5799_p4 = por %p5798_p3, %p5797_p2 }
  0x27   :  { %p5800_p5 = pnand %p5799_p4, %p5793_p1 }
  0x29   :  { %5803 = shalt.err (!%p5800_p5)
}
  0x2a   :  { %65 = dma.hbm_to_vmem [thread:$0]  %s7997_s7, 2048, %s60_s18, [#allocation6], %s5832_s26, %s5832_s26, %s5833_s27  }
  0x2b   :  { %s5836_s23 = smov [#allocation10]  }
  0x2c   :  { %s85_s24 = sshll.u32 %s5836_s23, 4  ;;  %s86_s24 = int_to_ptr.vmem [resolvable:$true] %s85_s24 }
  0x2d   :  { %s5812_s25 = scalar_lea.vmem %s86_s24, 2048  ;;  %p5817_p7 = scmp.lt.s32.totalorder %s86_s24, %s86_s24 }
  0x2e   :  { %p5813_p6 = scmp.ne.s32.totalorder %s86_s24, %s5812_s25  ;;  %p5818_p8 = scmp.lt.s32.totalorder %s5812_s25, %s5812_s25 }
  0x30   :  { %p5819_p9 = por %p5818_p8, %p5817_p7 }
  0x32   :  { %p5820_p10 = pnand %p5819_p9, %p5813_p6 }
  0x34   :  { %5823 = shalt.err (!%p5820_p10)
}
  0x35   :  { %91 = dma.hbm_to_vmem [thread:$0]  %s8000_s10, 2048, %s86_s24, [#allocation9], %s5832_s26, %s5832_s26, %s5833_s27  }
  0x36   :  { %5824 = dma.done.wait [#allocation4], 2048  }
  0x37   :  { %5825 = vsyncadd [#allocation4], 4294965248 }
  0x38   :  { %5826 = dma.done.wait [#allocation6], 4096  }
  0x39   :  { %5827 = vsyncadd [#allocation6], 4294963200 }
  0x3a   :  { %5828 = dma.done.wait [#allocation9], 4096  }
  0x3b   :  { %5829 = vsyncadd [#allocation9], 4294963200  ;;  %v5837_v0 = vmov 0.0   ;;  %vm5838_vm0 = vmmov 0   ;;  %v132_v1 = vld [vmem:[%s7991_s1 + $0x78] sm:$0xff]  ;;  %v131_v2 = vld [vmem:[%s7991_s1 + $0x70] sm:$0xff] }
  0x3c   :  { %4080 = vmatprep.subr.mxu1 %v5837_v0  ;;  %4112 = vmatprep.mubr.msk.f32.mxu1 %vm5838_vm0, %v5837_v0  ;;  %v5946_v3 = vld [vmem:[%s7992_s2 + $0x78] sm:$0xff]  ;;  %v5952_v4 = vld [vmem:[%s7992_s2 + $0x70] sm:$0xff]  ;;  %v130_v5 = vld [vmem:[%s7991_s1 + $0x68] sm:$0xff] }
  0x3d   :  { %4036 = vmatprep.subr.mxu0 %v132_v1  ;;  %4081 = vmatpush3.msra.mxu1 %v5946_v3  ;;  %v5961_v6 = vld [vmem:[%s7992_s2 + $0x68] sm:$0xff]  ;;  %v129_v7 = vld [vmem:[%s7991_s1 + $0x60] sm:$0xff]  ;;  %v128_v9 = vld [vmem:[%s7991_s1 + $0x58] sm:$0xff] }
  0x3e   :  { %4037 = vmatpush3.msra.mxu0 %v132_v1  ;;  %4082 = vmatprep.subr.mxu1 %v5837_v0  ;;  %v5971_v8 = vld [vmem:[%s7992_s2 + $0x60] sm:$0xff]  ;;  %v5981_v10 = vld [vmem:[%s7992_s2 + $0x58] sm:$0xff]  ;;  %v127_v11 = vld [vmem:[%s7991_s1 + $0x50] sm:$0xff] }
  0x3f   :  { %4038 = vmatprep.subr.mxu0 %v131_v2  ;;  %4083 = vmatpush3.msra.mxu1 %v5952_v4  ;;  %v5991_v12 = vld [vmem:[%s7992_s2 + $0x50] sm:$0xff]  ;;  %v126_v13 = vld [vmem:[%s7991_s1 + $0x48] sm:$0xff]  ;;  %v125_v15 = vld [vmem:[%s7991_s1 + $0x40] sm:$0xff] }
  0x40   :  { %4039 = vmatpush3.msra.mxu0 %v131_v2  ;;  %4084 = vmatprep.subr.mxu1 %v5837_v0  ;;  %v6001_v14 = vld [vmem:[%s7992_s2 + $0x48] sm:$0xff]  ;;  %v6011_v16 = vld [vmem:[%s7992_s2 + $0x40] sm:$0xff]  ;;  %v124_v17 = vld [vmem:[%s7991_s1 + $0x38] sm:$0xff] }
  0x41   :  { %4040 = vmatprep.subr.mxu0 %v130_v5  ;;  %4085 = vmatpush3.msra.mxu1 %v5961_v6  ;;  %v6021_v18 = vld [vmem:[%s7992_s2 + $0x38] sm:$0xff]  ;;  %v123_v19 = vld [vmem:[%s7991_s1 + $0x30] sm:$0xff]  ;;  %v122_v21 = vld [vmem:[%s7991_s1 + $0x28] sm:$0xff] }
  0x42   :  { %4041 = vmatpush3.msra.mxu0 %v130_v5  ;;  %4086 = vmatprep.subr.mxu1 %v5837_v0  ;;  %v6031_v20 = vld [vmem:[%s7992_s2 + $0x30] sm:$0xff]  ;;  %v6041_v22 = vld [vmem:[%s7992_s2 + $0x28] sm:$0xff]  ;;  %v121_v23 = vld [vmem:[%s7991_s1 + $0x20] sm:$0xff] }
  0x43   :  { %4042 = vmatprep.subr.mxu0 %v129_v7  ;;  %4087 = vmatpush3.msra.mxu1 %v5971_v8  ;;  %v6051_v24 = vld [vmem:[%s7992_s2 + $0x20] sm:$0xff]  ;;  %v120_v25 = vld [vmem:[%s7991_s1 + $0x18] sm:$0xff]  ;;  %v119_v27 = vld [vmem:[%s7991_s1 + $0x10] sm:$0xff] }
  0x44   :  { %4043 = vmatpush3.msra.mxu0 %v129_v7  ;;  %4088 = vmatprep.subr.mxu1 %v5837_v0  ;;  %v6061_v26 = vld [vmem:[%s7992_s2 + $0x18] sm:$0xff]  ;;  %v6071_v28 = vld [vmem:[%s7992_s2 + $0x10] sm:$0xff]  ;;  %v118_v29 = vld [vmem:[%s7991_s1 + $0x8] sm:$0xff] }
  0x45   :  { %4044 = vmatprep.subr.mxu0 %v128_v9  ;;  %4089 = vmatpush3.msra.mxu1 %v5981_v10  ;;  %v109_v30 = vld [vmem:[%s7990_s0] sm:$0xff]  ;;  %v6085_v31 = vld [vmem:[%s7992_s2 + $0x8] sm:$0xff]  ;;  %v111_v35 = vld [vmem:[%s7990_s0 + $0x10] sm:$0xff] }
  0x46   :  { %4045 = vmatpush3.msra.mxu0 %v128_v9  ;;  %4090 = vmatprep.subr.mxu1 %v5837_v0  ;;  %v117_v32 = vld [vmem:[%s7991_s1] sm:$0xff]  ;;  %v110_v34 = vld [vmem:[%s7990_s0 + $0x8] sm:$0xff]  ;;  %v112_v36 = vld [vmem:[%s7990_s0 + $0x18] sm:$0xff] }
  0x47   :  { %4046 = vmatprep.subr.mxu0 %v127_v11  ;;  %4091 = vmatpush3.msra.mxu1 %v5991_v12  ;;  %v6094_v33 = vld [vmem:[%s7992_s2] sm:$0xff]  ;;  %v114_v38 = vld [vmem:[%s7990_s0 + $0x28] sm:$0xff]  ;;  %v6151_v39 = vld [vmem:[#allocation5 + $0x78] sm:$0xff] }
  0x48   :  { %4047 = vmatpush3.msra.mxu0 %v127_v11  ;;  %4092 = vmatprep.subr.mxu1 %v5837_v0  ;;  %v113_v37 = vld [vmem:[%s7990_s0 + $0x20] sm:$0xff]  ;;  %v115_v40 = vld [vmem:[%s7990_s0 + $0x30] sm:$0xff]  ;;  %v116_v41 = vld [vmem:[%s7990_s0 + $0x38] sm:$0xff] }
  0x49   :  { %4048 = vmatprep.subr.mxu0 %v126_v13  ;;  %4093 = vmatpush3.msra.mxu1 %v6001_v14  ;;  %v6163_v42 = vld [vmem:[#allocation5 + $0x70] sm:$0xff]  ;;  %v6167_v43 = vld [vmem:[#allocation5 + $0x68] sm:$0xff]  ;;  %v6171_v44 = vld [vmem:[#allocation5 + $0x60] sm:$0xff] }
  0x4a   :  { %4049 = vmatpush3.msra.mxu0 %v126_v13  ;;  %4094 = vmatprep.subr.mxu1 %v5837_v0  ;;  %v6175_v45 = vld [vmem:[#allocation5 + $0x58] sm:$0xff]  ;;  %v6179_v46 = vld [vmem:[#allocation5 + $0x50] sm:$0xff]  ;;  %v6183_v47 = vld [vmem:[#allocation5 + $0x48] sm:$0xff] }
  0x4b   :  { %4050 = vmatprep.subr.mxu0 %v125_v15  ;;  %4095 = vmatpush3.msra.mxu1 %v6011_v16  ;;  %v6187_v48 = vld [vmem:[#allocation5 + $0x40] sm:$0xff]  ;;  %v6191_v49 = vld [vmem:[#allocation5 + $0x38] sm:$0xff]  ;;  %v6195_v50 = vld [vmem:[#allocation5 + $0x30] sm:$0xff] }
  0x4c   :  { %4051 = vmatpush3.msra.mxu0 %v125_v15  ;;  %4096 = vmatprep.subr.mxu1 %v5837_v0  ;;  %v6199_v51 = vld [vmem:[#allocation5 + $0x28] sm:$0xff]  ;;  %v6203_v52 = vld [vmem:[#allocation5 + $0x20] sm:$0xff]  ;;  %v6207_v53 = vld [vmem:[#allocation5 + $0x18] sm:$0xff] }
  0x4d   :  { %4052 = vmatprep.subr.mxu0 %v124_v17  ;;  %4097 = vmatpush3.msra.mxu1 %v6021_v18  ;;  %v6211_v54 = vld [vmem:[#allocation5 + $0x10] sm:$0xff]  ;;  %v6215_v55 = vld [vmem:[#allocation5 + $0x8] sm:$0xff]  ;;  %v6219_v56 = vld [vmem:[#allocation5] sm:$0xff] }
  0x4e   :  { %4053 = vmatpush3.msra.mxu0 %v124_v17  ;;  %4098 = vmatprep.subr.mxu1 %v5837_v0  ;;  %v6263_v59 = vld [vmem:[%s7993_s3] ss:$0 sm:$0xff]  ;;  %v6266_v1 = vld [vmem:[#allocation3 + $0x78] sm:$0xff]  ;;  %v6268_v5 = vld [vmem:[#allocation3 + $0x70] sm:$0xff] }
  0x4f   :  { %4054 = vmatprep.subr.mxu0 %v123_v19  ;;  %4099 = vmatpush3.msra.mxu1 %v6031_v20  ;;  %v6274_v7 = vld [vmem:[#allocation3 + $0x68] sm:$0xff]  ;;  %v6278_v9 = vld [vmem:[#allocation3 + $0x60] sm:$0xff]  ;;  %v6282_v11 = vld [vmem:[#allocation3 + $0x58] sm:$0xff] }
  0x50   :  { %4055 = vmatpush3.msra.mxu0 %v123_v19  ;;  %4100 = vmatprep.subr.mxu1 %v5837_v0  ;;  %v6286_v13 = vld [vmem:[#allocation3 + $0x50] sm:$0xff]  ;;  %v6290_v15 = vld [vmem:[#allocation3 + $0x48] sm:$0xff]  ;;  %v6294_v17 = vld [vmem:[#allocation3 + $0x40] sm:$0xff] }
  0x51   :  { %4056 = vmatprep.subr.mxu0 %v122_v21  ;;  %4101 = vmatpush3.msra.mxu1 %v6041_v22  ;;  %v6298_v19 = vld [vmem:[#allocation3 + $0x38] sm:$0xff] }
  0x52   :  { %4057 = vmatpush3.msra.mxu0 %v122_v21  ;;  %4102 = vmatprep.subr.mxu1 %v5837_v0  ;;  %v6302_v21 = vld [vmem:[#allocation3 + $0x30] sm:$0xff] }
  0x53   :  { %4058 = vmatprep.subr.mxu0 %v121_v23  ;;  %4103 = vmatpush3.msra.mxu1 %v6051_v24 }
  0x54   :  { %4059 = vmatpush3.msra.mxu0 %v121_v23  ;;  %4104 = vmatprep.subr.mxu1 %v5837_v0  ;;  %v6306_v23 = vld [vmem:[#allocation3 + $0x28] sm:$0xff] }
  0x55   :  { %4060 = vmatprep.subr.mxu0 %v120_v25  ;;  %4105 = vmatpush3.msra.mxu1 %v6061_v26 }
  0x56   :  { %4061 = vmatpush3.msra.mxu0 %v120_v25  ;;  %4106 = vmatprep.subr.mxu1 %v5837_v0  ;;  %v6310_v25 = vld [vmem:[#allocation3 + $0x20] sm:$0xff] }
  0x57   :  { %4062 = vmatprep.subr.mxu0 %v119_v27  ;;  %4107 = vmatpush3.msra.mxu1 %v6071_v28 }
  0x58   :  { %4063 = vmatpush3.msra.mxu0 %v119_v27  ;;  %4108 = vmatprep.subr.mxu1 %v5837_v0  ;;  %v6314_v27 = vld [vmem:[#allocation3 + $0x18] sm:$0xff] }
  0x59   :  { %4064 = vmatprep.subr.mxu0 %v118_v29  ;;  %4068 = vmatprep.mubr.f32.mxu0 %v109_v30  ;;  %v6322_v30 = vld [vmem:[#allocation3 + $0x8] sm:$0xff] }
  0x5a   :  { %4065 = vmatpush3.msra.mxu0 %v118_v29  ;;  %4109 = vmatpush3.msra.mxu1 %v6085_v31  ;;  %v6318_v29 = vld [vmem:[#allocation3 + $0x10] sm:$0xff] }
  0x5b   :  { %4066 = vmatprep.subr.mxu0 %v117_v32  ;;  %4110 = vmatprep.subr.mxu1 %v5837_v0 }
  0x5c   :  { %4067 = vmatpush3.msra.mxu0 %v117_v32  ;;  %4111 = vmatpush3.msra.mxu1 %v6094_v33  ;;  %v6326_v32 = vld [vmem:[#allocation3] sm:$0xff] }
  0x5d   :  { %4069 = vmatmul.mubr.f32.vlgmr.msra.gmra.mxu0 %v110_v34  ;;  %4113 = vmatmul.mubr.f32.vlgmr.msra.gmra.mxu1 %v5837_v0 }
  0x5e   :  { %4115 = vmatprep.subr.mxu0 %v5837_v0  ;;  %4150 = vmatprep.subr.mxu1 %v5837_v0 }
  0x5f   :  { %4116 = vmatpush3.msra.mxu0 %v5946_v3  ;;  %4182 = vmatprep.mubr.msk.f32.mxu1 %vm5838_vm0, %v5837_v0 }
  0x60   :  { %4117 = vmatprep.subr.mxu0 %v5837_v0  ;;  %4071 = vmatprep.mubr.f32.mxu0 %v111_v35 }
  0x61   :  { %4118 = vmatpush3.msra.mxu0 %v5952_v4  ;;  %4151 = vmatpush3.msra.mxu1 %v6151_v39 }
  0x62   :  { %4119 = vmatprep.subr.mxu0 %v5837_v0  ;;  %4072 = vmatmul.mubr.f32.gmra.mxu0 %v112_v36 }
  0x63   :  { %4120 = vmatpush3.msra.mxu0 %v5961_v6  ;;  %4074 = vmatprep.mubr.f32.mxu0 %v113_v37 }
  0x64   :  { %4121 = vmatprep.subr.mxu0 %v5837_v0  ;;  %4152 = vmatprep.subr.mxu1 %v5837_v0 }
  0x65   :  { %4122 = vmatpush3.msra.mxu0 %v5971_v8  ;;  %4153 = vmatpush3.msra.mxu1 %v6163_v42 }
  0x66   :  { %4123 = vmatprep.subr.mxu0 %v5837_v0  ;;  %4075 = vmatmul.mubr.f32.gmra.mxu0 %v114_v38 }
  0x67   :  { %4124 = vmatpush3.msra.mxu0 %v5981_v10  ;;  %4077 = vmatprep.mubr.f32.mxu0 %v115_v40 }
  0x68   :  { %4125 = vmatprep.subr.mxu0 %v5837_v0  ;;  %4154 = vmatprep.subr.mxu1 %v5837_v0 }
  0x69   :  { %4126 = vmatpush3.msra.mxu0 %v5991_v12  ;;  %4155 = vmatpush3.msra.mxu1 %v6167_v43 }
  0x6a   :  { %4127 = vmatprep.subr.mxu0 %v5837_v0  ;;  %4078 = vmatmul.mubr.f32.gmra.mxu0 %v116_v41 }
  0x6b   :  { %4128 = vmatpush3.msra.mxu0 %v6001_v14  ;;  %4147 = vmatprep.mubr.msk.f32.mxu0 %vm5838_vm0, %v5837_v0 }
  0x6c   :  { %4129 = vmatprep.subr.mxu0 %v5837_v0  ;;  %4156 = vmatprep.subr.mxu1 %v5837_v0 }
  0x6d   :  { %4130 = vmatpush3.msra.mxu0 %v6011_v16  ;;  %4157 = vmatpush3.msra.mxu1 %v6171_v44 }
  0x6e   :  { %4131 = vmatprep.subr.mxu0 %v5837_v0  ;;  %4158 = vmatprep.subr.mxu1 %v5837_v0 }
  0x6f   :  { %4132 = vmatpush3.msra.mxu0 %v6021_v18  ;;  %4159 = vmatpush3.msra.mxu1 %v6175_v45 }
  0x70   :  { %4133 = vmatprep.subr.mxu0 %v5837_v0  ;;  %4160 = vmatprep.subr.mxu1 %v5837_v0 }
  0x71   :  { %4134 = vmatpush3.msra.mxu0 %v6031_v20  ;;  %4161 = vmatpush3.msra.mxu1 %v6179_v46 }
  0x72   :  { %4135 = vmatprep.subr.mxu0 %v5837_v0  ;;  %4162 = vmatprep.subr.mxu1 %v5837_v0 }
  0x73   :  { %4136 = vmatpush3.msra.mxu0 %v6041_v22  ;;  %4163 = vmatpush3.msra.mxu1 %v6183_v47 }
  0x74   :  { %4137 = vmatprep.subr.mxu0 %v5837_v0  ;;  %4164 = vmatprep.subr.mxu1 %v5837_v0 }
  0x75   :  { %4138 = vmatpush3.msra.mxu0 %v6051_v24  ;;  %4165 = vmatpush3.msra.mxu1 %v6187_v48 }
  0x76   :  { %4139 = vmatprep.subr.mxu0 %v5837_v0  ;;  %4166 = vmatprep.subr.mxu1 %v5837_v0 }
  0x77   :  { %4140 = vmatpush3.msra.mxu0 %v6061_v26  ;;  %4167 = vmatpush3.msra.mxu1 %v6191_v49 }
  0x78   :  { %4141 = vmatprep.subr.mxu0 %v5837_v0  ;;  %4168 = vmatprep.subr.mxu1 %v5837_v0 }
  0x79   :  { %4142 = vmatpush3.msra.mxu0 %v6071_v28  ;;  %4169 = vmatpush3.msra.mxu1 %v6195_v50 }
  0x7a   :  { %4143 = vmatprep.subr.mxu0 %v5837_v0  ;;  %4170 = vmatprep.subr.mxu1 %v5837_v0 }
  0x7b   :  { %4144 = vmatpush3.msra.mxu0 %v6085_v31  ;;  %4171 = vmatpush3.msra.mxu1 %v6199_v51 }
  0x7c   :  { %4145 = vmatprep.subr.mxu0 %v5837_v0  ;;  %4172 = vmatprep.subr.mxu1 %v5837_v0 }
  0x7d   :  { %4146 = vmatpush3.msra.mxu0 %v6094_v33  ;;  %4173 = vmatpush3.msra.mxu1 %v6203_v52 }
  0x7e   :  { %4185 = vmatprep.subr.mxu0 %v5837_v0  ;;  %4174 = vmatprep.subr.mxu1 %v5837_v0 }
  0x7f   :  { %4175 = vmatpush3.msra.mxu1 %v6207_v53 }
  0x80   :  { %4176 = vmatprep.subr.mxu1 %v5837_v0 }
  0x81   :  { %4177 = vmatpush3.msra.mxu1 %v6211_v54 }
  0x82   :  { %4178 = vmatprep.subr.mxu1 %v5837_v0 }
  0x83   :  { %4179 = vmatpush3.msra.mxu1 %v6215_v55 }
  0x84   :  { %4180 = vmatprep.subr.mxu1 %v5837_v0 }
  0x85   :  { %4181 = vmatpush3.msra.mxu1 %v6219_v56 }
  0x86   :  { %4183 = vmatmul.mubr.f32.vlgmr.msra.gmra.mxu1 %v5837_v0  ;;  %4220 = vmatprep.subr.mxu1 %v5837_v0 }
  0x87   :  { %4221 = vmatpush3.msra.mxu1 %v5946_v3  ;;  %4252 = vmatprep.mubr.msk.f32.mxu1 %vm5838_vm0, %v5837_v0 }
  0x88   :  { %4222 = vmatprep.subr.mxu1 %v5837_v0 }
  0x89   :  { %4223 = vmatpush3.msra.mxu1 %v5952_v4 }
  0x8a   :  { %4224 = vmatprep.subr.mxu1 %v5837_v0 }
  0x8b   :  { %4225 = vmatpush3.msra.mxu1 %v5961_v6 }
  0x8c   :  { %4226 = vmatprep.subr.mxu1 %v5837_v0 }
  0x8d   :  { %4227 = vmatpush3.msra.mxu1 %v5971_v8 }
  0x8e   :  { %4228 = vmatprep.subr.mxu1 %v5837_v0 }
  0x8f   :  { %4229 = vmatpush3.msra.mxu1 %v5981_v10 }
  0x90   :  { %4230 = vmatprep.subr.mxu1 %v5837_v0 }
  0x91   :  { %4231 = vmatpush3.msra.mxu1 %v5991_v12 }
  0x92   :  { %4232 = vmatprep.subr.mxu1 %v5837_v0 }
  0x93   :  { %4233 = vmatpush3.msra.mxu1 %v6001_v14 }
  0x94   :  { %4234 = vmatprep.subr.mxu1 %v5837_v0 }
  0x95   :  { %4235 = vmatpush3.msra.mxu1 %v6011_v16 }
  0x96   :  { %4236 = vmatprep.subr.mxu1 %v5837_v0 }
  0x97   :  { %4237 = vmatpush3.msra.mxu1 %v6021_v18 }
  0x98   :  { %4238 = vmatprep.subr.mxu1 %v5837_v0 }
  0x99   :  { %4239 = vmatpush3.msra.mxu1 %v6031_v20 }
  0x9a   :  { %4240 = vmatprep.subr.mxu1 %v5837_v0 }
  0x9b   :  { %4241 = vmatpush3.msra.mxu1 %v6041_v22 }
  0x9c   :  { %4242 = vmatprep.subr.mxu1 %v5837_v0 }
  0x9d   :  { %4243 = vmatpush3.msra.mxu1 %v6051_v24 }
  0x9e   :  { %4244 = vmatprep.subr.mxu1 %v5837_v0 }
  0x9f   :  { %4245 = vmatpush3.msra.mxu1 %v6061_v26 }
  0xa0   :  { %4246 = vmatprep.subr.mxu1 %v5837_v0 }
  0xa1   :  { %4247 = vmatpush3.msra.mxu1 %v6071_v28 }
  0xa2   :  { %4248 = vmatprep.subr.mxu1 %v5837_v0 }
  0xa3   :  { %4249 = vmatpush3.msra.mxu1 %v6085_v31 }
  0xa4   :  { %4250 = vmatprep.subr.mxu1 %v5837_v0 }
  0xa5   :  { %4251 = vmatpush3.msra.mxu1 %v6094_v33 }
  0xa6   :  { %4290 = vmatprep.subr.mxu1 %v5837_v0 }
 0x11d   :  { %v6258_v57 = vpop.f32.mrf.mxu0  ;;  %v350_v58 = vpop.f32.mrf.mxu1 }
 0x11f   :  { %v206_v60 = vpop.f32.mrf.mxu0  ;;  %v4114_v61 = vpop.f32.mrf.mxu1 }
 0x120   :  { %v207_v62 = vadd.f32 %v6263_v59, %v206_v60  ;;  %v212_v60 = vadd.f32 %v6258_v57, %v6263_v59  ;;  %v6399_v57 = vld [vmem:[%s7996_s6] ss:$0 sm:$0xff] }
 0x122   :  { %v354_v63 = vadd.f32 %v350_v58, %v207_v62  ;;  %v6366_v36 = vpop.f32.mrf.mxu0 }
 0x123   :  { %8149 = vst [vmem:[#allocation14_spill] sm:$0xff] %v6366_v36  ;;  %v6459_v36 = vld [vmem:[#allocation7 + $0x50] sm:$0xff] }
 0x124   :  { %5524 = vtanh.f32 %v354_v63  ;;  %v6368_v37 = vpop.f32.mrf.mxu0  ;;  %8160 = vst [vmem:[#allocation25_spill] sm:$0xff] %v6459_v36 }
 0x126   :  { %v6370_v38 = vpop.f32.mrf.mxu0 }
 0x127   :  { %8150 = vst [vmem:[#allocation15_spill] sm:$0xff] %v6370_v38  ;;  %v6451_v38 = vld [vmem:[#allocation7 + $0x58] sm:$0xff] }
 0x128   :  { %v6372_v40 = vpop.f32.mrf.mxu0  ;;  %8158 = vst [vmem:[#allocation23_spill] sm:$0xff] %v6451_v38 }
 0x129   :  { %8151 = vst [vmem:[#allocation16_spill] sm:$0xff] %v6372_v40  ;;  %v6457_v40 = vld [vmem:[#allocation8 + $0x58] sm:$0xff] }
 0x12a   :  { %v6374_v41 = vpop.f32.mrf.mxu0  ;;  %8159 = vst [vmem:[#allocation24_spill] sm:$0xff] %v6457_v40 }
 0x12b   :  { %8152 = vst [vmem:[#allocation17_spill] sm:$0xff] %v6374_v41  ;;  %v6443_v41 = vld [vmem:[#allocation7 + $0x60] sm:$0xff] }
 0x12c   :  { %v6376_v58 = vpop.f32.mrf.mxu0  ;;  %8156 = vst [vmem:[#allocation21_spill] sm:$0xff] %v6443_v41 }
 0x12d   :  { %8153 = vst [vmem:[#allocation18_spill] sm:$0xff] %v6376_v58  ;;  %v6449_v58 = vld [vmem:[#allocation8 + $0x60] sm:$0xff] }
 0x12e   :  { %8157 = vst [vmem:[#allocation22_spill] sm:$0xff] %v6449_v58 }
 0x131   :  { %v5525_v2 = vpop.eup %5524 }
 0x132   :  { %4148 = vmatmul.mubr.f32.vlgmr.msra.gmra.mxu0 %v5525_v2 }
 0x133   :  { %4186 = vmatpush3.msra.mxu0 %v6266_v1  ;;  %4217 = vmatprep.mubr.msk.f32.mxu0 %vm5838_vm0, %v5837_v0 }
 0x134   :  { %4187 = vmatprep.subr.mxu0 %v5837_v0 }
 0x135   :  { %4188 = vmatpush3.msra.mxu0 %v6268_v5 }
 0x136   :  { %4189 = vmatprep.subr.mxu0 %v5837_v0 }
 0x137   :  { %4190 = vmatpush3.msra.mxu0 %v6274_v7 }
 0x138   :  { %4191 = vmatprep.subr.mxu0 %v5837_v0 }
 0x139   :  { %4192 = vmatpush3.msra.mxu0 %v6278_v9 }
 0x13a   :  { %4193 = vmatprep.subr.mxu0 %v5837_v0 }
 0x13b   :  { %4194 = vmatpush3.msra.mxu0 %v6282_v11 }
 0x13c   :  { %4195 = vmatprep.subr.mxu0 %v5837_v0 }
 0x13d   :  { %4196 = vmatpush3.msra.mxu0 %v6286_v13 }
 0x13e   :  { %4197 = vmatprep.subr.mxu0 %v5837_v0 }
 0x13f   :  { %4198 = vmatpush3.msra.mxu0 %v6290_v15 }
 0x140   :  { %4199 = vmatprep.subr.mxu0 %v5837_v0 }
 0x141   :  { %4200 = vmatpush3.msra.mxu0 %v6294_v17 }
 0x142   :  { %4201 = vmatprep.subr.mxu0 %v5837_v0 }
 0x143   :  { %4202 = vmatpush3.msra.mxu0 %v6298_v19 }
 0x144   :  { %4203 = vmatprep.subr.mxu0 %v5837_v0 }
 0x145   :  { %4204 = vmatpush3.msra.mxu0 %v6302_v21 }
 0x146   :  { %4205 = vmatprep.subr.mxu0 %v5837_v0  ;;  %v528_v34 = vpop.f32.mrf.mxu1 }
 0x147   :  { %4206 = vmatpush3.msra.mxu0 %v6306_v23 }
 0x148   :  { %4207 = vmatprep.subr.mxu0 %v5837_v0  ;;  %v4184_v35 = vpop.f32.mrf.mxu1 }
 0x149   :  { %4208 = vmatpush3.msra.mxu0 %v6310_v25 }
 0x14a   :  { %4209 = vmatprep.subr.mxu0 %v5837_v0 }
 0x14b   :  { %4210 = vmatpush3.msra.mxu0 %v6314_v27 }
 0x14c   :  { %4211 = vmatprep.subr.mxu0 %v5837_v0 }
 0x14d   :  { %4212 = vmatpush3.msra.mxu0 %v6318_v29 }
 0x14e   :  { %4213 = vmatprep.subr.mxu0 %v5837_v0 }
 0x14f   :  { %4214 = vmatpush3.msra.mxu0 %v6322_v30 }
 0x150   :  { %4215 = vmatprep.subr.mxu0 %v5837_v0 }
 0x151   :  { %4216 = vmatpush3.msra.mxu0 %v6326_v32 }
 0x152   :  { %4218 = vmatmul.mubr.f32.vlgmr.msra.gmra.mxu0 %v5525_v2  ;;  %4255 = vmatprep.subr.mxu0 %v5837_v0 }
 0x153   :  { %4256 = vmatpush3.msra.mxu0 %v6151_v39  ;;  %4287 = vmatprep.mubr.msk.f32.mxu0 %vm5838_vm0, %v5837_v0 }
 0x154   :  { %4257 = vmatprep.subr.mxu0 %v5837_v0 }
 0x155   :  { %4258 = vmatpush3.msra.mxu0 %v6163_v42 }
 0x156   :  { %4259 = vmatprep.subr.mxu0 %v5837_v0 }
 0x157   :  { %4260 = vmatpush3.msra.mxu0 %v6167_v43 }
 0x158   :  { %4261 = vmatprep.subr.mxu0 %v5837_v0 }
 0x159   :  { %4262 = vmatpush3.msra.mxu0 %v6171_v44 }
 0x15a   :  { %4263 = vmatprep.subr.mxu0 %v5837_v0 }
 0x15b   :  { %4264 = vmatpush3.msra.mxu0 %v6175_v45 }
 0x15c   :  { %4265 = vmatprep.subr.mxu0 %v5837_v0 }
 0x15d   :  { %4266 = vmatpush3.msra.mxu0 %v6179_v46 }
 0x15e   :  { %4267 = vmatprep.subr.mxu0 %v5837_v0 }
 0x15f   :  { %4268 = vmatpush3.msra.mxu0 %v6183_v47 }
 0x160   :  { %4269 = vmatprep.subr.mxu0 %v5837_v0 }
 0x161   :  { %4270 = vmatpush3.msra.mxu0 %v6187_v48 }
 0x162   :  { %4271 = vmatprep.subr.mxu0 %v5837_v0 }
 0x163   :  { %4272 = vmatpush3.msra.mxu0 %v6191_v49 }
 0x164   :  { %4273 = vmatprep.subr.mxu0 %v5837_v0 }
 0x165   :  { %4274 = vmatpush3.msra.mxu0 %v6195_v50 }
 0x166   :  { %4275 = vmatprep.subr.mxu0 %v5837_v0 }
 0x167   :  { %4276 = vmatpush3.msra.mxu0 %v6199_v51 }
 0x168   :  { %4277 = vmatprep.subr.mxu0 %v5837_v0 }
 0x169   :  { %4278 = vmatpush3.msra.mxu0 %v6203_v52 }
 0x16a   :  { %4279 = vmatprep.subr.mxu0 %v5837_v0 }
 0x16b   :  { %4280 = vmatpush3.msra.mxu0 %v6207_v53 }
 0x16c   :  { %4281 = vmatprep.subr.mxu0 %v5837_v0 }
 0x16d   :  { %4282 = vmatpush3.msra.mxu0 %v6211_v54 }
 0x16e   :  { %4283 = vmatprep.subr.mxu0 %v5837_v0 }
 0x16f   :  { %4284 = vmatpush3.msra.mxu0 %v6215_v55 }
 0x170   :  { %4285 = vmatprep.subr.mxu0 %v5837_v0 }
 0x171   :  { %4286 = vmatpush3.msra.mxu0 %v6219_v56 }
 0x172   :  { %4325 = vmatprep.subr.mxu0 %v5837_v0 }
 0x1f2   :  { %v424_v61 = vpop.f32.mrf.mxu0 }
 0x1f3   :  { %v428_v62 = vadd.f32 %v424_v61, %v212_v60 }
 0x1f4   :  { %v4149_v63 = vpop.f32.mrf.mxu0 }
 0x1f5   :  { %5526 = vtanh.f32 %v428_v62  ;;  %v6422_v63 = vld [vmem:[#allocation8 + $0x78] sm:$0xff] }
 0x202   :  { %v5527_v2 = vpop.eup %5526 }
 0x203   :  { %4253 = vmatmul.mubr.f32.vlgmr.msra.gmra.mxu1 %v5527_v2 }
 0x204   :  { %4291 = vmatpush3.msra.mxu1 %v6266_v1  ;;  %4322 = vmatprep.mubr.msk.f32.mxu1 %vm5838_vm0, %v5837_v0 }
 0x205   :  { %4292 = vmatprep.subr.mxu1 %v5837_v0 }
 0x206   :  { %4293 = vmatpush3.msra.mxu1 %v6268_v5 }
 0x207   :  { %4294 = vmatprep.subr.mxu1 %v5837_v0 }
 0x208   :  { %4295 = vmatpush3.msra.mxu1 %v6274_v7 }
 0x209   :  { %4296 = vmatprep.subr.mxu1 %v5837_v0 }
 0x20a   :  { %4297 = vmatpush3.msra.mxu1 %v6278_v9 }
 0x20b   :  { %4298 = vmatprep.subr.mxu1 %v5837_v0 }
 0x20c   :  { %4299 = vmatpush3.msra.mxu1 %v6282_v11 }
 0x20d   :  { %4300 = vmatprep.subr.mxu1 %v5837_v0 }
 0x20e   :  { %4301 = vmatpush3.msra.mxu1 %v6286_v13 }
 0x20f   :  { %4302 = vmatprep.subr.mxu1 %v5837_v0 }
 0x210   :  { %4303 = vmatpush3.msra.mxu1 %v6290_v15 }
 0x211   :  { %4304 = vmatprep.subr.mxu1 %v5837_v0 }
 0x212   :  { %v598_v35 = vpop.f32.mrf.mxu0  ;;  %4305 = vmatpush3.msra.mxu1 %v6294_v17 }
 0x213   :  { %v599_v60 = vadd.f32 %v598_v35, %v528_v34  ;;  %4306 = vmatprep.subr.mxu1 %v5837_v0  ;;  %v6418_v34 = vld [vmem:[#allocation7 + $0x78] sm:$0xff]  ;;  %v6424_v35 = vld [vmem:[#allocation7 + $0x70] sm:$0xff] }
 0x214   :  { %v4219_v61 = vpop.f32.mrf.mxu0  ;;  %4307 = vmatpush3.msra.mxu1 %v6298_v19 }
 0x215   :  { %v602_v62 = vadd.f32 %v6399_v57, %v599_v60  ;;  %4308 = vmatprep.subr.mxu1 %v5837_v0  ;;  %v6433_v61 = vld [vmem:[#allocation8 + $0x70] sm:$0xff] }
 0x216   :  { %4309 = vmatpush3.msra.mxu1 %v6302_v21  ;;  %8154 = vst [vmem:[#allocation19_spill] sm:$0xff] %v6433_v61 }
 0x217   :  { %5528 = vtanh.f32 %v602_v62  ;;  %4310 = vmatprep.subr.mxu1 %v5837_v0  ;;  %v6441_v62 = vld [vmem:[#allocation8 + $0x68] sm:$0xff] }
 0x218   :  { %4311 = vmatpush3.msra.mxu1 %v6306_v23  ;;  %8155 = vst [vmem:[#allocation20_spill] sm:$0xff] %v6441_v62 }
 0x219   :  { %4312 = vmatprep.subr.mxu1 %v5837_v0 }
 0x21a   :  { %4313 = vmatpush3.msra.mxu1 %v6310_v25 }
 0x21b   :  { %4314 = vmatprep.subr.mxu1 %v5837_v0 }
 0x21c   :  { %4315 = vmatpush3.msra.mxu1 %v6314_v27 }
 0x21d   :  { %4316 = vmatprep.subr.mxu1 %v5837_v0 }
 0x21e   :  { %4317 = vmatpush3.msra.mxu1 %v6318_v29 }
 0x21f   :  { %4318 = vmatprep.subr.mxu1 %v5837_v0 }
 0x220   :  { %4319 = vmatpush3.msra.mxu1 %v6322_v30 }
 0x221   :  { %4320 = vmatprep.subr.mxu1 %v5837_v0 }
 0x222   :  { %4321 = vmatpush3.msra.mxu1 %v6326_v32 }
 0x223   :  { %4323 = vmatmul.mubr.f32.vlgmr.msra.gmra.mxu1 %v5527_v2  ;;  %4360 = vmatprep.subr.mxu1 %v5837_v0  ;;  %v6435_v2 = vld [vmem:[#allocation7 + $0x68] sm:$0xff] }
 0x224   :  { %v6426_v60 = vpop.eup %5528  ;;  %4361 = vmatpush3.msra.mxu1 %v6418_v34  ;;  %4392 = vmatprep.mubr.msk.f32.mxu1 %vm5838_vm0, %v5837_v0 }
 0x225   :  { %4288 = vmatmul.mubr.f32.vlgmr.msra.gmra.mxu0 %v6426_v60  ;;  %4362 = vmatprep.subr.mxu1 %v5837_v0 }
 0x226   :  { %4326 = vmatpush3.msra.mxu0 %v6422_v63  ;;  %4363 = vmatpush3.msra.mxu1 %v6424_v35 }
 0x227   :  { %4327 = vmatprep.subr.mxu0 %v5837_v0  ;;  %4364 = vmatprep.subr.mxu1 %v5837_v0 }
 0x228   :  { %4328 = vmatpush3.msra.mxu0 %v6433_v61  ;;  %4365 = vmatpush3.msra.mxu1 %v6435_v2  ;;  %v6465_v61 = vld [vmem:[#allocation8 + $0x50] sm:$0xff] }
 0x229   :  { %4329 = vmatprep.subr.mxu0 %v5837_v0  ;;  %4366 = vmatprep.subr.mxu1 %v5837_v0  ;;  %8161 = vst [vmem:[#allocation26_spill] sm:$0xff] %v6465_v61 }
 0x22a   :  { %4330 = vmatpush3.msra.mxu0 %v6441_v62  ;;  %4367 = vmatpush3.msra.mxu1 %v6443_v41  ;;  %v6467_v62 = vld [vmem:[#allocation7 + $0x48] sm:$0xff] }
 0x22b   :  { %4331 = vmatprep.subr.mxu0 %v5837_v0  ;;  %4368 = vmatprep.subr.mxu1 %v5837_v0  ;;  %8162 = vst [vmem:[#allocation27_spill] sm:$0xff] %v6467_v62  ;;  %v6473_v41 = vld [vmem:[#allocation8 + $0x48] sm:$0xff] }
 0x22c   :  { %4332 = vmatpush3.msra.mxu0 %v6449_v58  ;;  %4369 = vmatpush3.msra.mxu1 %v6451_v38  ;;  %8163 = vst [vmem:[#allocation28_spill] sm:$0xff] %v6473_v41  ;;  %v6475_v58 = vld [vmem:[#allocation7 + $0x40] sm:$0xff] }
 0x22d   :  { %4333 = vmatprep.subr.mxu0 %v5837_v0  ;;  %4370 = vmatprep.subr.mxu1 %v5837_v0  ;;  %8164 = vst [vmem:[#allocation29_spill] sm:$0xff] %v6475_v58  ;;  %v6481_v38 = vld [vmem:[#allocation8 + $0x40] sm:$0xff] }
 0x22e   :  { %4334 = vmatpush3.msra.mxu0 %v6457_v40  ;;  %4371 = vmatpush3.msra.mxu1 %v6459_v36  ;;  %8165 = vst [vmem:[#allocation30_spill] sm:$0xff] %v6481_v38  ;;  %v6483_v40 = vld [vmem:[#allocation7 + $0x38] sm:$0xff] }
 0x22f   :  { %4335 = vmatprep.subr.mxu0 %v5837_v0  ;;  %4372 = vmatprep.subr.mxu1 %v5837_v0  ;;  %8166 = vst [vmem:[#allocation31_spill] sm:$0xff] %v6483_v40  ;;  %v6489_v36 = vld [vmem:[#allocation8 + $0x38] sm:$0xff] }
 0x230   :  { %4336 = vmatpush3.msra.mxu0 %v6465_v61  ;;  %4373 = vmatpush3.msra.mxu1 %v6467_v62  ;;  %8167 = vst [vmem:[#allocation32_spill] sm:$0xff] %v6489_v36  ;;  %v6491_v61 = vld [vmem:[#allocation7 + $0x30] sm:$0xff] }
 0x231   :  { %4337 = vmatprep.subr.mxu0 %v5837_v0  ;;  %4374 = vmatprep.subr.mxu1 %v5837_v0  ;;  %8168 = vst [vmem:[#allocation33_spill] sm:$0xff] %v6491_v61  ;;  %v6497_v62 = vld [vmem:[#allocation8 + $0x30] sm:$0xff] }
 0x232   :  { %4338 = vmatpush3.msra.mxu0 %v6473_v41  ;;  %4375 = vmatpush3.msra.mxu1 %v6475_v58  ;;  %8169 = vst [vmem:[#allocation34_spill] sm:$0xff] %v6497_v62  ;;  %v6499_v41 = vld [vmem:[#allocation7 + $0x28] sm:$0xff] }
 0x233   :  { %4339 = vmatprep.subr.mxu0 %v5837_v0  ;;  %4376 = vmatprep.subr.mxu1 %v5837_v0  ;;  %8170 = vst [vmem:[#allocation35_spill] sm:$0xff] %v6499_v41  ;;  %v6505_v58 = vld [vmem:[#allocation8 + $0x28] sm:$0xff] }
 0x234   :  { %4340 = vmatpush3.msra.mxu0 %v6481_v38  ;;  %4377 = vmatpush3.msra.mxu1 %v6483_v40  ;;  %8171 = vst [vmem:[#allocation36_spill] sm:$0xff] %v6505_v58  ;;  %v6507_v38 = vld [vmem:[#allocation7 + $0x20] sm:$0xff] }
 0x235   :  { %4341 = vmatprep.subr.mxu0 %v5837_v0  ;;  %4378 = vmatprep.subr.mxu1 %v5837_v0  ;;  %8172 = vst [vmem:[#allocation37_spill] sm:$0xff] %v6507_v38  ;;  %v6513_v40 = vld [vmem:[#allocation8 + $0x20] sm:$0xff] }
 0x236   :  { %4342 = vmatpush3.msra.mxu0 %v6489_v36  ;;  %4379 = vmatpush3.msra.mxu1 %v6491_v61  ;;  %8173 = vst [vmem:[#allocation38_spill] sm:$0xff] %v6513_v40  ;;  %v6515_v36 = vld [vmem:[#allocation7 + $0x18] sm:$0xff] }
 0x237   :  { %4343 = vmatprep.subr.mxu0 %v5837_v0  ;;  %4380 = vmatprep.subr.mxu1 %v5837_v0  ;;  %8174 = vst [vmem:[#allocation39_spill] sm:$0xff] %v6515_v36  ;;  %v6521_v61 = vld [vmem:[#allocation8 + $0x18] sm:$0xff] }
 0x238   :  { %4344 = vmatpush3.msra.mxu0 %v6497_v62  ;;  %4381 = vmatpush3.msra.mxu1 %v6499_v41  ;;  %v6523_v62 = vld [vmem:[#allocation7 + $0x10] sm:$0xff] }
 0x239   :  { %4345 = vmatprep.subr.mxu0 %v5837_v0  ;;  %4382 = vmatprep.subr.mxu1 %v5837_v0  ;;  %v6529_v41 = vld [vmem:[#allocation8 + $0x10] sm:$0xff] }
 0x23a   :  { %4346 = vmatpush3.msra.mxu0 %v6505_v58  ;;  %4383 = vmatpush3.msra.mxu1 %v6507_v38  ;;  %v6531_v58 = vld [vmem:[#allocation7 + $0x8] sm:$0xff] }
 0x23b   :  { %4347 = vmatprep.subr.mxu0 %v5837_v0  ;;  %4384 = vmatprep.subr.mxu1 %v5837_v0  ;;  %v6537_v38 = vld [vmem:[#allocation8 + $0x8] sm:$0xff] }
 0x23c   :  { %4348 = vmatpush3.msra.mxu0 %v6513_v40  ;;  %4385 = vmatpush3.msra.mxu1 %v6515_v36  ;;  %v6539_v40 = vld [vmem:[#allocation7] sm:$0xff] }
 0x23d   :  { %4349 = vmatprep.subr.mxu0 %v5837_v0  ;;  %4386 = vmatprep.subr.mxu1 %v5837_v0  ;;  %v6545_v36 = vld [vmem:[#allocation8] sm:$0xff] }
 0x23e   :  { %4350 = vmatpush3.msra.mxu0 %v6521_v61  ;;  %4387 = vmatpush3.msra.mxu1 %v6523_v62 }
 0x23f   :  { %4351 = vmatprep.subr.mxu0 %v5837_v0  ;;  %4388 = vmatprep.subr.mxu1 %v5837_v0 }
 0x240   :  { %4352 = vmatpush3.msra.mxu0 %v6529_v41  ;;  %4389 = vmatpush3.msra.mxu1 %v6531_v58 }
 0x241   :  { %4353 = vmatprep.subr.mxu0 %v5837_v0  ;;  %4390 = vmatprep.subr.mxu1 %v5837_v0 }
 0x242   :  { %4354 = vmatpush3.msra.mxu0 %v6537_v38  ;;  %4391 = vmatpush3.msra.mxu1 %v6539_v40 }
 0x243   :  { %4355 = vmatprep.subr.mxu0 %v5837_v0  ;;  %4357 = vmatprep.mubr.msk.f32.mxu0 %vm5838_vm0, %v5837_v0 }
 0x244   :  { %4356 = vmatpush3.msra.mxu0 %v6545_v36  ;;  %4393 = vmatmul.mubr.f32.vlgmr.msra.gmra.mxu1 %v6426_v60  ;;  %v8189_v60 = vld [vmem:[#allocation32_spill] sm:$0xff] }
 0x245   :  { %4358 = vmatmul.mubr.f32.vlgmr.msra.gmra.mxu0 %v5837_v0  ;;  %4395 = vmatprep.subr.mxu0 %v5837_v0 }
 0x246   :  { %4396 = vmatpush3.msra.mxu0 %v5946_v3  ;;  %4427 = vmatprep.mubr.msk.f32.mxu0 %vm5838_vm0, %v5837_v0  ;;  %v217_v3 = vadd.f32 %v6263_v59, %v6368_v37 }
 0x247   :  { %4397 = vmatprep.subr.mxu0 %v5837_v0  ;;  %4430 = vmatprep.subr.mxu1 %v5837_v0 }
 0x248   :  { %4398 = vmatpush3.msra.mxu0 %v5952_v4  ;;  %4431 = vmatpush3.msra.mxu1 %v6151_v39  ;;  %v8179_v39 = vld [vmem:[#allocation22_spill] sm:$0xff] }
 0x249   :  { %4399 = vmatprep.subr.mxu0 %v5837_v0  ;;  %4432 = vmatprep.subr.mxu1 %v5837_v0 }
 0x24a   :  { %4400 = vmatpush3.msra.mxu0 %v5961_v6  ;;  %4433 = vmatpush3.msra.mxu1 %v6163_v42  ;;  %v8180_v42 = vld [vmem:[#allocation25_spill] sm:$0xff] }
 0x24b   :  { %4401 = vmatprep.subr.mxu0 %v5837_v0  ;;  %4434 = vmatprep.subr.mxu1 %v5837_v0 }
 0x24c   :  { %4402 = vmatpush3.msra.mxu0 %v5971_v8  ;;  %4435 = vmatpush3.msra.mxu1 %v6167_v43  ;;  %v8181_v43 = vld [vmem:[#allocation24_spill] sm:$0xff] }
 0x24d   :  { %4403 = vmatprep.subr.mxu0 %v5837_v0  ;;  %4436 = vmatprep.subr.mxu1 %v5837_v0 }
 0x24e   :  { %4404 = vmatpush3.msra.mxu0 %v5981_v10  ;;  %4437 = vmatpush3.msra.mxu1 %v6171_v44  ;;  %v8182_v44 = vld [vmem:[#allocation27_spill] sm:$0xff] }
 0x24f   :  { %4405 = vmatprep.subr.mxu0 %v5837_v0  ;;  %4438 = vmatprep.subr.mxu1 %v5837_v0 }
 0x250   :  { %4406 = vmatpush3.msra.mxu0 %v5991_v12  ;;  %4439 = vmatpush3.msra.mxu1 %v6175_v45  ;;  %v8183_v45 = vld [vmem:[#allocation26_spill] sm:$0xff] }
 0x251   :  { %4407 = vmatprep.subr.mxu0 %v5837_v0  ;;  %4440 = vmatprep.subr.mxu1 %v5837_v0 }
 0x252   :  { %4408 = vmatpush3.msra.mxu0 %v6001_v14  ;;  %4441 = vmatpush3.msra.mxu1 %v6179_v46  ;;  %v8184_v46 = vld [vmem:[#allocation29_spill] sm:$0xff] }
 0x253   :  { %4409 = vmatprep.subr.mxu0 %v5837_v0  ;;  %4442 = vmatprep.subr.mxu1 %v5837_v0 }
 0x254   :  { %4410 = vmatpush3.msra.mxu0 %v6011_v16  ;;  %4443 = vmatpush3.msra.mxu1 %v6183_v47 }
 0x255   :  { %4411 = vmatprep.subr.mxu0 %v5837_v0  ;;  %4444 = vmatprep.subr.mxu1 %v5837_v0 }
 0x256   :  { %4412 = vmatpush3.msra.mxu0 %v6021_v18  ;;  %4445 = vmatpush3.msra.mxu1 %v6187_v48  ;;  %v6698_v48 = vld [vmem:[%s7999_s9] ss:$0 sm:$0xff] }
 0x257   :  { %4413 = vmatprep.subr.mxu0 %v5837_v0  ;;  %4446 = vmatprep.subr.mxu1 %v5837_v0 }
 0x258   :  { %4414 = vmatpush3.msra.mxu0 %v6031_v20  ;;  %4447 = vmatpush3.msra.mxu1 %v6191_v49 }
 0x259   :  { %4415 = vmatprep.subr.mxu0 %v5837_v0  ;;  %4448 = vmatprep.subr.mxu1 %v5837_v0 }
 0x25a   :  { %4416 = vmatpush3.msra.mxu0 %v6041_v22  ;;  %4449 = vmatpush3.msra.mxu1 %v6195_v50  ;;  %v8185_v50 = vld [vmem:[#allocation28_spill] sm:$0xff] }
 0x25b   :  { %4417 = vmatprep.subr.mxu0 %v5837_v0  ;;  %4450 = vmatprep.subr.mxu1 %v5837_v0 }
 0x25c   :  { %4418 = vmatpush3.msra.mxu0 %v6051_v24  ;;  %4451 = vmatpush3.msra.mxu1 %v6199_v51  ;;  %v8186_v51 = vld [vmem:[#allocation31_spill] sm:$0xff] }
 0x25d   :  { %4419 = vmatprep.subr.mxu0 %v5837_v0  ;;  %4452 = vmatprep.subr.mxu1 %v5837_v0 }
 0x25e   :  { %4420 = vmatpush3.msra.mxu0 %v6061_v26  ;;  %4453 = vmatpush3.msra.mxu1 %v6203_v52  ;;  %v8175_v26 = vld [vmem:[#allocation19_spill] sm:$0xff] }
 0x25f   :  { %4421 = vmatprep.subr.mxu0 %v5837_v0  ;;  %4454 = vmatprep.subr.mxu1 %v5837_v0 }
 0x260   :  { %4422 = vmatpush3.msra.mxu0 %v6071_v28  ;;  %4455 = vmatpush3.msra.mxu1 %v6207_v53  ;;  %v8176_v28 = vld [vmem:[#allocation21_spill] sm:$0xff] }
 0x261   :  { %4423 = vmatprep.subr.mxu0 %v5837_v0  ;;  %4456 = vmatprep.subr.mxu1 %v5837_v0 }
 0x262   :  { %4424 = vmatpush3.msra.mxu0 %v6085_v31  ;;  %4457 = vmatpush3.msra.mxu1 %v6211_v54  ;;  %v8177_v31 = vld [vmem:[#allocation20_spill] sm:$0xff] }
 0x263   :  { %4425 = vmatprep.subr.mxu0 %v5837_v0  ;;  %4458 = vmatprep.subr.mxu1 %v5837_v0 }
 0x264   :  { %4426 = vmatpush3.msra.mxu0 %v6094_v33  ;;  %4459 = vmatpush3.msra.mxu1 %v6215_v55  ;;  %v8178_v33 = vld [vmem:[#allocation23_spill] sm:$0xff]  ;;  %v8187_v55 = vld [vmem:[#allocation30_spill] sm:$0xff] }
 0x265   :  { %4465 = vmatprep.subr.mxu0 %v5837_v0  ;;  %4460 = vmatprep.subr.mxu1 %v5837_v0 }
 0x266   :  { %4461 = vmatpush3.msra.mxu1 %v6219_v56  ;;  %4462 = vmatprep.mubr.msk.f32.mxu1 %vm5838_vm0, %v5837_v0  ;;  %v8188_v56 = vld [vmem:[#allocation33_spill] sm:$0xff] }
 0x267   :  { %4500 = vmatprep.subr.mxu1 %v5837_v0 }
 0x2c3   :  { %v672_v4 = vpop.f32.mrf.mxu1 }
 0x2c4   :  { %v676_v6 = vadd.f32 %v672_v4, %v217_v3  ;;  %v8190_v3 = vld [vmem:[#allocation35_spill] sm:$0xff]  ;;  %v8191_v4 = vld [vmem:[#allocation34_spill] sm:$0xff] }
 0x2c5   :  { %v4254_v8 = vpop.f32.mrf.mxu1 }
 0x2c6   :  { %5530 = vtanh.f32 %v676_v6  ;;  %v8192_v6 = vld [vmem:[#allocation37_spill] sm:$0xff]  ;;  %v8193_v8 = vld [vmem:[#allocation36_spill] sm:$0xff] }
 0x2d3   :  { %v5531_v10 = vpop.eup %5530 }
 0x2d4   :  { %4428 = vmatmul.mubr.f32.vlgmr.msra.gmra.mxu0 %v5531_v10 }
 0x2d5   :  { %4466 = vmatpush3.msra.mxu0 %v6266_v1  ;;  %4497 = vmatprep.mubr.msk.f32.mxu0 %vm5838_vm0, %v5837_v0 }
 0x2d6   :  { %4467 = vmatprep.subr.mxu0 %v5837_v0 }
 0x2d7   :  { %4468 = vmatpush3.msra.mxu0 %v6268_v5 }
 0x2d8   :  { %4469 = vmatprep.subr.mxu0 %v5837_v0 }
 0x2d9   :  { %4470 = vmatpush3.msra.mxu0 %v6274_v7 }
 0x2da   :  { %4471 = vmatprep.subr.mxu0 %v5837_v0 }
 0x2db   :  { %4472 = vmatpush3.msra.mxu0 %v6278_v9 }
 0x2dc   :  { %4473 = vmatprep.subr.mxu0 %v5837_v0 }
 0x2dd   :  { %4474 = vmatpush3.msra.mxu0 %v6282_v11 }
 0x2de   :  { %4475 = vmatprep.subr.mxu0 %v5837_v0 }
 0x2df   :  { %4476 = vmatpush3.msra.mxu0 %v6286_v13 }
 0x2e0   :  { %4477 = vmatprep.subr.mxu0 %v5837_v0 }
 0x2e1   :  { %4478 = vmatpush3.msra.mxu0 %v6290_v15 }
 0x2e2   :  { %4479 = vmatprep.subr.mxu0 %v5837_v0 }
 0x2e3   :  { %v814_v12 = vpop.f32.mrf.mxu1  ;;  %4480 = vmatpush3.msra.mxu0 %v6294_v17 }
 0x2e4   :  { %4481 = vmatprep.subr.mxu0 %v5837_v0 }
 0x2e5   :  { %v744_v14 = vpop.f32.mrf.mxu0  ;;  %v4324_v16 = vpop.f32.mrf.mxu1  ;;  %4482 = vmatpush3.msra.mxu0 %v6298_v19 }
 0x2e6   :  { %v815_v18 = vadd.f32 %v814_v12, %v744_v14  ;;  %4483 = vmatprep.subr.mxu0 %v5837_v0  ;;  %v8195_v12 = vld [vmem:[#allocation38_spill] sm:$0xff]  ;;  %v6739_v16 = vld [vmem:[#allocation5 + $0x78] sm:$0xff] }
 0x2e7   :  { %v4289_v20 = vpop.f32.mrf.mxu0  ;;  %4484 = vmatpush3.msra.mxu0 %v6302_v21 }
 0x2e8   :  { %v818_v22 = vadd.f32 %v6399_v57, %v815_v18  ;;  %4485 = vmatprep.subr.mxu0 %v5837_v0  ;;  %v6746_v18 = vld [vmem:[%s7992_s2 + $0x78] sm:$0xff]  ;;  %v6756_v20 = vld [vmem:[%s7992_s2 + $0x70] sm:$0xff] }
 0x2e9   :  { %4486 = vmatpush3.msra.mxu0 %v6306_v23 }
 0x2ea   :  { %5532 = vtanh.f32 %v818_v22  ;;  %4487 = vmatprep.subr.mxu0 %v5837_v0  ;;  %v6759_v22 = vld [vmem:[#allocation5 + $0x70] sm:$0xff] }
 0x2eb   :  { %4488 = vmatpush3.msra.mxu0 %v6310_v25 }
 0x2ec   :  { %4489 = vmatprep.subr.mxu0 %v5837_v0 }
 0x2ed   :  { %4490 = vmatpush3.msra.mxu0 %v6314_v27 }
 0x2ee   :  { %4491 = vmatprep.subr.mxu0 %v5837_v0 }
 0x2ef   :  { %4492 = vmatpush3.msra.mxu0 %v6318_v29 }
 0x2f0   :  { %4493 = vmatprep.subr.mxu0 %v5837_v0 }
 0x2f1   :  { %4494 = vmatpush3.msra.mxu0 %v6322_v30 }
 0x2f2   :  { %4495 = vmatprep.subr.mxu0 %v5837_v0 }
 0x2f3   :  { %4496 = vmatpush3.msra.mxu0 %v6326_v32 }
 0x2f4   :  { %4498 = vmatmul.mubr.f32.vlgmr.msra.gmra.mxu0 %v5531_v10  ;;  %4535 = vmatprep.subr.mxu0 %v5837_v0  ;;  %v8194_v10 = vld [vmem:[#allocation39_spill] sm:$0xff] }
 0x2f5   :  { %4536 = vmatpush3.msra.mxu0 %v6418_v34  ;;  %4567 = vmatprep.mubr.msk.f32.mxu0 %vm5838_vm0, %v5837_v0 }
 0x2f6   :  { %4537 = vmatprep.subr.mxu0 %v5837_v0 }
 0x2f7   :  { %v6666_v24 = vpop.eup %5532  ;;  %4538 = vmatpush3.msra.mxu0 %v6424_v35 }
 0x2f8   :  { %4463 = vmatmul.mubr.f32.vlgmr.msra.gmra.mxu1 %v6666_v24  ;;  %4539 = vmatprep.subr.mxu0 %v5837_v0 }
 0x2f9   :  { %4501 = vmatpush3.msra.mxu1 %v6422_v63  ;;  %4540 = vmatpush3.msra.mxu0 %v6435_v2 }
 0x2fa   :  { %4502 = vmatprep.subr.mxu1 %v5837_v0  ;;  %4541 = vmatprep.subr.mxu0 %v5837_v0 }
 0x2fb   :  { %4503 = vmatpush3.msra.mxu1 %v8175_v26  ;;  %4542 = vmatpush3.msra.mxu0 %v8176_v28 }
 0x2fc   :  { %4504 = vmatprep.subr.mxu1 %v5837_v0  ;;  %4543 = vmatprep.subr.mxu0 %v5837_v0 }
 0x2fd   :  { %4505 = vmatpush3.msra.mxu1 %v8177_v31  ;;  %4544 = vmatpush3.msra.mxu0 %v8178_v33 }
 0x2fe   :  { %4506 = vmatprep.subr.mxu1 %v5837_v0  ;;  %4545 = vmatprep.subr.mxu0 %v5837_v0 }
 0x2ff   :  { %4507 = vmatpush3.msra.mxu1 %v8179_v39  ;;  %4546 = vmatpush3.msra.mxu0 %v8180_v42 }
 0x300   :  { %4508 = vmatprep.subr.mxu1 %v5837_v0  ;;  %4547 = vmatprep.subr.mxu0 %v5837_v0 }
 0x301   :  { %4509 = vmatpush3.msra.mxu1 %v8181_v43  ;;  %4548 = vmatpush3.msra.mxu0 %v8182_v44 }
 0x302   :  { %4510 = vmatprep.subr.mxu1 %v5837_v0  ;;  %4549 = vmatprep.subr.mxu0 %v5837_v0 }
 0x303   :  { %4511 = vmatpush3.msra.mxu1 %v8183_v45  ;;  %4550 = vmatpush3.msra.mxu0 %v8184_v46 }
 0x304   :  { %v988_v47 = vpop.f32.mrf.mxu1  ;;  %4512 = vmatprep.subr.mxu1 %v5837_v0  ;;  %4551 = vmatprep.subr.mxu0 %v5837_v0 }
 0x305   :  { %v918_v49 = vpop.f32.mrf.mxu0  ;;  %4513 = vmatpush3.msra.mxu1 %v8185_v50  ;;  %4552 = vmatpush3.msra.mxu0 %v8186_v51 }
 0x306   :  { %v989_v52 = vadd.f32 %v988_v47, %v918_v49  ;;  %v4394_v53 = vpop.f32.mrf.mxu1  ;;  %4514 = vmatprep.subr.mxu1 %v5837_v0  ;;  %4553 = vmatprep.subr.mxu0 %v5837_v0  ;;  %v6770_v47 = vld [vmem:[#allocation5 + $0x68] sm:$0xff]  ;;  %v6778_v49 = vld [vmem:[%s7992_s2 + $0x60] sm:$0xff] }
 0x307   :  { %v4359_v54 = vpop.f32.mrf.mxu0  ;;  %4515 = vmatpush3.msra.mxu1 %v8187_v55  ;;  %4554 = vmatpush3.msra.mxu0 %v8188_v56  ;;  %8197 = vst [vmem:[#allocation21_spill] sm:$0xff] %v6770_v47  ;;  %8198 = vst [vmem:[#allocation20_spill] sm:$0xff] %v6778_v49  ;;  %v6789_v53 = vld [vmem:[%s7992_s2 + $0x58] sm:$0xff] }
 0x308   :  { %v992_v37 = vadd.f32 %v6698_v48, %v989_v52  ;;  %4516 = vmatprep.subr.mxu1 %v5837_v0  ;;  %4555 = vmatprep.subr.mxu0 %v5837_v0  ;;  %v6781_v52 = vld [vmem:[#allocation5 + $0x60] sm:$0xff]  ;;  %8200 = vst [vmem:[#allocation22_spill] sm:$0xff] %v6789_v53  ;;  %v6792_v54 = vld [vmem:[#allocation5 + $0x58] sm:$0xff] }
 0x309   :  { %4517 = vmatpush3.msra.mxu1 %v8189_v60  ;;  %4556 = vmatpush3.msra.mxu0 %v8190_v3  ;;  %8199 = vst [vmem:[#allocation23_spill] sm:$0xff] %v6781_v52  ;;  %8201 = vst [vmem:[#allocation25_spill] sm:$0xff] %v6792_v54 }
 0x30a   :  { %5534 = vtanh.f32 %v992_v37  ;;  %4518 = vmatprep.subr.mxu1 %v5837_v0  ;;  %4557 = vmatprep.subr.mxu0 %v5837_v0  ;;  %v6800_v37 = vld [vmem:[%s7992_s2 + $0x50] sm:$0xff] }
 0x30b   :  { %4519 = vmatpush3.msra.mxu1 %v8191_v4  ;;  %4558 = vmatpush3.msra.mxu0 %v8192_v6  ;;  %8202 = vst [vmem:[#allocation24_spill] sm:$0xff] %v6800_v37 }
 0x30c   :  { %4520 = vmatprep.subr.mxu1 %v5837_v0  ;;  %4559 = vmatprep.subr.mxu0 %v5837_v0 }
 0x30d   :  { %4521 = vmatpush3.msra.mxu1 %v8193_v8  ;;  %4560 = vmatpush3.msra.mxu0 %v8194_v10 }
 0x30e   :  { %4522 = vmatprep.subr.mxu1 %v5837_v0  ;;  %4561 = vmatprep.subr.mxu0 %v5837_v0 }
 0x30f   :  { %4523 = vmatpush3.msra.mxu1 %v8195_v12  ;;  %4562 = vmatpush3.msra.mxu0 %v6523_v62 }
 0x310   :  { %4524 = vmatprep.subr.mxu1 %v5837_v0  ;;  %4563 = vmatprep.subr.mxu0 %v5837_v0 }
 0x311   :  { %4525 = vmatpush3.msra.mxu1 %v6521_v61  ;;  %4564 = vmatpush3.msra.mxu0 %v6531_v58 }
 0x312   :  { %4526 = vmatprep.subr.mxu1 %v5837_v0  ;;  %4565 = vmatprep.subr.mxu0 %v5837_v0 }
 0x313   :  { %4527 = vmatpush3.msra.mxu1 %v6529_v41  ;;  %4566 = vmatpush3.msra.mxu0 %v6539_v40 }
 0x314   :  { %4528 = vmatprep.subr.mxu1 %v5837_v0  ;;  %4568 = vmatmul.mubr.f32.vlgmr.msra.gmra.mxu0 %v6666_v24  ;;  %v6767_v24 = vld [vmem:[%s7992_s2 + $0x68] sm:$0xff] }
 0x315   :  { %4529 = vmatpush3.msra.mxu1 %v6537_v38  ;;  %4532 = vmatprep.mubr.msk.f32.mxu1 %vm5838_vm0, %v5837_v0  ;;  %8196 = vst [vmem:[#allocation19_spill] sm:$0xff] %v6767_v24 }
 0x316   :  { %4530 = vmatprep.subr.mxu1 %v5837_v0  ;;  %4605 = vmatprep.subr.mxu0 %v5837_v0 }
 0x317   :  { %v5535_v14 = vpop.eup %5534  ;;  %4531 = vmatpush3.msra.mxu1 %v6545_v36  ;;  %4606 = vmatpush3.msra.mxu0 %v6739_v16 }
 0x318   :  { %4533 = vmatmul.mubr.f32.vlgmr.msra.gmra.mxu1 %v5535_v14  ;;  %4570 = vmatprep.subr.mxu1 %v5837_v0  ;;  %v6803_v14 = vld [vmem:[#allocation5 + $0x50] sm:$0xff] }
 0x319   :  { %4571 = vmatpush3.msra.mxu1 %v6746_v18  ;;  %4602 = vmatprep.mubr.msk.f32.mxu1 %vm5838_vm0, %v5837_v0  ;;  %8203 = vst [vmem:[#allocation27_spill] sm:$0xff] %v6803_v14 }
 0x31a   :  { %4572 = vmatprep.subr.mxu1 %v5837_v0  ;;  %4607 = vmatprep.subr.mxu0 %v5837_v0 }
 0x31b   :  { %4573 = vmatpush3.msra.mxu1 %v6756_v20  ;;  %4608 = vmatpush3.msra.mxu0 %v6759_v22 }
 0x31c   :  { %4574 = vmatprep.subr.mxu1 %v5837_v0  ;;  %4609 = vmatprep.subr.mxu0 %v5837_v0 }
 0x31d   :  { %4575 = vmatpush3.msra.mxu1 %v6767_v24  ;;  %4610 = vmatpush3.msra.mxu0 %v6770_v47 }
 0x31e   :  { %4576 = vmatprep.subr.mxu1 %v5837_v0  ;;  %4611 = vmatprep.subr.mxu0 %v5837_v0 }
 0x31f   :  { %4577 = vmatpush3.msra.mxu1 %v6778_v49  ;;  %4612 = vmatpush3.msra.mxu0 %v6781_v52 }
 0x320   :  { %4578 = vmatprep.subr.mxu1 %v5837_v0  ;;  %4613 = vmatprep.subr.mxu0 %v5837_v0 }
 0x321   :  { %4579 = vmatpush3.msra.mxu1 %v6789_v53  ;;  %4614 = vmatpush3.msra.mxu0 %v6792_v54  ;;  %v6811_v53 = vld [vmem:[%s7992_s2 + $0x48] sm:$0xff] }
 0x322   :  { %4580 = vmatprep.subr.mxu1 %v5837_v0  ;;  %4615 = vmatprep.subr.mxu0 %v5837_v0  ;;  %8204 = vst [vmem:[#allocation26_spill] sm:$0xff] %v6811_v53  ;;  %v6814_v54 = vld [vmem:[#allocation5 + $0x48] sm:$0xff] }
 0x323   :  { %4581 = vmatpush3.msra.mxu1 %v6800_v37  ;;  %4616 = vmatpush3.msra.mxu0 %v6803_v14  ;;  %8205 = vst [vmem:[#allocation29_spill] sm:$0xff] %v6814_v54  ;;  %v6822_v37 = vld [vmem:[%s7992_s2 + $0x40] sm:$0xff] }
 0x324   :  { %4582 = vmatprep.subr.mxu1 %v5837_v0  ;;  %4617 = vmatprep.subr.mxu0 %v5837_v0  ;;  %8206 = vst [vmem:[#allocation28_spill] sm:$0xff] %v6822_v37  ;;  %v6825_v14 = vld [vmem:[#allocation5 + $0x40] sm:$0xff] }
 0x325   :  { %4583 = vmatpush3.msra.mxu1 %v6811_v53  ;;  %4618 = vmatpush3.msra.mxu0 %v6814_v54  ;;  %8207 = vst [vmem:[#allocation31_spill] sm:$0xff] %v6825_v14  ;;  %v6833_v53 = vld [vmem:[%s7992_s2 + $0x38] sm:$0xff] }
 0x326   :  { %4584 = vmatprep.subr.mxu1 %v5837_v0  ;;  %4619 = vmatprep.subr.mxu0 %v5837_v0  ;;  %8208 = vst [vmem:[#allocation30_spill] sm:$0xff] %v6833_v53  ;;  %v6836_v54 = vld [vmem:[#allocation5 + $0x38] sm:$0xff] }
 0x327   :  { %4585 = vmatpush3.msra.mxu1 %v6822_v37  ;;  %4620 = vmatpush3.msra.mxu0 %v6825_v14  ;;  %8209 = vst [vmem:[#allocation33_spill] sm:$0xff] %v6836_v54  ;;  %v6844_v37 = vld [vmem:[%s7992_s2 + $0x30] sm:$0xff] }
 0x328   :  { %4586 = vmatprep.subr.mxu1 %v5837_v0  ;;  %4621 = vmatprep.subr.mxu0 %v5837_v0  ;;  %8210 = vst [vmem:[#allocation32_spill] sm:$0xff] %v6844_v37  ;;  %v6847_v14 = vld [vmem:[#allocation5 + $0x30] sm:$0xff] }
 0x329   :  { %4587 = vmatpush3.msra.mxu1 %v6833_v53  ;;  %4622 = vmatpush3.msra.mxu0 %v6836_v54  ;;  %8211 = vst [vmem:[#allocation35_spill] sm:$0xff] %v6847_v14  ;;  %v6855_v53 = vld [vmem:[%s7992_s2 + $0x28] sm:$0xff] }
 0x32a   :  { %4588 = vmatprep.subr.mxu1 %v5837_v0  ;;  %4623 = vmatprep.subr.mxu0 %v5837_v0  ;;  %8212 = vst [vmem:[#allocation34_spill] sm:$0xff] %v6855_v53  ;;  %v6858_v54 = vld [vmem:[#allocation5 + $0x28] sm:$0xff] }
 0x32b   :  { %4589 = vmatpush3.msra.mxu1 %v6844_v37  ;;  %4624 = vmatpush3.msra.mxu0 %v6847_v14  ;;  %8213 = vst [vmem:[#allocation37_spill] sm:$0xff] %v6858_v54  ;;  %v6866_v37 = vld [vmem:[%s7992_s2 + $0x20] sm:$0xff] }
 0x32c   :  { %4590 = vmatprep.subr.mxu1 %v5837_v0  ;;  %4625 = vmatprep.subr.mxu0 %v5837_v0  ;;  %8214 = vst [vmem:[#allocation36_spill] sm:$0xff] %v6866_v37  ;;  %v6869_v14 = vld [vmem:[#allocation5 + $0x20] sm:$0xff] }
 0x32d   :  { %4591 = vmatpush3.msra.mxu1 %v6855_v53  ;;  %4626 = vmatpush3.msra.mxu0 %v6858_v54  ;;  %8215 = vst [vmem:[#allocation39_spill] sm:$0xff] %v6869_v14  ;;  %v6877_v53 = vld [vmem:[%s7992_s2 + $0x18] sm:$0xff] }
 0x32e   :  { %4592 = vmatprep.subr.mxu1 %v5837_v0  ;;  %4627 = vmatprep.subr.mxu0 %v5837_v0  ;;  %8216 = vst [vmem:[#allocation38_spill] sm:$0xff] %v6877_v53  ;;  %v6880_v54 = vld [vmem:[#allocation5 + $0x18] sm:$0xff] }
 0x32f   :  { %4593 = vmatpush3.msra.mxu1 %v6866_v37  ;;  %4628 = vmatpush3.msra.mxu0 %v6869_v14  ;;  %8217 = vst [vmem:[#allocation40_spill] sm:$0xff] %v6880_v54  ;;  %v6888_v37 = vld [vmem:[%s7992_s2 + $0x10] sm:$0xff] }
 0x330   :  { %4594 = vmatprep.subr.mxu1 %v5837_v0  ;;  %4629 = vmatprep.subr.mxu0 %v5837_v0  ;;  %8218 = vst [vmem:[#allocation41_spill] sm:$0xff] %v6888_v37  ;;  %v6891_v14 = vld [vmem:[#allocation5 + $0x10] sm:$0xff] }
 0x331   :  { %4595 = vmatpush3.msra.mxu1 %v6877_v53  ;;  %4630 = vmatpush3.msra.mxu0 %v6880_v54  ;;  %8219 = vst [vmem:[#allocation42_spill] sm:$0xff] %v6891_v14  ;;  %v6899_v53 = vld [vmem:[%s7992_s2 + $0x8] sm:$0xff] }
 0x332   :  { %4596 = vmatprep.subr.mxu1 %v5837_v0  ;;  %4631 = vmatprep.subr.mxu0 %v5837_v0  ;;  %8220 = vst [vmem:[#allocation43_spill] sm:$0xff] %v6899_v53  ;;  %v6902_v54 = vld [vmem:[#allocation5 + $0x8] sm:$0xff] }
 0x333   :  { %4597 = vmatpush3.msra.mxu1 %v6888_v37  ;;  %4632 = vmatpush3.msra.mxu0 %v6891_v14  ;;  %8221 = vst [vmem:[#allocation44_spill] sm:$0xff] %v6902_v54  ;;  %v6910_v37 = vld [vmem:[%s7992_s2] sm:$0xff] }
 0x334   :  { %4598 = vmatprep.subr.mxu1 %v5837_v0  ;;  %4633 = vmatprep.subr.mxu0 %v5837_v0  ;;  %v6913_v14 = vld [vmem:[#allocation5] sm:$0xff] }
 0x335   :  { %4599 = vmatpush3.msra.mxu1 %v6899_v53  ;;  %4634 = vmatpush3.msra.mxu0 %v6902_v54  ;;  %v8222_v53 = vld [vmem:[#allocation14_spill] sm:$0xff] }
 0x336   :  { %4600 = vmatprep.subr.mxu1 %v5837_v0  ;;  %4635 = vmatprep.subr.mxu0 %v5837_v0  ;;  %v222_v54 = vadd.f32 %v8222_v53, %v6263_v59 }
 0x337   :  { %4601 = vmatpush3.msra.mxu1 %v6910_v37  ;;  %4636 = vmatpush3.msra.mxu0 %v6913_v14 }
 0x338   :  { %4640 = vmatprep.subr.mxu1 %v5837_v0  ;;  %4637 = vmatprep.mubr.msk.f32.mxu0 %vm5838_vm0, %v5837_v0 }
 0x339   :  { %4675 = vmatprep.subr.mxu0 %v5837_v0 }
 0x394   :  { %v1062_v49 = vpop.f32.mrf.mxu0 }
 0x395   :  { %v1066_v52 = vadd.f32 %v1062_v49, %v222_v54  ;;  %v7123_v49 = vld [vmem:[#allocation3 + $0x50] sm:$0xff]  ;;  %v7131_v54 = vld [vmem:[#allocation3 + $0x40] sm:$0xff] }
 0x396   :  { %v4429_v24 = vpop.f32.mrf.mxu0 }
 0x397   :  { %5536 = vtanh.f32 %v1066_v52  ;;  %v7115_v24 = vld [vmem:[#allocation3 + $0x60] sm:$0xff]  ;;  %v7127_v52 = vld [vmem:[#allocation3 + $0x48] sm:$0xff] }
 0x3a4   :  { %v5537_v47 = vpop.eup %5536 }
 0x3a5   :  { %4603 = vmatmul.mubr.f32.vlgmr.msra.gmra.mxu1 %v5537_v47 }
 0x3a6   :  { %4641 = vmatpush3.msra.mxu1 %v6266_v1  ;;  %4672 = vmatprep.mubr.msk.f32.mxu1 %vm5838_vm0, %v5837_v0 }
 0x3a7   :  { %4642 = vmatprep.subr.mxu1 %v5837_v0 }
 0x3a8   :  { %4643 = vmatpush3.msra.mxu1 %v6268_v5 }
 0x3a9   :  { %4644 = vmatprep.subr.mxu1 %v5837_v0 }
 0x3aa   :  { %4645 = vmatpush3.msra.mxu1 %v6274_v7 }
 0x3ab   :  { %4646 = vmatprep.subr.mxu1 %v5837_v0 }
 0x3ac   :  { %4647 = vmatpush3.msra.mxu1 %v6278_v9 }
 0x3ad   :  { %4648 = vmatprep.subr.mxu1 %v5837_v0 }
 0x3ae   :  { %4649 = vmatpush3.msra.mxu1 %v6282_v11 }
 0x3af   :  { %4650 = vmatprep.subr.mxu1 %v5837_v0 }
 0x3b0   :  { %4651 = vmatpush3.msra.mxu1 %v6286_v13 }
 0x3b1   :  { %4652 = vmatprep.subr.mxu1 %v5837_v0 }
 0x3b2   :  { %4653 = vmatpush3.msra.mxu1 %v6290_v15 }
 0x3b3   :  { %4654 = vmatprep.subr.mxu1 %v5837_v0 }
 0x3b4   :  { %v1204_v59 = vpop.f32.mrf.mxu0  ;;  %4655 = vmatpush3.msra.mxu1 %v6294_v17 }
 0x3b5   :  { %4656 = vmatprep.subr.mxu1 %v5837_v0 }
 0x3b6   :  { %v4499_v1 = vpop.f32.mrf.mxu0  ;;  %4657 = vmatpush3.msra.mxu1 %v6298_v19 }
 0x3b7   :  { %4658 = vmatprep.subr.mxu1 %v5837_v0  ;;  %v7135_v1 = vld [vmem:[#allocation3 + $0x38] sm:$0xff] }
 0x3b8   :  { %v1134_v5 = vpop.f32.mrf.mxu1  ;;  %4659 = vmatpush3.msra.mxu1 %v6302_v21 }
 0x3b9   :  { %v1205_v7 = vadd.f32 %v1204_v59, %v1134_v5  ;;  %4660 = vmatprep.subr.mxu1 %v5837_v0  ;;  %v7139_v5 = vld [vmem:[#allocation3 + $0x30] sm:$0xff] }
 0x3ba   :  { %v4464_v9 = vpop.f32.mrf.mxu1  ;;  %4661 = vmatpush3.msra.mxu1 %v6306_v23 }
 0x3bb   :  { %v1208_v11 = vadd.f32 %v6399_v57, %v1205_v7  ;;  %4662 = vmatprep.subr.mxu1 %v5837_v0  ;;  %v8231_v57 = vld [vmem:[#allocation29_spill] sm:$0xff]  ;;  %v7143_v9 = vld [vmem:[#allocation3 + $0x28] sm:$0xff] }
 0x3bc   :  { %4663 = vmatpush3.msra.mxu1 %v6310_v25 }
 0x3bd   :  { %5538 = vtanh.f32 %v1208_v11  ;;  %4664 = vmatprep.subr.mxu1 %v5837_v0 }
 0x3be   :  { %4665 = vmatpush3.msra.mxu1 %v6314_v27 }
 0x3bf   :  { %4666 = vmatprep.subr.mxu1 %v5837_v0 }
 0x3c0   :  { %4667 = vmatpush3.msra.mxu1 %v6318_v29  ;;  %v8223_v29 = vld [vmem:[#allocation21_spill] sm:$0xff] }
 0x3c1   :  { %4668 = vmatprep.subr.mxu1 %v5837_v0 }
 0x3c2   :  { %4669 = vmatpush3.msra.mxu1 %v6322_v30  ;;  %v8224_v30 = vld [vmem:[#allocation19_spill] sm:$0xff] }
 0x3c3   :  { %4670 = vmatprep.subr.mxu1 %v5837_v0 }
 0x3c4   :  { %4671 = vmatpush3.msra.mxu1 %v6326_v32  ;;  %v8225_v32 = vld [vmem:[#allocation23_spill] sm:$0xff] }
 0x3c5   :  { %4673 = vmatmul.mubr.f32.vlgmr.msra.gmra.mxu1 %v5537_v47  ;;  %4710 = vmatprep.subr.mxu1 %v5837_v0  ;;  %v7119_v47 = vld [vmem:[#allocation3 + $0x58] sm:$0xff] }
 0x3c6   :  { %4711 = vmatpush3.msra.mxu1 %v6418_v34  ;;  %4742 = vmatprep.mubr.msk.f32.mxu1 %vm5838_vm0, %v5837_v0  ;;  %v8232_v34 = vld [vmem:[#allocation26_spill] sm:$0xff] }
 0x3c7   :  { %4712 = vmatprep.subr.mxu1 %v5837_v0 }
 0x3c8   :  { %4713 = vmatpush3.msra.mxu1 %v6424_v35  ;;  %v8234_v35 = vld [vmem:[#allocation28_spill] sm:$0xff] }
 0x3c9   :  { %4714 = vmatprep.subr.mxu1 %v5837_v0 }
 0x3ca   :  { %v5539_v13 = vpop.eup %5538  ;;  %4715 = vmatpush3.msra.mxu1 %v6435_v2  ;;  %v8236_v2 = vld [vmem:[#allocation30_spill] sm:$0xff] }
 0x3cb   :  { %4638 = vmatmul.mubr.f32.vlgmr.msra.gmra.mxu0 %v5539_v13  ;;  %4716 = vmatprep.subr.mxu1 %v5837_v0 }
 0x3cc   :  { %4676 = vmatpush3.msra.mxu0 %v6422_v63  ;;  %4717 = vmatpush3.msra.mxu1 %v8176_v28  ;;  %v8233_v63 = vld [vmem:[#allocation31_spill] sm:$0xff]  ;;  %v8239_v28 = vld [vmem:[#allocation37_spill] sm:$0xff] }
 0x3cd   :  { %4677 = vmatprep.subr.mxu0 %v5837_v0  ;;  %4718 = vmatprep.subr.mxu1 %v5837_v0 }
 0x3ce   :  { %4678 = vmatpush3.msra.mxu0 %v8175_v26  ;;  %4719 = vmatpush3.msra.mxu1 %v8178_v33  ;;  %v8238_v26 = vld [vmem:[#allocation32_spill] sm:$0xff]  ;;  %v8241_v33 = vld [vmem:[#allocation39_spill] sm:$0xff] }
 0x3cf   :  { %4679 = vmatprep.subr.mxu0 %v5837_v0  ;;  %4720 = vmatprep.subr.mxu1 %v5837_v0 }
 0x3d0   :  { %4680 = vmatpush3.msra.mxu0 %v8177_v31  ;;  %4721 = vmatpush3.msra.mxu1 %v8180_v42  ;;  %v8240_v31 = vld [vmem:[#allocation34_spill] sm:$0xff]  ;;  %v8243_v42 = vld [vmem:[#allocation40_spill] sm:$0xff] }
 0x3d1   :  { %4681 = vmatprep.subr.mxu0 %v5837_v0  ;;  %4722 = vmatprep.subr.mxu1 %v5837_v0 }
 0x3d2   :  { %4682 = vmatpush3.msra.mxu0 %v8179_v39  ;;  %4723 = vmatpush3.msra.mxu1 %v8182_v44  ;;  %v8242_v39 = vld [vmem:[#allocation36_spill] sm:$0xff]  ;;  %v8245_v44 = vld [vmem:[#allocation42_spill] sm:$0xff] }
 0x3d3   :  { %4683 = vmatprep.subr.mxu0 %v5837_v0  ;;  %4724 = vmatprep.subr.mxu1 %v5837_v0 }
 0x3d4   :  { %4684 = vmatpush3.msra.mxu0 %v8181_v43  ;;  %v1346_v15 = vpop.f32.mrf.mxu0  ;;  %4725 = vmatpush3.msra.mxu1 %v8184_v46  ;;  %v8244_v43 = vld [vmem:[#allocation38_spill] sm:$0xff]  ;;  %v8247_v46 = vld [vmem:[#allocation44_spill] sm:$0xff] }
 0x3d5   :  { %4685 = vmatprep.subr.mxu0 %v5837_v0  ;;  %4726 = vmatprep.subr.mxu1 %v5837_v0 }
 0x3d6   :  { %4686 = vmatpush3.msra.mxu0 %v8183_v45  ;;  %v4569_v17 = vpop.f32.mrf.mxu0  ;;  %4727 = vmatpush3.msra.mxu1 %v8186_v51  ;;  %v8246_v45 = vld [vmem:[#allocation41_spill] sm:$0xff]  ;;  %v7097_v51 = vld [vmem:[%s7993_s3] ss:$0 sm:$0xff] }
 0x3d7   :  { %4687 = vmatprep.subr.mxu0 %v5837_v0  ;;  %4728 = vmatprep.subr.mxu1 %v5837_v0  ;;  %v7153_v17 = vld [vmem:[%s7996_s6] ss:$0 sm:$0xff] }
 0x3d8   :  { %v1276_v19 = vpop.f32.mrf.mxu1  ;;  %4688 = vmatpush3.msra.mxu0 %v8185_v50  ;;  %4729 = vmatpush3.msra.mxu1 %v8188_v56  ;;  %v8248_v50 = vld [vmem:[#allocation43_spill] sm:$0xff] }
 0x3d9   :  { %v1347_v21 = vadd.f32 %v1346_v15, %v1276_v19  ;;  %4689 = vmatprep.subr.mxu0 %v5837_v0  ;;  %4730 = vmatprep.subr.mxu1 %v5837_v0  ;;  %v7147_v15 = vld [vmem:[#allocation3 + $0x20] sm:$0xff] }
 0x3da   :  { %v4534_v23 = vpop.f32.mrf.mxu1  ;;  %4690 = vmatpush3.msra.mxu0 %v8187_v55  ;;  %4731 = vmatpush3.msra.mxu1 %v8190_v3  ;;  %v8249_v55 = vld [vmem:[#allocation16_spill] sm:$0xff] }
 0x3db   :  { %v1350_v25 = vadd.f32 %v6698_v48, %v1347_v21  ;;  %4691 = vmatprep.subr.mxu0 %v5837_v0  ;;  %4732 = vmatprep.subr.mxu1 %v5837_v0  ;;  %v227_v56 = vadd.f32 %v7097_v51, %v8249_v55  ;;  %v7157_v21 = vld [vmem:[#allocation3 + $0x18] sm:$0xff]  ;;  %v7161_v23 = vld [vmem:[#allocation3 + $0x10] sm:$0xff] }
 0x3dc   :  { %4692 = vmatpush3.msra.mxu0 %v8189_v60  ;;  %4733 = vmatpush3.msra.mxu1 %v8192_v6  ;;  %v7173_v55 = vld [vmem:[#allocation7 + $0x78] sm:$0xff] }
 0x3dd   :  { %5540 = vtanh.f32 %v1350_v25  ;;  %4693 = vmatprep.subr.mxu0 %v5837_v0  ;;  %4734 = vmatprep.subr.mxu1 %v5837_v0  ;;  %v7165_v25 = vld [vmem:[#allocation3 + $0x8] sm:$0xff] }
 0x3de   :  { %4694 = vmatpush3.msra.mxu0 %v8191_v4  ;;  %4735 = vmatpush3.msra.mxu1 %v8194_v10  ;;  %v7107_v10 = vld [vmem:[#allocation3 + $0x70] sm:$0xff] }
 0x3df   :  { %4695 = vmatprep.subr.mxu0 %v5837_v0  ;;  %4736 = vmatprep.subr.mxu1 %v5837_v0 }
 0x3e0   :  { %4696 = vmatpush3.msra.mxu0 %v8193_v8  ;;  %4737 = vmatpush3.msra.mxu1 %v6523_v62  ;;  %v8237_v62 = vld [vmem:[#allocation35_spill] sm:$0xff]  ;;  %v7101_v8 = vld [vmem:[#allocation3 + $0x78] sm:$0xff] }
 0x3e1   :  { %4697 = vmatprep.subr.mxu0 %v5837_v0  ;;  %4738 = vmatprep.subr.mxu1 %v5837_v0 }
 0x3e2   :  { %4698 = vmatpush3.msra.mxu0 %v8195_v12  ;;  %4739 = vmatpush3.msra.mxu1 %v6531_v58  ;;  %v8230_v58 = vld [vmem:[#allocation24_spill] sm:$0xff]  ;;  %v7111_v12 = vld [vmem:[#allocation3 + $0x68] sm:$0xff] }
 0x3e3   :  { %4699 = vmatprep.subr.mxu0 %v5837_v0  ;;  %4740 = vmatprep.subr.mxu1 %v5837_v0 }
 0x3e4   :  { %4700 = vmatpush3.msra.mxu0 %v6521_v61  ;;  %4741 = vmatpush3.msra.mxu1 %v6539_v40  ;;  %v8228_v40 = vld [vmem:[#allocation22_spill] sm:$0xff]  ;;  %v8235_v61 = vld [vmem:[#allocation33_spill] sm:$0xff] }
 0x3e5   :  { %4701 = vmatprep.subr.mxu0 %v5837_v0  ;;  %4743 = vmatmul.mubr.f32.vlgmr.msra.gmra.mxu1 %v5539_v13 }
 0x3e6   :  { %4702 = vmatpush3.msra.mxu0 %v6529_v41  ;;  %4707 = vmatprep.mubr.msk.f32.mxu0 %vm5838_vm0, %v5837_v0  ;;  %v8229_v41 = vld [vmem:[#allocation27_spill] sm:$0xff] }
 0x3e7   :  { %4703 = vmatprep.subr.mxu0 %v5837_v0  ;;  %4780 = vmatprep.subr.mxu1 %v5837_v0 }
 0x3e8   :  { %4704 = vmatpush3.msra.mxu0 %v6537_v38  ;;  %4781 = vmatpush3.msra.mxu1 %v6739_v16  ;;  %v8227_v38 = vld [vmem:[#allocation25_spill] sm:$0xff] }
 0x3e9   :  { %4705 = vmatprep.subr.mxu0 %v5837_v0  ;;  %4782 = vmatprep.subr.mxu1 %v5837_v0 }
 0x3ea   :  { %v5541_v27 = vpop.eup %5540  ;;  %4706 = vmatpush3.msra.mxu0 %v6545_v36  ;;  %4783 = vmatpush3.msra.mxu1 %v6759_v22  ;;  %v8226_v36 = vld [vmem:[#allocation20_spill] sm:$0xff] }
 0x3eb   :  { %4708 = vmatmul.mubr.f32.vlgmr.msra.gmra.mxu0 %v5541_v27  ;;  %4745 = vmatprep.subr.mxu0 %v5837_v0  ;;  %v7169_v27 = vld [vmem:[#allocation3] sm:$0xff] }
 0x3ec   :  { %4746 = vmatpush3.msra.mxu0 %v6746_v18  ;;  %4777 = vmatprep.mubr.msk.f32.mxu0 %vm5838_vm0, %v5837_v0 }
 0x3ed   :  { %4747 = vmatprep.subr.mxu0 %v5837_v0  ;;  %4784 = vmatprep.subr.mxu1 %v5837_v0 }
 0x3ee   :  { %4748 = vmatpush3.msra.mxu0 %v6756_v20  ;;  %4785 = vmatpush3.msra.mxu1 %v8223_v29 }
 0x3ef   :  { %4749 = vmatprep.subr.mxu0 %v5837_v0  ;;  %4786 = vmatprep.subr.mxu1 %v5837_v0 }
 0x3f0   :  { %4750 = vmatpush3.msra.mxu0 %v8224_v30  ;;  %4787 = vmatpush3.msra.mxu1 %v8225_v32 }
 0x3f1   :  { %4751 = vmatprep.subr.mxu0 %v5837_v0  ;;  %4788 = vmatprep.subr.mxu1 %v5837_v0 }
 0x3f2   :  { %4752 = vmatpush3.msra.mxu0 %v8226_v36  ;;  %4789 = vmatpush3.msra.mxu1 %v8227_v38 }
 0x3f3   :  { %4753 = vmatprep.subr.mxu0 %v5837_v0  ;;  %4790 = vmatprep.subr.mxu1 %v5837_v0 }
 0x3f4   :  { %4754 = vmatpush3.msra.mxu0 %v8228_v40  ;;  %4791 = vmatpush3.msra.mxu1 %v8229_v41 }
 0x3f5   :  { %4755 = vmatprep.subr.mxu0 %v5837_v0  ;;  %4792 = vmatprep.subr.mxu1 %v5837_v0 }
 0x3f6   :  { %4756 = vmatpush3.msra.mxu0 %v8230_v58  ;;  %4793 = vmatpush3.msra.mxu1 %v8231_v57 }
 0x3f7   :  { %4757 = vmatprep.subr.mxu0 %v5837_v0  ;;  %4794 = vmatprep.subr.mxu1 %v5837_v0 }
 0x3f8   :  { %4758 = vmatpush3.msra.mxu0 %v8232_v34  ;;  %4795 = vmatpush3.msra.mxu1 %v8233_v63 }
 0x3f9   :  { %4759 = vmatprep.subr.mxu0 %v5837_v0  ;;  %4796 = vmatprep.subr.mxu1 %v5837_v0 }
 0x3fa   :  { %4760 = vmatpush3.msra.mxu0 %v8234_v35  ;;  %4797 = vmatpush3.msra.mxu1 %v8235_v61 }
 0x3fb   :  { %4761 = vmatprep.subr.mxu0 %v5837_v0  ;;  %4798 = vmatprep.subr.mxu1 %v5837_v0 }
 0x3fc   :  { %4762 = vmatpush3.msra.mxu0 %v8236_v2  ;;  %4799 = vmatpush3.msra.mxu1 %v8237_v62 }
 0x3fd   :  { %4763 = vmatprep.subr.mxu0 %v5837_v0  ;;  %4800 = vmatprep.subr.mxu1 %v5837_v0 }
 0x3fe   :  { %4764 = vmatpush3.msra.mxu0 %v8238_v26  ;;  %4801 = vmatpush3.msra.mxu1 %v8239_v28 }
 0x3ff   :  { %4765 = vmatprep.subr.mxu0 %v5837_v0  ;;  %4802 = vmatprep.subr.mxu1 %v5837_v0 }
 0x400   :  { %4766 = vmatpush3.msra.mxu0 %v8240_v31  ;;  %4803 = vmatpush3.msra.mxu1 %v8241_v33 }
 0x401   :  { %4767 = vmatprep.subr.mxu0 %v5837_v0  ;;  %4804 = vmatprep.subr.mxu1 %v5837_v0 }
 0x402   :  { %4768 = vmatpush3.msra.mxu0 %v8242_v39  ;;  %4805 = vmatpush3.msra.mxu1 %v8243_v42 }
 0x403   :  { %4769 = vmatprep.subr.mxu0 %v5837_v0  ;;  %4806 = vmatprep.subr.mxu1 %v5837_v0 }
 0x404   :  { %4770 = vmatpush3.msra.mxu0 %v8244_v43  ;;  %4807 = vmatpush3.msra.mxu1 %v8245_v44 }
 0x405   :  { %4771 = vmatprep.subr.mxu0 %v5837_v0  ;;  %4808 = vmatprep.subr.mxu1 %v5837_v0 }
 0x406   :  { %4772 = vmatpush3.msra.mxu0 %v8246_v45  ;;  %4809 = vmatpush3.msra.mxu1 %v8247_v46 }
 0x407   :  { %4773 = vmatprep.subr.mxu0 %v5837_v0  ;;  %4810 = vmatprep.subr.mxu1 %v5837_v0 }
 0x408   :  { %4774 = vmatpush3.msra.mxu0 %v8248_v50  ;;  %4811 = vmatpush3.msra.mxu1 %v6913_v14 }
 0x409   :  { %4775 = vmatprep.subr.mxu0 %v5837_v0  ;;  %4812 = vmatprep.mubr.msk.f32.mxu1 %vm5838_vm0, %v5837_v0 }
 0x40a   :  { %4776 = vmatpush3.msra.mxu0 %v6910_v37  ;;  %4850 = vmatprep.subr.mxu1 %v5837_v0 }
 0x40b   :  { %4815 = vmatprep.subr.mxu0 %v5837_v0 }
 0x465   :  { %v1420_v60 = vpop.f32.mrf.mxu1 }
 0x466   :  { %v1424_v3 = vadd.f32 %v1420_v60, %v227_v56  ;;  %v7179_v56 = vld [vmem:[#allocation7 + $0x70] sm:$0xff]  ;;  %v7183_v60 = vld [vmem:[#allocation7 + $0x68] sm:$0xff] }
 0x467   :  { %v4604_v4 = vpop.f32.mrf.mxu1 }
 0x468   :  { %5542 = vtanh.f32 %v1424_v3  ;;  %v7189_v4 = vld [vmem:[#allocation7 + $0x60] sm:$0xff] }
 0x469   :  { %8250 = vst [vmem:[#allocation14_spill] sm:$0xff] %v7189_v4 }
 0x475   :  { %v5543_v6 = vpop.eup %5542 }
 0x476   :  { %4778 = vmatmul.mubr.f32.vlgmr.msra.gmra.mxu0 %v5543_v6 }
 0x477   :  { %4816 = vmatpush3.msra.mxu0 %v7101_v8  ;;  %4847 = vmatprep.mubr.msk.f32.mxu0 %vm5838_vm0, %v5837_v0 }
 0x478   :  { %4817 = vmatprep.subr.mxu0 %v5837_v0 }
 0x479   :  { %4818 = vmatpush3.msra.mxu0 %v7107_v10 }
 0x47a   :  { %4819 = vmatprep.subr.mxu0 %v5837_v0 }
 0x47b   :  { %4820 = vmatpush3.msra.mxu0 %v7111_v12 }
 0x47c   :  { %4821 = vmatprep.subr.mxu0 %v5837_v0 }
 0x47d   :  { %4822 = vmatpush3.msra.mxu0 %v7115_v24 }
 0x47e   :  { %4823 = vmatprep.subr.mxu0 %v5837_v0 }
 0x47f   :  { %4824 = vmatpush3.msra.mxu0 %v7119_v47 }
 0x480   :  { %4825 = vmatprep.subr.mxu0 %v5837_v0 }
 0x481   :  { %4826 = vmatpush3.msra.mxu0 %v7123_v49 }
 0x482   :  { %4827 = vmatprep.subr.mxu0 %v5837_v0 }
 0x483   :  { %4828 = vmatpush3.msra.mxu0 %v7127_v52 }
 0x484   :  { %4829 = vmatprep.subr.mxu0 %v5837_v0 }
 0x485   :  { %v1562_v53 = vpop.f32.mrf.mxu1  ;;  %4830 = vmatpush3.msra.mxu0 %v7131_v54 }
 0x486   :  { %4831 = vmatprep.subr.mxu0 %v5837_v0 }
 0x487   :  { %v4674_v59 = vpop.f32.mrf.mxu1  ;;  %4832 = vmatpush3.msra.mxu0 %v7135_v1 }
 0x488   :  { %4833 = vmatprep.subr.mxu0 %v5837_v0  ;;  %v7202_v59 = vld [vmem:[#allocation8 + $0x70] sm:$0xff] }
 0x489   :  { %4834 = vmatpush3.msra.mxu0 %v7139_v5  ;;  %8253 = vst [vmem:[#allocation23_spill] sm:$0xff] %v7202_v59 }
 0x48a   :  { %4835 = vmatprep.subr.mxu0 %v5837_v0 }
 0x48b   :  { %v1492_v7 = vpop.f32.mrf.mxu0  ;;  %4836 = vmatpush3.msra.mxu0 %v7143_v9 }
 0x48c   :  { %v1563_v11 = vadd.f32 %v1562_v53, %v1492_v7  ;;  %4837 = vmatprep.subr.mxu0 %v5837_v0  ;;  %v7197_v53 = vld [vmem:[#allocation7 + $0x58] sm:$0xff]  ;;  %v7205_v7 = vld [vmem:[#allocation7 + $0x50] sm:$0xff] }
 0x48d   :  { %v4639_v13 = vpop.f32.mrf.mxu0  ;;  %4838 = vmatpush3.msra.mxu0 %v7147_v15  ;;  %8252 = vst [vmem:[#allocation19_spill] sm:$0xff] %v7197_v53  ;;  %8254 = vst [vmem:[#allocation20_spill] sm:$0xff] %v7205_v7 }
 0x48e   :  { %v1566_v19 = vadd.f32 %v7153_v17, %v1563_v11  ;;  %4839 = vmatprep.subr.mxu0 %v5837_v0  ;;  %v7210_v11 = vld [vmem:[#allocation8 + $0x68] sm:$0xff] }
 0x48f   :  { %4840 = vmatpush3.msra.mxu0 %v7157_v21  ;;  %8255 = vst [vmem:[#allocation25_spill] sm:$0xff] %v7210_v11  ;;  %v7213_v13 = vld [vmem:[#allocation7 + $0x48] sm:$0xff] }
 0x490   :  { %5544 = vtanh.f32 %v1566_v19  ;;  %4841 = vmatprep.subr.mxu0 %v5837_v0  ;;  %8256 = vst [vmem:[#allocation22_spill] sm:$0xff] %v7213_v13  ;;  %v7218_v19 = vld [vmem:[#allocation8 + $0x60] sm:$0xff] }
 0x491   :  { %4842 = vmatpush3.msra.mxu0 %v7161_v23  ;;  %8257 = vst [vmem:[#allocation27_spill] sm:$0xff] %v7218_v19 }
 0x492   :  { %4843 = vmatprep.subr.mxu0 %v5837_v0 }
 0x493   :  { %4844 = vmatpush3.msra.mxu0 %v7165_v25 }
 0x494   :  { %4845 = vmatprep.subr.mxu0 %v5837_v0 }
 0x495   :  { %4846 = vmatpush3.msra.mxu0 %v7169_v27 }
 0x496   :  { %4848 = vmatmul.mubr.f32.vlgmr.msra.gmra.mxu0 %v5543_v6  ;;  %4885 = vmatprep.subr.mxu0 %v5837_v0  ;;  %v7194_v6 = vld [vmem:[#allocation8 + $0x78] sm:$0xff] }
 0x497   :  { %4886 = vmatpush3.msra.mxu0 %v7173_v55  ;;  %4917 = vmatprep.mubr.msk.f32.mxu0 %vm5838_vm0, %v5837_v0  ;;  %8251 = vst [vmem:[#allocation21_spill] sm:$0xff] %v7194_v6 }
 0x498   :  { %4887 = vmatprep.subr.mxu0 %v5837_v0 }
 0x499   :  { %4888 = vmatpush3.msra.mxu0 %v7179_v56 }
 0x49a   :  { %4889 = vmatprep.subr.mxu0 %v5837_v0 }
 0x49b   :  { %4890 = vmatpush3.msra.mxu0 %v7183_v60 }
 0x49c   :  { %4891 = vmatprep.subr.mxu0 %v5837_v0 }
 0x49d   :  { %v7187_v3 = vpop.eup %5544  ;;  %4892 = vmatpush3.msra.mxu0 %v7189_v4  ;;  %v7253_v4 = vld [vmem:[#allocation7 + $0x20] sm:$0xff] }
 0x49e   :  { %4813 = vmatmul.mubr.f32.vlgmr.msra.gmra.mxu1 %v7187_v3  ;;  %4893 = vmatprep.subr.mxu0 %v5837_v0 }
 0x49f   :  { %4851 = vmatpush3.msra.mxu1 %v7194_v6  ;;  %4894 = vmatpush3.msra.mxu0 %v7197_v53  ;;  %v7229_v6 = vld [vmem:[#allocation7 + $0x38] sm:$0xff] }
 0x4a0   :  { %4852 = vmatprep.subr.mxu1 %v5837_v0  ;;  %4895 = vmatprep.subr.mxu0 %v5837_v0  ;;  %8260 = vst [vmem:[#allocation26_spill] sm:$0xff] %v7229_v6 }
 0x4a1   :  { %4853 = vmatpush3.msra.mxu1 %v7202_v59  ;;  %4896 = vmatpush3.msra.mxu0 %v7205_v7  ;;  %v7221_v7 = vld [vmem:[#allocation7 + $0x40] sm:$0xff] }
 0x4a2   :  { %4854 = vmatprep.subr.mxu1 %v5837_v0  ;;  %4897 = vmatprep.subr.mxu0 %v5837_v0  ;;  %8258 = vst [vmem:[#allocation24_spill] sm:$0xff] %v7221_v7 }
 0x4a3   :  { %4855 = vmatpush3.msra.mxu1 %v7210_v11  ;;  %4898 = vmatpush3.msra.mxu0 %v7213_v13  ;;  %v7226_v11 = vld [vmem:[#allocation8 + $0x58] sm:$0xff] }
 0x4a4   :  { %4856 = vmatprep.subr.mxu1 %v5837_v0  ;;  %4899 = vmatprep.subr.mxu0 %v5837_v0  ;;  %8259 = vst [vmem:[#allocation29_spill] sm:$0xff] %v7226_v11 }
 0x4a5   :  { %4857 = vmatpush3.msra.mxu1 %v7218_v19  ;;  %v1704_v59 = vpop.f32.mrf.mxu1  ;;  %4900 = vmatpush3.msra.mxu0 %v7221_v7  ;;  %v7234_v19 = vld [vmem:[#allocation8 + $0x50] sm:$0xff] }
 0x4a6   :  { %4858 = vmatprep.subr.mxu1 %v5837_v0  ;;  %4901 = vmatprep.subr.mxu0 %v5837_v0  ;;  %8261 = vst [vmem:[#allocation31_spill] sm:$0xff] %v7234_v19  ;;  %v7237_v7 = vld [vmem:[#allocation7 + $0x30] sm:$0xff] }
 0x4a7   :  { %4859 = vmatpush3.msra.mxu1 %v7226_v11  ;;  %v4744_v13 = vpop.f32.mrf.mxu1  ;;  %4902 = vmatpush3.msra.mxu0 %v7229_v6  ;;  %8262 = vst [vmem:[#allocation28_spill] sm:$0xff] %v7237_v7  ;;  %v7242_v11 = vld [vmem:[#allocation8 + $0x48] sm:$0xff] }
 0x4a8   :  { %4860 = vmatprep.subr.mxu1 %v5837_v0  ;;  %4903 = vmatprep.subr.mxu0 %v5837_v0  ;;  %8263 = vst [vmem:[#allocation33_spill] sm:$0xff] %v7242_v11  ;;  %v7245_v6 = vld [vmem:[#allocation7 + $0x28] sm:$0xff] }
 0x4a9   :  { %4861 = vmatpush3.msra.mxu1 %v7234_v19  ;;  %4904 = vmatpush3.msra.mxu0 %v7237_v7  ;;  %v7250_v7 = vld [vmem:[#allocation8 + $0x40] sm:$0xff] }
 0x4aa   :  { %4862 = vmatprep.subr.mxu1 %v5837_v0  ;;  %4905 = vmatprep.subr.mxu0 %v5837_v0 }
 0x4ab   :  { %v1634_v13 = vpop.f32.mrf.mxu0  ;;  %4863 = vmatpush3.msra.mxu1 %v7242_v11  ;;  %4906 = vmatpush3.msra.mxu0 %v7245_v6 }
 0x4ac   :  { %v1705_v53 = vadd.f32 %v1704_v59, %v1634_v13  ;;  %4864 = vmatprep.subr.mxu1 %v5837_v0  ;;  %4907 = vmatprep.subr.mxu0 %v5837_v0  ;;  %v7259_v59 = vld [vmem:[#allocation8 + $0x38] sm:$0xff] }
 0x4ad   :  { %v4709_v19 = vpop.f32.mrf.mxu0  ;;  %4865 = vmatpush3.msra.mxu1 %v7250_v7  ;;  %4908 = vmatpush3.msra.mxu0 %v7253_v4  ;;  %v7262_v13 = vld [vmem:[#allocation7 + $0x18] sm:$0xff] }
 0x4ae   :  { %v1708_v11 = vadd.f32 %v6698_v48, %v1705_v53  ;;  %4866 = vmatprep.subr.mxu1 %v5837_v0  ;;  %4909 = vmatprep.subr.mxu0 %v5837_v0  ;;  %v7267_v19 = vld [vmem:[#allocation8 + $0x30] sm:$0xff]  ;;  %v7275_v53 = vld [vmem:[#allocation8 + $0x28] sm:$0xff] }
 0x4af   :  { %4867 = vmatpush3.msra.mxu1 %v7259_v59  ;;  %4910 = vmatpush3.msra.mxu0 %v7262_v13  ;;  %8264 = vst [vmem:[#allocation30_spill] sm:$0xff] %v7267_v19  ;;  %v7270_v48 = vld [vmem:[#allocation7 + $0x10] sm:$0xff]  ;;  %8266 = vst [vmem:[#allocation32_spill] sm:$0xff] %v7275_v53 }
 0x4b0   :  { %5546 = vtanh.f32 %v1708_v11  ;;  %4868 = vmatprep.subr.mxu1 %v5837_v0  ;;  %4911 = vmatprep.subr.mxu0 %v5837_v0  ;;  %8265 = vst [vmem:[#allocation35_spill] sm:$0xff] %v7270_v48  ;;  %v7278_v11 = vld [vmem:[#allocation7 + $0x8] sm:$0xff] }
 0x4b1   :  { %4869 = vmatpush3.msra.mxu1 %v7267_v19  ;;  %4912 = vmatpush3.msra.mxu0 %v7270_v48  ;;  %v7283_v19 = vld [vmem:[#allocation8 + $0x20] sm:$0xff] }
 0x4b2   :  { %4870 = vmatprep.subr.mxu1 %v5837_v0  ;;  %4913 = vmatprep.subr.mxu0 %v5837_v0  ;;  %8267 = vst [vmem:[#allocation37_spill] sm:$0xff] %v7283_v19  ;;  %v7286_v48 = vld [vmem:[#allocation7] sm:$0xff] }
 0x4b3   :  { %4871 = vmatpush3.msra.mxu1 %v7275_v53  ;;  %4914 = vmatpush3.msra.mxu0 %v7278_v11  ;;  %8268 = vst [vmem:[#allocation34_spill] sm:$0xff] %v7286_v48  ;;  %v7291_v53 = vld [vmem:[#allocation8 + $0x18] sm:$0xff] }
 0x4b4   :  { %4872 = vmatprep.subr.mxu1 %v5837_v0  ;;  %4915 = vmatprep.subr.mxu0 %v5837_v0  ;;  %8269 = vst [vmem:[#allocation39_spill] sm:$0xff] %v7291_v53 }
 0x4b5   :  { %4873 = vmatpush3.msra.mxu1 %v7283_v19  ;;  %4916 = vmatpush3.msra.mxu0 %v7286_v48  ;;  %v7298_v19 = vld [vmem:[#allocation8 + $0x10] sm:$0xff]  ;;  %v7310_v48 = vld [vmem:[#allocation8] sm:$0xff] }
 0x4b6   :  { %4874 = vmatprep.subr.mxu1 %v5837_v0  ;;  %4918 = vmatmul.mubr.f32.vlgmr.msra.gmra.mxu0 %v7187_v3  ;;  %v7304_v3 = vld [vmem:[#allocation8 + $0x8] sm:$0xff] }
 0x4b7   :  { %4875 = vmatpush3.msra.mxu1 %v7291_v53  ;;  %4882 = vmatprep.mubr.msk.f32.mxu1 %vm5838_vm0, %v5837_v0 }
 0x4b8   :  { %4876 = vmatprep.subr.mxu1 %v5837_v0  ;;  %4955 = vmatprep.subr.mxu0 %v5837_v0 }
 0x4b9   :  { %4877 = vmatpush3.msra.mxu1 %v7298_v19  ;;  %4956 = vmatpush3.msra.mxu0 %v6739_v16  ;;  %v8270_v16 = vld [vmem:[#allocation15_spill] sm:$0xff] }
 0x4ba   :  { %4878 = vmatprep.subr.mxu1 %v5837_v0  ;;  %4957 = vmatprep.subr.mxu0 %v5837_v0 }
 0x4bb   :  { %4879 = vmatpush3.msra.mxu1 %v7304_v3  ;;  %4958 = vmatpush3.msra.mxu0 %v6759_v22 }
 0x4bc   :  { %4880 = vmatprep.subr.mxu1 %v5837_v0  ;;  %4959 = vmatprep.subr.mxu0 %v5837_v0 }
 0x4bd   :  { %v5547_v53 = vpop.eup %5546  ;;  %4881 = vmatpush3.msra.mxu1 %v7310_v48  ;;  %4960 = vmatpush3.msra.mxu0 %v8223_v29 }
 0x4be   :  { %4883 = vmatmul.mubr.f32.vlgmr.msra.gmra.mxu1 %v5547_v53  ;;  %4920 = vmatprep.subr.mxu1 %v5837_v0  ;;  %v7460_v53 = vld [vmem:[%s7999_s9] ss:$0 sm:$0xff] }
 0x4bf   :  { %4921 = vmatpush3.msra.mxu1 %v6746_v18  ;;  %4952 = vmatprep.mubr.msk.f32.mxu1 %vm5838_vm0, %v5837_v0  ;;  %v232_v18 = vadd.f32 %v7097_v51, %v8270_v16 }
 0x4c0   :  { %4922 = vmatprep.subr.mxu1 %v5837_v0  ;;  %4961 = vmatprep.subr.mxu0 %v5837_v0 }
 0x4c1   :  { %4923 = vmatpush3.msra.mxu1 %v6756_v20  ;;  %4962 = vmatpush3.msra.mxu0 %v8225_v32 }
 0x4c2   :  { %4924 = vmatprep.subr.mxu1 %v5837_v0  ;;  %4963 = vmatprep.subr.mxu0 %v5837_v0 }
 0x4c3   :  { %4925 = vmatpush3.msra.mxu1 %v8224_v30  ;;  %4964 = vmatpush3.msra.mxu0 %v8227_v38 }
 0x4c4   :  { %4926 = vmatprep.subr.mxu1 %v5837_v0  ;;  %4965 = vmatprep.subr.mxu0 %v5837_v0 }
 0x4c5   :  { %4927 = vmatpush3.msra.mxu1 %v8226_v36  ;;  %4966 = vmatpush3.msra.mxu0 %v8229_v41  ;;  %v8271_v41 = vld [vmem:[#allocation14_spill] sm:$0xff] }
 0x4c6   :  { %4928 = vmatprep.subr.mxu1 %v5837_v0  ;;  %4967 = vmatprep.subr.mxu0 %v5837_v0 }
 0x4c7   :  { %4929 = vmatpush3.msra.mxu1 %v8228_v40  ;;  %4968 = vmatpush3.msra.mxu0 %v8231_v57  ;;  %v8272_v57 = vld [vmem:[#allocation19_spill] sm:$0xff] }
 0x4c8   :  { %4930 = vmatprep.subr.mxu1 %v5837_v0  ;;  %4969 = vmatprep.subr.mxu0 %v5837_v0 }
 0x4c9   :  { %4931 = vmatpush3.msra.mxu1 %v8230_v58  ;;  %4970 = vmatpush3.msra.mxu0 %v8233_v63  ;;  %v8274_v63 = vld [vmem:[#allocation20_spill] sm:$0xff] }
 0x4ca   :  { %4932 = vmatprep.subr.mxu1 %v5837_v0  ;;  %4971 = vmatprep.subr.mxu0 %v5837_v0 }
 0x4cb   :  { %4933 = vmatpush3.msra.mxu1 %v8232_v34  ;;  %4972 = vmatpush3.msra.mxu0 %v8235_v61  ;;  %v8273_v34 = vld [vmem:[#allocation21_spill] sm:$0xff]  ;;  %v8276_v61 = vld [vmem:[#allocation22_spill] sm:$0xff] }
 0x4cc   :  { %4934 = vmatprep.subr.mxu1 %v5837_v0  ;;  %4973 = vmatprep.subr.mxu0 %v5837_v0 }
 0x4cd   :  { %4935 = vmatpush3.msra.mxu1 %v8234_v35  ;;  %4974 = vmatpush3.msra.mxu0 %v8237_v62  ;;  %v8275_v35 = vld [vmem:[#allocation23_spill] sm:$0xff] }
 0x4ce   :  { %4936 = vmatprep.subr.mxu1 %v5837_v0  ;;  %4975 = vmatprep.subr.mxu0 %v5837_v0 }
 0x4cf   :  { %4937 = vmatpush3.msra.mxu1 %v8236_v2  ;;  %4976 = vmatpush3.msra.mxu0 %v8239_v28  ;;  %v8277_v2 = vld [vmem:[#allocation25_spill] sm:$0xff]  ;;  %v8279_v28 = vld [vmem:[#allocation27_spill] sm:$0xff] }
 0x4d0   :  { %4938 = vmatprep.subr.mxu1 %v5837_v0  ;;  %4977 = vmatprep.subr.mxu0 %v5837_v0 }
 0x4d1   :  { %4939 = vmatpush3.msra.mxu1 %v8238_v26  ;;  %4978 = vmatpush3.msra.mxu0 %v8241_v33  ;;  %v8278_v26 = vld [vmem:[#allocation24_spill] sm:$0xff]  ;;  %v8280_v33 = vld [vmem:[#allocation26_spill] sm:$0xff] }
 0x4d2   :  { %4940 = vmatprep.subr.mxu1 %v5837_v0  ;;  %4979 = vmatprep.subr.mxu0 %v5837_v0 }
 0x4d3   :  { %4941 = vmatpush3.msra.mxu1 %v8240_v31  ;;  %4980 = vmatpush3.msra.mxu0 %v8243_v42  ;;  %v8282_v42 = vld [vmem:[#allocation28_spill] sm:$0xff] }
 0x4d4   :  { %4942 = vmatprep.subr.mxu1 %v5837_v0  ;;  %4981 = vmatprep.subr.mxu0 %v5837_v0 }
 0x4d5   :  { %4943 = vmatpush3.msra.mxu1 %v8242_v39  ;;  %4982 = vmatpush3.msra.mxu0 %v8245_v44  ;;  %v8281_v39 = vld [vmem:[#allocation29_spill] sm:$0xff] }
 0x4d6   :  { %4944 = vmatprep.subr.mxu1 %v5837_v0  ;;  %4983 = vmatprep.subr.mxu0 %v5837_v0 }
 0x4d7   :  { %4945 = vmatpush3.msra.mxu1 %v8244_v43  ;;  %4984 = vmatpush3.msra.mxu0 %v8247_v46  ;;  %v8283_v43 = vld [vmem:[#allocation31_spill] sm:$0xff] }
 0x4d8   :  { %4946 = vmatprep.subr.mxu1 %v5837_v0  ;;  %4985 = vmatprep.subr.mxu0 %v5837_v0 }
 0x4d9   :  { %4947 = vmatpush3.msra.mxu1 %v8246_v45  ;;  %4986 = vmatpush3.msra.mxu0 %v6913_v14  ;;  %v8284_v45 = vld [vmem:[#allocation33_spill] sm:$0xff] }
 0x4da   :  { %4948 = vmatprep.subr.mxu1 %v5837_v0  ;;  %4987 = vmatprep.mubr.msk.f32.mxu0 %vm5838_vm0, %v5837_v0 }
 0x4db   :  { %4949 = vmatpush3.msra.mxu1 %v8248_v50  ;;  %5025 = vmatprep.subr.mxu0 %v5837_v0 }
 0x4dc   :  { %4950 = vmatprep.subr.mxu1 %v5837_v0 }
 0x4dd   :  { %4951 = vmatpush3.msra.mxu1 %v6910_v37 }
 0x4de   :  { %4990 = vmatprep.subr.mxu1 %v5837_v0 }
 0x536   :  { %v1778_v20 = vpop.f32.mrf.mxu0 }
 0x537   :  { %v1782_v22 = vadd.f32 %v1778_v20, %v232_v18  ;;  %v8285_v18 = vld [vmem:[#allocation35_spill] sm:$0xff]  ;;  %v8286_v20 = vld [vmem:[#allocation30_spill] sm:$0xff] }
 0x538   :  { %v4779_v14 = vpop.f32.mrf.mxu0 }
 0x539   :  { %5548 = vtanh.f32 %v1782_v22  ;;  %v8287_v22 = vld [vmem:[#allocation32_spill] sm:$0xff]  ;;  %v8288_v14 = vld [vmem:[#allocation34_spill] sm:$0xff] }
 0x546   :  { %v5549_v29 = vpop.eup %5548 }
 0x547   :  { %4953 = vmatmul.mubr.f32.vlgmr.msra.gmra.mxu1 %v5549_v29 }
 0x548   :  { %4991 = vmatpush3.msra.mxu1 %v7101_v8  ;;  %5022 = vmatprep.mubr.msk.f32.mxu1 %vm5838_vm0, %v5837_v0 }
 0x549   :  { %4992 = vmatprep.subr.mxu1 %v5837_v0 }
 0x54a   :  { %4993 = vmatpush3.msra.mxu1 %v7107_v10 }
 0x54b   :  { %4994 = vmatprep.subr.mxu1 %v5837_v0 }
 0x54c   :  { %4995 = vmatpush3.msra.mxu1 %v7111_v12 }
 0x54d   :  { %4996 = vmatprep.subr.mxu1 %v5837_v0 }
 0x54e   :  { %4997 = vmatpush3.msra.mxu1 %v7115_v24 }
 0x54f   :  { %4998 = vmatprep.subr.mxu1 %v5837_v0 }
 0x550   :  { %4999 = vmatpush3.msra.mxu1 %v7119_v47 }
 0x551   :  { %5000 = vmatprep.subr.mxu1 %v5837_v0 }
 0x552   :  { %5001 = vmatpush3.msra.mxu1 %v7123_v49 }
 0x553   :  { %5002 = vmatprep.subr.mxu1 %v5837_v0 }
 0x554   :  { %5003 = vmatpush3.msra.mxu1 %v7127_v52 }
 0x555   :  { %5004 = vmatprep.subr.mxu1 %v5837_v0 }
 0x556   :  { %v1920_v37 = vpop.f32.mrf.mxu0  ;;  %5005 = vmatpush3.msra.mxu1 %v7131_v54 }
 0x557   :  { %5006 = vmatprep.subr.mxu1 %v5837_v0 }
 0x558   :  { %v4849_v30 = vpop.f32.mrf.mxu0  ;;  %5007 = vmatpush3.msra.mxu1 %v7135_v1 }
 0x559   :  { %5008 = vmatprep.subr.mxu1 %v5837_v0  ;;  %v7482_v30 = vld [vmem:[#allocation5 + $0x78] sm:$0xff] }
 0x55a   :  { %5009 = vmatpush3.msra.mxu1 %v7139_v5 }
 0x55b   :  { %5010 = vmatprep.subr.mxu1 %v5837_v0 }
 0x55c   :  { %5011 = vmatpush3.msra.mxu1 %v7143_v9 }
 0x55d   :  { %5012 = vmatprep.subr.mxu1 %v5837_v0 }
 0x55e   :  { %v1850_v32 = vpop.f32.mrf.mxu1  ;;  %5013 = vmatpush3.msra.mxu1 %v7147_v15 }
 0x55f   :  { %v1921_v36 = vadd.f32 %v1920_v37, %v1850_v32  ;;  %5014 = vmatprep.subr.mxu1 %v5837_v0  ;;  %v8290_v37 = vld [vmem:[#allocation39_spill] sm:$0xff]  ;;  %v7488_v32 = vld [vmem:[#allocation5 + $0x70] sm:$0xff] }
 0x560   :  { %v4814_v38 = vpop.f32.mrf.mxu1  ;;  %5015 = vmatpush3.msra.mxu1 %v7157_v21 }
 0x561   :  { %v1924_v40 = vadd.f32 %v7153_v17, %v1921_v36  ;;  %5016 = vmatprep.subr.mxu1 %v5837_v0  ;;  %v7494_v36 = vld [vmem:[#allocation5 + $0x68] sm:$0xff] }
 0x562   :  { %5017 = vmatpush3.msra.mxu1 %v7161_v23 }
 0x563   :  { %5550 = vtanh.f32 %v1924_v40  ;;  %5018 = vmatprep.subr.mxu1 %v5837_v0  ;;  %v7500_v40 = vld [vmem:[#allocation5 + $0x60] sm:$0xff] }
 0x564   :  { %5019 = vmatpush3.msra.mxu1 %v7165_v25 }
 0x565   :  { %5020 = vmatprep.subr.mxu1 %v5837_v0 }
 0x566   :  { %5021 = vmatpush3.msra.mxu1 %v7169_v27 }
 0x567   :  { %5023 = vmatmul.mubr.f32.vlgmr.msra.gmra.mxu1 %v5549_v29  ;;  %5060 = vmatprep.subr.mxu1 %v5837_v0  ;;  %v8289_v29 = vld [vmem:[#allocation37_spill] sm:$0xff] }
 0x568   :  { %5061 = vmatpush3.msra.mxu1 %v7173_v55  ;;  %5092 = vmatprep.mubr.msk.f32.mxu1 %vm5838_vm0, %v5837_v0 }
 0x569   :  { %5062 = vmatprep.subr.mxu1 %v5837_v0 }
 0x56a   :  { %5063 = vmatpush3.msra.mxu1 %v7179_v56 }
 0x56b   :  { %5064 = vmatprep.subr.mxu1 %v5837_v0 }
 0x56c   :  { %5065 = vmatpush3.msra.mxu1 %v7183_v60 }
 0x56d   :  { %5066 = vmatprep.subr.mxu1 %v5837_v0 }
 0x56e   :  { %5067 = vmatpush3.msra.mxu1 %v8271_v41 }
 0x56f   :  { %5068 = vmatprep.subr.mxu1 %v5837_v0 }
 0x570   :  { %v5551_v58 = vpop.eup %5550  ;;  %5069 = vmatpush3.msra.mxu1 %v8272_v57 }
 0x571   :  { %4988 = vmatmul.mubr.f32.vlgmr.msra.gmra.mxu0 %v5551_v58  ;;  %5070 = vmatprep.subr.mxu1 %v5837_v0 }
 0x572   :  { %5026 = vmatpush3.msra.mxu0 %v8273_v34  ;;  %5071 = vmatpush3.msra.mxu1 %v8274_v63 }
 0x573   :  { %5027 = vmatprep.subr.mxu0 %v5837_v0  ;;  %5072 = vmatprep.subr.mxu1 %v5837_v0 }
 0x574   :  { %5028 = vmatpush3.msra.mxu0 %v8275_v35  ;;  %5073 = vmatpush3.msra.mxu1 %v8276_v61 }
 0x575   :  { %5029 = vmatprep.subr.mxu0 %v5837_v0  ;;  %5074 = vmatprep.subr.mxu1 %v5837_v0 }
 0x576   :  { %5030 = vmatpush3.msra.mxu0 %v8277_v2  ;;  %v2062_v62 = vpop.f32.mrf.mxu0  ;;  %5075 = vmatpush3.msra.mxu1 %v8278_v26 }
 0x577   :  { %5031 = vmatprep.subr.mxu0 %v5837_v0  ;;  %5076 = vmatprep.subr.mxu1 %v5837_v0 }
 0x578   :  { %5032 = vmatpush3.msra.mxu0 %v8279_v28  ;;  %v4919_v31 = vpop.f32.mrf.mxu0  ;;  %5077 = vmatpush3.msra.mxu1 %v8280_v33 }
 0x579   :  { %5033 = vmatprep.subr.mxu0 %v5837_v0  ;;  %5078 = vmatprep.subr.mxu1 %v5837_v0  ;;  %v7514_v31 = vld [vmem:[#allocation5 + $0x58] sm:$0xff] }
 0x57a   :  { %5034 = vmatpush3.msra.mxu0 %v8281_v39  ;;  %5079 = vmatpush3.msra.mxu1 %v8282_v42  ;;  %8291 = vst [vmem:[#allocation36_spill] sm:$0xff] %v7514_v31 }
 0x57b   :  { %5035 = vmatprep.subr.mxu0 %v5837_v0  ;;  %5080 = vmatprep.subr.mxu1 %v5837_v0 }
 0x57c   :  { %5036 = vmatpush3.msra.mxu0 %v8283_v43  ;;  %5081 = vmatpush3.msra.mxu1 %v7245_v6 }
 0x57d   :  { %5037 = vmatprep.subr.mxu0 %v5837_v0  ;;  %5082 = vmatprep.subr.mxu1 %v5837_v0 }
 0x57e   :  { %v1992_v44 = vpop.f32.mrf.mxu1  ;;  %5038 = vmatpush3.msra.mxu0 %v8284_v45  ;;  %5083 = vmatpush3.msra.mxu1 %v7253_v4 }
 0x57f   :  { %v2063_v46 = vadd.f32 %v2062_v62, %v1992_v44  ;;  %5039 = vmatprep.subr.mxu0 %v5837_v0  ;;  %5084 = vmatprep.subr.mxu1 %v5837_v0  ;;  %v5660_v62 = vld [vmem:[%s7992_s2 + $0x70] sm:$0xff]  ;;  %v5662_v44 = vld [vmem:[%s7992_s2 + $0x68] sm:$0xff] }
 0x580   :  { %v4884_v50 = vpop.f32.mrf.mxu1  ;;  %5040 = vmatpush3.msra.mxu0 %v7250_v7  ;;  %5085 = vmatpush3.msra.mxu1 %v7262_v13 }
 0x581   :  { %v2066_v16 = vadd.f32 %v7460_v53, %v2063_v46  ;;  %5041 = vmatprep.subr.mxu0 %v5837_v0  ;;  %5086 = vmatprep.subr.mxu1 %v5837_v0  ;;  %v7522_v46 = vld [vmem:[#allocation5 + $0x50] sm:$0xff]  ;;  %v5664_v50 = vld [vmem:[%s7992_s2 + $0x60] sm:$0xff] }
 0x582   :  { %5042 = vmatpush3.msra.mxu0 %v7259_v59  ;;  %5087 = vmatpush3.msra.mxu1 %v8285_v18  ;;  %8292 = vst [vmem:[#allocation40_spill] sm:$0xff] %v7522_v46 }
 0x583   :  { %5552 = vtanh.f32 %v2066_v16  ;;  %5043 = vmatprep.subr.mxu0 %v5837_v0  ;;  %5088 = vmatprep.subr.mxu1 %v5837_v0  ;;  %v7530_v16 = vld [vmem:[#allocation5 + $0x48] sm:$0xff] }
 0x584   :  { %5044 = vmatpush3.msra.mxu0 %v8286_v20  ;;  %5089 = vmatpush3.msra.mxu1 %v7278_v11  ;;  %8293 = vst [vmem:[#allocation38_spill] sm:$0xff] %v7530_v16 }
 0x585   :  { %5045 = vmatprep.subr.mxu0 %v5837_v0  ;;  %5090 = vmatprep.subr.mxu1 %v5837_v0 }
 0x586   :  { %5046 = vmatpush3.msra.mxu0 %v8287_v22  ;;  %5091 = vmatpush3.msra.mxu1 %v8288_v14 }
 0x587   :  { %5047 = vmatprep.subr.mxu0 %v5837_v0  ;;  %5093 = vmatmul.mubr.f32.vlgmr.msra.gmra.mxu1 %v5551_v58  ;;  %v5659_v58 = vld [vmem:[%s7992_s2 + $0x78] sm:$0xff] }
 0x588   :  { %5048 = vmatpush3.msra.mxu0 %v8289_v29  ;;  %5057 = vmatprep.mubr.msk.f32.mxu0 %vm5838_vm0, %v5837_v0 }
 0x589   :  { %5049 = vmatprep.subr.mxu0 %v5837_v0  ;;  %5130 = vmatprep.subr.mxu1 %v5837_v0 }
 0x58a   :  { %5050 = vmatpush3.msra.mxu0 %v8290_v37  ;;  %5131 = vmatpush3.msra.mxu1 %v7482_v30 }
 0x58b   :  { %5051 = vmatprep.subr.mxu0 %v5837_v0  ;;  %5132 = vmatprep.subr.mxu1 %v5837_v0 }
 0x58c   :  { %5052 = vmatpush3.msra.mxu0 %v7298_v19  ;;  %5133 = vmatpush3.msra.mxu1 %v7488_v32 }
 0x58d   :  { %5053 = vmatprep.subr.mxu0 %v5837_v0  ;;  %5134 = vmatprep.subr.mxu1 %v5837_v0 }
 0x58e   :  { %5054 = vmatpush3.msra.mxu0 %v7304_v3  ;;  %5135 = vmatpush3.msra.mxu1 %v7494_v36 }
 0x58f   :  { %5055 = vmatprep.subr.mxu0 %v5837_v0  ;;  %5136 = vmatprep.subr.mxu1 %v5837_v0 }
 0x590   :  { %v5553_v38 = vpop.eup %5552  ;;  %5056 = vmatpush3.msra.mxu0 %v7310_v48  ;;  %5137 = vmatpush3.msra.mxu1 %v7500_v40 }
 0x591   :  { %5058 = vmatmul.mubr.f32.vlgmr.msra.gmra.mxu0 %v5553_v38  ;;  %5095 = vmatprep.subr.mxu0 %v5837_v0  ;;  %v5666_v38 = vld [vmem:[%s7992_s2 + $0x58] sm:$0xff] }
 0x592   :  { %5096 = vmatpush3.msra.mxu0 %v5659_v58  ;;  %5127 = vmatprep.mubr.msk.f32.mxu0 %vm5838_vm0, %v5837_v0  ;;  %v7538_v58 = vld [vmem:[#allocation5 + $0x40] sm:$0xff] }
 0x593   :  { %5097 = vmatprep.subr.mxu0 %v5837_v0  ;;  %5138 = vmatprep.subr.mxu1 %v5837_v0  ;;  %8294 = vst [vmem:[#allocation42_spill] sm:$0xff] %v7538_v58 }
 0x594   :  { %5098 = vmatpush3.msra.mxu0 %v5660_v62  ;;  %5139 = vmatpush3.msra.mxu1 %v7514_v31  ;;  %v5668_v62 = vld [vmem:[%s7992_s2 + $0x50] sm:$0xff] }
 0x595   :  { %5099 = vmatprep.subr.mxu0 %v5837_v0  ;;  %5140 = vmatprep.subr.mxu1 %v5837_v0 }
 0x596   :  { %5100 = vmatpush3.msra.mxu0 %v5662_v44  ;;  %5141 = vmatpush3.msra.mxu1 %v7522_v46  ;;  %v7546_v44 = vld [vmem:[#allocation5 + $0x38] sm:$0xff] }
 0x597   :  { %5101 = vmatprep.subr.mxu0 %v5837_v0  ;;  %5142 = vmatprep.subr.mxu1 %v5837_v0  ;;  %8295 = vst [vmem:[#allocation41_spill] sm:$0xff] %v7546_v44 }
 0x598   :  { %5102 = vmatpush3.msra.mxu0 %v5664_v50  ;;  %5143 = vmatpush3.msra.mxu1 %v7530_v16  ;;  %v5670_v50 = vld [vmem:[%s7992_s2 + $0x48] sm:$0xff] }
 0x599   :  { %5103 = vmatprep.subr.mxu0 %v5837_v0  ;;  %5144 = vmatprep.subr.mxu1 %v5837_v0 }
 0x59a   :  { %5104 = vmatpush3.msra.mxu0 %v5666_v38  ;;  %5145 = vmatpush3.msra.mxu1 %v7538_v58  ;;  %v7554_v38 = vld [vmem:[#allocation5 + $0x30] sm:$0xff] }
 0x59b   :  { %5105 = vmatprep.subr.mxu0 %v5837_v0  ;;  %5146 = vmatprep.subr.mxu1 %v5837_v0  ;;  %8296 = vst [vmem:[#allocation44_spill] sm:$0xff] %v7554_v38 }
 0x59c   :  { %5106 = vmatpush3.msra.mxu0 %v5668_v62  ;;  %5147 = vmatpush3.msra.mxu1 %v7546_v44  ;;  %v5672_v62 = vld [vmem:[%s7992_s2 + $0x40] sm:$0xff]  ;;  %v7562_v44 = vld [vmem:[#allocation5 + $0x28] sm:$0xff] }
 0x59d   :  { %5107 = vmatprep.subr.mxu0 %v5837_v0  ;;  %5148 = vmatprep.subr.mxu1 %v5837_v0  ;;  %8297 = vst [vmem:[#allocation43_spill] sm:$0xff] %v7562_v44 }
 0x59e   :  { %5108 = vmatpush3.msra.mxu0 %v5670_v50  ;;  %5149 = vmatpush3.msra.mxu1 %v7554_v38  ;;  %v5674_v50 = vld [vmem:[%s7992_s2 + $0x38] sm:$0xff]  ;;  %v7570_v38 = vld [vmem:[#allocation5 + $0x20] sm:$0xff] }
 0x59f   :  { %5109 = vmatprep.subr.mxu0 %v5837_v0  ;;  %5150 = vmatprep.subr.mxu1 %v5837_v0  ;;  %8298 = vst [vmem:[#allocation16_spill] sm:$0xff] %v7570_v38 }
 0x5a0   :  { %5110 = vmatpush3.msra.mxu0 %v5672_v62  ;;  %5151 = vmatpush3.msra.mxu1 %v7562_v44  ;;  %v5676_v62 = vld [vmem:[%s7992_s2 + $0x30] sm:$0xff]  ;;  %v7578_v44 = vld [vmem:[#allocation5 + $0x18] sm:$0xff] }
 0x5a1   :  { %5111 = vmatprep.subr.mxu0 %v5837_v0  ;;  %5152 = vmatprep.subr.mxu1 %v5837_v0  ;;  %8299 = vst [vmem:[#allocation15_spill] sm:$0xff] %v7578_v44 }
 0x5a2   :  { %5112 = vmatpush3.msra.mxu0 %v5674_v50  ;;  %5153 = vmatpush3.msra.mxu1 %v7570_v38  ;;  %v5678_v50 = vld [vmem:[%s7992_s2 + $0x28] sm:$0xff]  ;;  %v7586_v38 = vld [vmem:[#allocation5 + $0x10] sm:$0xff] }
 0x5a3   :  { %5113 = vmatprep.subr.mxu0 %v5837_v0  ;;  %5154 = vmatprep.subr.mxu1 %v5837_v0  ;;  %8300 = vst [vmem:[#allocation14_spill] sm:$0xff] %v7586_v38 }
 0x5a4   :  { %5114 = vmatpush3.msra.mxu0 %v5676_v62  ;;  %5155 = vmatpush3.msra.mxu1 %v7578_v44  ;;  %v5680_v62 = vld [vmem:[%s7992_s2 + $0x20] sm:$0xff]  ;;  %v7594_v44 = vld [vmem:[#allocation5 + $0x8] sm:$0xff] }
 0x5a5   :  { %5115 = vmatprep.subr.mxu0 %v5837_v0  ;;  %5156 = vmatprep.subr.mxu1 %v5837_v0  ;;  %8301 = vst [vmem:[#allocation19_spill] sm:$0xff] %v7594_v44 }
 0x5a6   :  { %5116 = vmatpush3.msra.mxu0 %v5678_v50  ;;  %5157 = vmatpush3.msra.mxu1 %v7586_v38  ;;  %v5682_v50 = vld [vmem:[%s7992_s2 + $0x18] sm:$0xff]  ;;  %v7602_v38 = vld [vmem:[#allocation5] sm:$0xff] }
 0x5a7   :  { %5117 = vmatprep.subr.mxu0 %v5837_v0  ;;  %5158 = vmatprep.subr.mxu1 %v5837_v0  ;;  %8302 = vst [vmem:[#allocation21_spill] sm:$0xff] %v7602_v38 }
 0x5a8   :  { %5118 = vmatpush3.msra.mxu0 %v5680_v62  ;;  %5159 = vmatpush3.msra.mxu1 %v7594_v44  ;;  %v5684_v62 = vld [vmem:[%s7992_s2 + $0x10] sm:$0xff]  ;;  %v8303_v44 = vld [vmem:[#allocation18_spill] sm:$0xff] }
 0x5a9   :  { %5119 = vmatprep.subr.mxu0 %v5837_v0  ;;  %5160 = vmatprep.subr.mxu1 %v5837_v0 }
 0x5aa   :  { %5120 = vmatpush3.msra.mxu0 %v5682_v50  ;;  %5161 = vmatpush3.msra.mxu1 %v7602_v38  ;;  %v5685_v50 = vld [vmem:[%s7992_s2 + $0x8] sm:$0xff]  ;;  %v5686_v38 = vld [vmem:[%s7992_s2] sm:$0xff] }
 0x5ab   :  { %5121 = vmatprep.subr.mxu0 %v5837_v0  ;;  %5162 = vmatprep.mubr.msk.f32.mxu1 %vm5838_vm0, %v5837_v0 }
 0x5ac   :  { %5122 = vmatpush3.msra.mxu0 %v5684_v62  ;;  %5200 = vmatprep.subr.mxu1 %v5837_v0  ;;  %v237_v62 = vadd.f32 %v7097_v51, %v8303_v44 }
 0x5ad   :  { %5123 = vmatprep.subr.mxu0 %v5837_v0 }
 0x5ae   :  { %5124 = vmatpush3.msra.mxu0 %v5685_v50  ;;  %v7872_v50 = vld [vmem:[#allocation8 + $0x68] sm:$0xff] }
 0x5af   :  { %5125 = vmatprep.subr.mxu0 %v5837_v0 }
 0x5b0   :  { %5126 = vmatpush3.msra.mxu0 %v5686_v38 }
 0x5b1   :  { %5165 = vmatprep.subr.mxu0 %v5837_v0 }
 0x607   :  { %v2136_v58 = vpop.f32.mrf.mxu1 }
 0x608   :  { %v2140_v16 = vadd.f32 %v2136_v58, %v237_v62  ;;  %v7878_v62 = vld [vmem:[#allocation8 + $0x60] sm:$0xff] }
 0x609   :  { %v4954_v46 = vpop.f32.mrf.mxu1 }
 0x60a   :  { %5554 = vtanh.f32 %v2140_v16 }
 0x617   :  { %v5555_v31 = vpop.eup %5554 }
 0x618   :  { %5128 = vmatmul.mubr.f32.vlgmr.msra.gmra.mxu0 %v5555_v31 }
 0x619   :  { %5166 = vmatpush3.msra.mxu0 %v7101_v8  ;;  %5197 = vmatprep.mubr.msk.f32.mxu0 %vm5838_vm0, %v5837_v0 }
 0x61a   :  { %5167 = vmatprep.subr.mxu0 %v5837_v0 }
 0x61b   :  { %5168 = vmatpush3.msra.mxu0 %v7107_v10 }
 0x61c   :  { %5169 = vmatprep.subr.mxu0 %v5837_v0 }
 0x61d   :  { %5170 = vmatpush3.msra.mxu0 %v7111_v12 }
 0x61e   :  { %5171 = vmatprep.subr.mxu0 %v5837_v0 }
 0x61f   :  { %5172 = vmatpush3.msra.mxu0 %v7115_v24 }
 0x620   :  { %5173 = vmatprep.subr.mxu0 %v5837_v0 }
 0x621   :  { %5174 = vmatpush3.msra.mxu0 %v7119_v47 }
 0x622   :  { %5175 = vmatprep.subr.mxu0 %v5837_v0 }
 0x623   :  { %5176 = vmatpush3.msra.mxu0 %v7123_v49 }
 0x624   :  { %5177 = vmatprep.subr.mxu0 %v5837_v0 }
 0x625   :  { %5178 = vmatpush3.msra.mxu0 %v7127_v52 }
 0x626   :  { %5179 = vmatprep.subr.mxu0 %v5837_v0 }
 0x627   :  { %v2278_v51 = vpop.f32.mrf.mxu1  ;;  %5180 = vmatpush3.msra.mxu0 %v7131_v54 }
 0x628   :  { %5181 = vmatprep.subr.mxu0 %v5837_v0 }
 0x629   :  { %v5024_v46 = vpop.f32.mrf.mxu1  ;;  %5182 = vmatpush3.msra.mxu0 %v7135_v1 }
 0x62a   :  { %5183 = vmatprep.subr.mxu0 %v5837_v0  ;;  %v7890_v46 = vld [vmem:[#allocation8 + $0x50] sm:$0xff] }
 0x62b   :  { %5184 = vmatpush3.msra.mxu0 %v7139_v5 }
 0x62c   :  { %5185 = vmatprep.subr.mxu0 %v5837_v0 }
 0x62d   :  { %5186 = vmatpush3.msra.mxu0 %v7143_v9 }
 0x62e   :  { %5187 = vmatprep.subr.mxu0 %v5837_v0 }
 0x62f   :  { %5188 = vmatpush3.msra.mxu0 %v7147_v15 }
 0x630   :  { %5189 = vmatprep.subr.mxu0 %v5837_v0 }
 0x631   :  { %v2208_v16 = vpop.f32.mrf.mxu0  ;;  %5190 = vmatpush3.msra.mxu0 %v7157_v21 }
 0x632   :  { %v2279_v58 = vadd.f32 %v2278_v51, %v2208_v16  ;;  %5191 = vmatprep.subr.mxu0 %v5837_v0  ;;  %v7884_v51 = vld [vmem:[#allocation8 + $0x58] sm:$0xff] }
 0x633   :  { %v4989_v44 = vpop.f32.mrf.mxu0  ;;  %5192 = vmatpush3.msra.mxu0 %v7161_v23 }
 0x634   :  { %v2282_v38 = vadd.f32 %v7153_v17, %v2279_v58  ;;  %5193 = vmatprep.subr.mxu0 %v5837_v0  ;;  %v7896_v58 = vld [vmem:[#allocation8 + $0x48] sm:$0xff] }
 0x635   :  { %5194 = vmatpush3.msra.mxu0 %v7165_v25 }
 0x636   :  { %5556 = vtanh.f32 %v2282_v38  ;;  %5195 = vmatprep.subr.mxu0 %v5837_v0 }
 0x637   :  { %5196 = vmatpush3.msra.mxu0 %v7169_v27 }
 0x638   :  { %5198 = vmatmul.mubr.f32.vlgmr.msra.gmra.mxu0 %v5555_v31  ;;  %5235 = vmatprep.subr.mxu0 %v5837_v0  ;;  %v7866_v31 = vld [vmem:[#allocation8 + $0x70] sm:$0xff] }
 0x639   :  { %5236 = vmatpush3.msra.mxu0 %v7173_v55  ;;  %5267 = vmatprep.mubr.msk.f32.mxu0 %vm5838_vm0, %v5837_v0 }
 0x63a   :  { %5237 = vmatprep.subr.mxu0 %v5837_v0 }
 0x63b   :  { %5238 = vmatpush3.msra.mxu0 %v7179_v56 }
 0x63c   :  { %5239 = vmatprep.subr.mxu0 %v5837_v0 }
 0x63d   :  { %5240 = vmatpush3.msra.mxu0 %v7183_v60 }
 0x63e   :  { %5241 = vmatprep.subr.mxu0 %v5837_v0 }
 0x63f   :  { %5242 = vmatpush3.msra.mxu0 %v8271_v41 }
 0x640   :  { %5243 = vmatprep.subr.mxu0 %v5837_v0 }
 0x641   :  { %5244 = vmatpush3.msra.mxu0 %v8272_v57  ;;  %v5690_v57 = vld [vmem:[#allocation7 + $0x78] sm:$0xff] }
 0x642   :  { %5245 = vmatprep.subr.mxu0 %v5837_v0 }
 0x643   :  { %v5557_v17 = vpop.eup %5556  ;;  %5246 = vmatpush3.msra.mxu0 %v8274_v63  ;;  %v7804_v63 = vld [vmem:[#allocation7 + $0x68] sm:$0xff] }
 0x644   :  { %5163 = vmatmul.mubr.f32.vlgmr.msra.gmra.mxu1 %v5557_v17  ;;  %5247 = vmatprep.subr.mxu0 %v5837_v0 }
 0x645   :  { %5201 = vmatpush3.msra.mxu1 %v8273_v34  ;;  %5248 = vmatpush3.msra.mxu0 %v8276_v61  ;;  %v7800_v34 = vld [vmem:[#allocation7 + $0x70] sm:$0xff]  ;;  %v7812_v61 = vld [vmem:[#allocation7 + $0x58] sm:$0xff] }
 0x646   :  { %5202 = vmatprep.subr.mxu1 %v5837_v0  ;;  %5249 = vmatprep.subr.mxu0 %v5837_v0 }
 0x647   :  { %5203 = vmatpush3.msra.mxu1 %v8275_v35  ;;  %v2420_v25 = vpop.f32.mrf.mxu1  ;;  %5250 = vmatpush3.msra.mxu0 %v8278_v26  ;;  %v7808_v35 = vld [vmem:[#allocation7 + $0x60] sm:$0xff]  ;;  %v7820_v26 = vld [vmem:[#allocation7 + $0x48] sm:$0xff] }
 0x648   :  { %5204 = vmatprep.subr.mxu1 %v5837_v0  ;;  %5251 = vmatprep.subr.mxu0 %v5837_v0 }
 0x649   :  { %5205 = vmatpush3.msra.mxu1 %v8277_v2  ;;  %v5094_v27 = vpop.f32.mrf.mxu1  ;;  %5252 = vmatpush3.msra.mxu0 %v8280_v33  ;;  %v7816_v2 = vld [vmem:[#allocation7 + $0x50] sm:$0xff]  ;;  %v7824_v33 = vld [vmem:[#allocation7 + $0x40] sm:$0xff] }
 0x64a   :  { %5206 = vmatprep.subr.mxu1 %v5837_v0  ;;  %5253 = vmatprep.subr.mxu0 %v5837_v0  ;;  %v7909_v27 = vld [vmem:[#allocation8 + $0x38] sm:$0xff] }
 0x64b   :  { %5207 = vmatpush3.msra.mxu1 %v8279_v28  ;;  %5254 = vmatpush3.msra.mxu0 %v8282_v42  ;;  %v7828_v42 = vld [vmem:[#allocation7 + $0x38] sm:$0xff] }
 0x64c   :  { %5208 = vmatprep.subr.mxu1 %v5837_v0  ;;  %5255 = vmatprep.subr.mxu0 %v5837_v0 }
 0x64d   :  { %5209 = vmatpush3.msra.mxu1 %v8281_v39  ;;  %5256 = vmatpush3.msra.mxu0 %v7245_v6  ;;  %v8315_v6 = vld [vmem:[#allocation21_spill] sm:$0xff] }
 0x64e   :  { %5210 = vmatprep.subr.mxu1 %v5837_v0  ;;  %5257 = vmatprep.subr.mxu0 %v5837_v0 }
 0x64f   :  { %5211 = vmatpush3.msra.mxu1 %v8283_v43  ;;  %5258 = vmatpush3.msra.mxu0 %v7253_v4  ;;  %v7832_v43 = vld [vmem:[#allocation7 + $0x30] sm:$0xff] }
 0x650   :  { %5212 = vmatprep.subr.mxu1 %v5837_v0  ;;  %5259 = vmatprep.subr.mxu0 %v5837_v0 }
 0x651   :  { %v2350_v55 = vpop.f32.mrf.mxu0  ;;  %5213 = vmatpush3.msra.mxu1 %v8284_v45  ;;  %5260 = vmatpush3.msra.mxu0 %v7262_v13  ;;  %v7836_v45 = vld [vmem:[#allocation7 + $0x28] sm:$0xff] }
 0x652   :  { %v2421_v56 = vadd.f32 %v2420_v25, %v2350_v55  ;;  %5214 = vmatprep.subr.mxu1 %v5837_v0  ;;  %5261 = vmatprep.subr.mxu0 %v5837_v0  ;;  %v5713_v55 = vld [vmem:[#allocation8 + $0x30] sm:$0xff] }
 0x653   :  { %v5059_v60 = vpop.f32.mrf.mxu0  ;;  %5215 = vmatpush3.msra.mxu1 %v7250_v7  ;;  %5262 = vmatpush3.msra.mxu0 %v8285_v18  ;;  %v5689_v7 = vld [vmem:[%s7993_s3] ss:$0 sm:$0xff] }
 0x654   :  { %v2424_v4 = vadd.f32 %v7460_v53, %v2421_v56  ;;  %5216 = vmatprep.subr.mxu1 %v5837_v0  ;;  %5263 = vmatprep.subr.mxu0 %v5837_v0  ;;  %v5714_v56 = vld [vmem:[#allocation8 + $0x28] sm:$0xff]  ;;  %v5715_v60 = vld [vmem:[#allocation8 + $0x20] sm:$0xff] }
 0x655   :  { %5217 = vmatpush3.msra.mxu1 %v7259_v59  ;;  %5264 = vmatpush3.msra.mxu0 %v7278_v11  ;;  %v8316_v59 = vld [vmem:[#allocation17_spill] sm:$0xff] }
 0x656   :  { %5558 = vtanh.f32 %v2424_v4  ;;  %5218 = vmatprep.subr.mxu1 %v5837_v0  ;;  %5265 = vmatprep.subr.mxu0 %v5837_v0  ;;  %v242_v13 = vadd.f32 %v5689_v7, %v8316_v59  ;;  %v5716_v4 = vld [vmem:[#allocation8 + $0x18] sm:$0xff] }
 0x657   :  { %5219 = vmatpush3.msra.mxu1 %v8286_v20  ;;  %5266 = vmatpush3.msra.mxu0 %v8288_v14  ;;  %v7840_v20 = vld [vmem:[#allocation7 + $0x20] sm:$0xff] }
 0x658   :  { %5220 = vmatprep.subr.mxu1 %v5837_v0  ;;  %5268 = vmatmul.mubr.f32.vlgmr.msra.gmra.mxu0 %v5557_v17  ;;  %v7902_v17 = vld [vmem:[#allocation8 + $0x40] sm:$0xff] }
 0x659   :  { %5221 = vmatpush3.msra.mxu1 %v8287_v22  ;;  %5232 = vmatprep.mubr.msk.f32.mxu1 %vm5838_vm0, %v5837_v0  ;;  %v7844_v22 = vld [vmem:[#allocation7 + $0x18] sm:$0xff] }
 0x65a   :  { %5222 = vmatprep.subr.mxu1 %v5837_v0  ;;  %5305 = vmatprep.subr.mxu0 %v5837_v0 }
 0x65b   :  { %5223 = vmatpush3.msra.mxu1 %v8289_v29  ;;  %5306 = vmatpush3.msra.mxu0 %v7101_v8 }
 0x65c   :  { %5224 = vmatprep.subr.mxu1 %v5837_v0  ;;  %5307 = vmatprep.subr.mxu0 %v5837_v0 }
 0x65d   :  { %5225 = vmatpush3.msra.mxu1 %v8290_v37  ;;  %5308 = vmatpush3.msra.mxu0 %v7107_v10  ;;  %v8304_v10 = vld [vmem:[#allocation36_spill] sm:$0xff] }
 0x65e   :  { %5226 = vmatprep.subr.mxu1 %v5837_v0  ;;  %5309 = vmatprep.subr.mxu0 %v5837_v0 }
 0x65f   :  { %5227 = vmatpush3.msra.mxu1 %v7298_v19  ;;  %5310 = vmatpush3.msra.mxu0 %v7111_v12  ;;  %v8305_v12 = vld [vmem:[#allocation40_spill] sm:$0xff] }
 0x660   :  { %5228 = vmatprep.subr.mxu1 %v5837_v0  ;;  %5311 = vmatprep.subr.mxu0 %v5837_v0 }
 0x661   :  { %5229 = vmatpush3.msra.mxu1 %v7304_v3  ;;  %5312 = vmatpush3.msra.mxu0 %v7115_v24  ;;  %v8306_v24 = vld [vmem:[#allocation38_spill] sm:$0xff] }
 0x662   :  { %5230 = vmatprep.subr.mxu1 %v5837_v0  ;;  %5313 = vmatprep.subr.mxu0 %v5837_v0 }
 0x663   :  { %v5559_v8 = vpop.eup %5558  ;;  %5231 = vmatpush3.msra.mxu1 %v7310_v48  ;;  %5314 = vmatpush3.msra.mxu0 %v7119_v47  ;;  %v8307_v47 = vld [vmem:[#allocation42_spill] sm:$0xff] }
 0x664   :  { %5233 = vmatmul.mubr.f32.vlgmr.msra.gmra.mxu1 %v5559_v8  ;;  %5315 = vmatprep.subr.mxu0 %v5837_v0  ;;  %v5717_v8 = vld [vmem:[#allocation8 + $0x10] sm:$0xff] }
 0x665   :  { %5316 = vmatpush3.msra.mxu0 %v7123_v49  ;;  %5337 = vmatprep.mubr.msk.f32.mxu0 %vm5838_vm0, %v5837_v0  ;;  %v5687_v49 = vld [vmem:[#allocation3 + $0x8] sm:$0xff] }
 0x666   :  { %5317 = vmatprep.subr.mxu0 %v5837_v0  ;;  %5270 = vmatprep.subr.mxu1 %v5837_v0 }
 0x667   :  { %5318 = vmatpush3.msra.mxu0 %v7127_v52  ;;  %5271 = vmatpush3.msra.mxu1 %v7482_v30  ;;  %v8308_v52 = vld [vmem:[#allocation41_spill] sm:$0xff] }
 0x668   :  { %5319 = vmatprep.subr.mxu0 %v5837_v0  ;;  %5272 = vmatprep.subr.mxu1 %v5837_v0 }
 0x669   :  { %5320 = vmatpush3.msra.mxu0 %v7131_v54  ;;  %5273 = vmatpush3.msra.mxu1 %v7488_v32  ;;  %v5688_v54 = vld [vmem:[#allocation3] sm:$0xff] }
 0x66a   :  { %5321 = vmatprep.subr.mxu0 %v5837_v0  ;;  %5274 = vmatprep.subr.mxu1 %v5837_v0  ;;  %v7854_v32 = vld [vmem:[%s7996_s6] ss:$0 sm:$0xff] }
 0x66b   :  { %5322 = vmatpush3.msra.mxu0 %v7135_v1  ;;  %5275 = vmatpush3.msra.mxu1 %v7494_v36  ;;  %v8309_v1 = vld [vmem:[#allocation44_spill] sm:$0xff] }
 0x66c   :  { %5323 = vmatprep.subr.mxu0 %v5837_v0  ;;  %5276 = vmatprep.subr.mxu1 %v5837_v0 }
 0x66d   :  { %5324 = vmatpush3.msra.mxu0 %v7139_v5  ;;  %5277 = vmatpush3.msra.mxu1 %v7500_v40  ;;  %v8310_v5 = vld [vmem:[#allocation43_spill] sm:$0xff]  ;;  %v7860_v40 = vld [vmem:[#allocation8 + $0x78] sm:$0xff] }
 0x66e   :  { %5325 = vmatprep.subr.mxu0 %v5837_v0  ;;  %5278 = vmatprep.subr.mxu1 %v5837_v0 }
 0x66f   :  { %5326 = vmatpush3.msra.mxu0 %v7143_v9  ;;  %5279 = vmatpush3.msra.mxu1 %v8304_v10  ;;  %v8311_v9 = vld [vmem:[#allocation16_spill] sm:$0xff] }
 0x670   :  { %5327 = vmatprep.subr.mxu0 %v5837_v0  ;;  %5280 = vmatprep.subr.mxu1 %v5837_v0  ;;  %v5718_v10 = vld [vmem:[#allocation7 + $0x10] sm:$0xff] }
 0x671   :  { %5328 = vmatpush3.msra.mxu0 %v7147_v15  ;;  %5281 = vmatpush3.msra.mxu1 %v8305_v12  ;;  %v8312_v15 = vld [vmem:[#allocation15_spill] sm:$0xff] }
 0x672   :  { %5329 = vmatprep.subr.mxu0 %v5837_v0  ;;  %5282 = vmatprep.subr.mxu1 %v5837_v0  ;;  %v5719_v12 = vld [vmem:[#allocation8 + $0x8] sm:$0xff] }
 0x673   :  { %5330 = vmatpush3.msra.mxu0 %v7157_v21  ;;  %5283 = vmatpush3.msra.mxu1 %v8306_v24  ;;  %v8313_v21 = vld [vmem:[#allocation14_spill] sm:$0xff]  ;;  %v5720_v24 = vld [vmem:[#allocation7 + $0x8] sm:$0xff] }
 0x674   :  { %5331 = vmatprep.subr.mxu0 %v5837_v0  ;;  %5284 = vmatprep.subr.mxu1 %v5837_v0 }
 0x675   :  { %5332 = vmatpush3.msra.mxu0 %v7161_v23  ;;  %5285 = vmatpush3.msra.mxu1 %v8307_v47  ;;  %v8314_v23 = vld [vmem:[#allocation19_spill] sm:$0xff] }
 0x676   :  { %5333 = vmatprep.subr.mxu0 %v5837_v0  ;;  %5286 = vmatprep.subr.mxu1 %v5837_v0 }
 0x677   :  { %5334 = vmatpush3.msra.mxu0 %v5687_v49  ;;  %5287 = vmatpush3.msra.mxu1 %v8308_v52  ;;  %v5721_v49 = vld [vmem:[#allocation8] sm:$0xff] }
 0x678   :  { %5335 = vmatprep.subr.mxu0 %v5837_v0  ;;  %5288 = vmatprep.subr.mxu1 %v5837_v0  ;;  %v5722_v52 = vld [vmem:[#allocation7] sm:$0xff] }
 0x679   :  { %5336 = vmatpush3.msra.mxu0 %v5688_v54  ;;  %5289 = vmatpush3.msra.mxu1 %v8309_v1 }
 0x67a   :  { %5375 = vmatprep.subr.mxu0 %v5837_v0  ;;  %5290 = vmatprep.subr.mxu1 %v5837_v0 }
 0x67b   :  { %5291 = vmatpush3.msra.mxu1 %v8310_v5  ;;  %5302 = vmatprep.mubr.msk.f32.mxu1 %vm5838_vm0, %v5837_v0 }
 0x67c   :  { %5292 = vmatprep.subr.mxu1 %v5837_v0 }
 0x67d   :  { %5293 = vmatpush3.msra.mxu1 %v8311_v9 }
 0x67e   :  { %5294 = vmatprep.subr.mxu1 %v5837_v0 }
 0x67f   :  { %5295 = vmatpush3.msra.mxu1 %v8312_v15 }
 0x680   :  { %5296 = vmatprep.subr.mxu1 %v5837_v0 }
 0x681   :  { %5297 = vmatpush3.msra.mxu1 %v8313_v21 }
 0x682   :  { %5298 = vmatprep.subr.mxu1 %v5837_v0 }
 0x683   :  { %5299 = vmatpush3.msra.mxu1 %v8314_v23 }
 0x684   :  { %5300 = vmatprep.subr.mxu1 %v5837_v0 }
 0x685   :  { %5301 = vmatpush3.msra.mxu1 %v8315_v6 }
 0x686   :  { %5340 = vmatprep.subr.mxu1 %v5837_v0 }
 0x6d8   :  { %v2494_v19 = vpop.f32.mrf.mxu0 }
 0x6d9   :  { %v2498_v48 = vadd.f32 %v2494_v19, %v242_v13 }
 0x6da   :  { %v5129_v3 = vpop.f32.mrf.mxu0 }
 0x6db   :  { %5560 = vtanh.f32 %v2498_v48 }
 0x6e8   :  { %v5561_v41 = vpop.eup %5560 }
 0x6e9   :  { %5338 = vmatmul.mubr.f32.vlgmr.msra.gmra.mxu0 %v5561_v41  ;;  %v3225_v41 = vld [vmem:[#allocation10 + $0x78] sm:$0xff] }
 0x6ea   :  { %5376 = vmatpush3.msra.mxu0 %v5690_v57  ;;  %5407 = vmatprep.mubr.msk.f32.mxu0 %vm5838_vm0, %v5837_v0 }
 0x6eb   :  { %5377 = vmatprep.subr.mxu0 %v5837_v0 }
 0x6ec   :  { %5378 = vmatpush3.msra.mxu0 %v7800_v34 }
 0x6ed   :  { %5379 = vmatprep.subr.mxu0 %v5837_v0 }
 0x6ee   :  { %5380 = vmatpush3.msra.mxu0 %v7804_v63 }
 0x6ef   :  { %5381 = vmatprep.subr.mxu0 %v5837_v0 }
 0x6f0   :  { %5382 = vmatpush3.msra.mxu0 %v7808_v35 }
 0x6f1   :  { %5383 = vmatprep.subr.mxu0 %v5837_v0 }
 0x6f2   :  { %5384 = vmatpush3.msra.mxu0 %v7812_v61 }
 0x6f3   :  { %5385 = vmatprep.subr.mxu0 %v5837_v0 }
 0x6f4   :  { %5386 = vmatpush3.msra.mxu0 %v7816_v2 }
 0x6f5   :  { %5387 = vmatprep.subr.mxu0 %v5837_v0 }
 0x6f6   :  { %5388 = vmatpush3.msra.mxu0 %v7820_v26 }
 0x6f7   :  { %5389 = vmatprep.subr.mxu0 %v5837_v0 }
 0x6f8   :  { %v2636_v28 = vpop.f32.mrf.mxu0  ;;  %5390 = vmatpush3.msra.mxu0 %v7824_v33 }
 0x6f9   :  { %5391 = vmatprep.subr.mxu0 %v5837_v0 }
 0x6fa   :  { %v5199_v39 = vpop.f32.mrf.mxu0  ;;  %5392 = vmatpush3.msra.mxu0 %v7828_v42 }
 0x6fb   :  { %5393 = vmatprep.subr.mxu0 %v5837_v0  ;;  %v3214_v39 = vld [vmem:[#allocation10 + $0x20] sm:$0xff] }
 0x6fc   :  { %5394 = vmatpush3.msra.mxu0 %v7832_v43 }
 0x6fd   :  { %5395 = vmatprep.subr.mxu0 %v5837_v0 }
 0x6fe   :  { %5396 = vmatpush3.msra.mxu0 %v7836_v45 }
 0x6ff   :  { %5397 = vmatprep.subr.mxu0 %v5837_v0 }
 0x700   :  { %5398 = vmatpush3.msra.mxu0 %v7840_v20 }
 0x701   :  { %5399 = vmatprep.subr.mxu0 %v5837_v0 }
 0x702   :  { %5400 = vmatpush3.msra.mxu0 %v7844_v22 }
 0x703   :  { %5401 = vmatprep.subr.mxu0 %v5837_v0 }
 0x704   :  { %v2566_v29 = vpop.f32.mrf.mxu1  ;;  %5402 = vmatpush3.msra.mxu0 %v8285_v18 }
 0x705   :  { %v2637_v37 = vadd.f32 %v2636_v28, %v2566_v29  ;;  %5403 = vmatprep.subr.mxu0 %v5837_v0  ;;  %v3216_v28 = vld [vmem:[#allocation10 + $0x30] sm:$0xff] }
 0x706   :  { %v5164_v30 = vpop.f32.mrf.mxu1  ;;  %5404 = vmatpush3.msra.mxu0 %v7278_v11 }
 0x707   :  { %v2640_v36 = vadd.f32 %v7854_v32, %v2637_v37  ;;  %5405 = vmatprep.subr.mxu0 %v5837_v0 }
 0x708   :  { %5406 = vmatpush3.msra.mxu0 %v8288_v14 }
 0x709   :  { %5562 = vtanh.f32 %v2640_v36  ;;  %5445 = vmatprep.subr.mxu0 %v5837_v0  ;;  %v5723_v36 = vld [vmem:[%s7999_s9] ss:$0 sm:$0xff] }
 0x716   :  { %v5563_v18 = vpop.eup %5562 }
 0x717   :  { %5303 = vmatmul.mubr.f32.vlgmr.msra.gmra.mxu1 %v5563_v18  ;;  %5408 = vmatmul.mubr.f32.vlgmr.msra.gmra.mxu0 %v5563_v18 }
 0x718   :  { %5341 = vmatpush3.msra.mxu1 %v7860_v40  ;;  %v2778_v11 = vpop.f32.mrf.mxu0  ;;  %5372 = vmatprep.mubr.msk.f32.mxu1 %vm5838_vm0, %v5837_v0 }
 0x719   :  { %5342 = vmatprep.subr.mxu1 %v5837_v0  ;;  %5446 = vmatpush3.msra.mxu0 %v5690_v57  ;;  %v3224_v57 = vld [vmem:[#allocation10 + $0x70] sm:$0xff] }
 0x71a   :  { %5343 = vmatpush3.msra.mxu1 %v7866_v31  ;;  %v5269_v14 = vpop.f32.mrf.mxu0  ;;  %5447 = vmatprep.subr.mxu0 %v5837_v0 }
 0x71b   :  { %5344 = vmatprep.subr.mxu1 %v5837_v0  ;;  %5448 = vmatpush3.msra.mxu0 %v7800_v34  ;;  %v3223_v34 = vld [vmem:[#allocation10 + $0x68] sm:$0xff] }
 0x71c   :  { %5345 = vmatpush3.msra.mxu1 %v7872_v50  ;;  %5449 = vmatprep.subr.mxu0 %v5837_v0 }
 0x71d   :  { %5346 = vmatprep.subr.mxu1 %v5837_v0  ;;  %5450 = vmatpush3.msra.mxu0 %v7804_v63  ;;  %v3222_v63 = vld [vmem:[#allocation10 + $0x60] sm:$0xff] }
 0x71e   :  { %5347 = vmatpush3.msra.mxu1 %v7878_v62  ;;  %5451 = vmatprep.subr.mxu0 %v5837_v0 }
 0x71f   :  { %5348 = vmatprep.subr.mxu1 %v5837_v0  ;;  %5452 = vmatpush3.msra.mxu0 %v7808_v35  ;;  %v3220_v35 = vld [vmem:[#allocation10 + $0x50] sm:$0xff] }
 0x720   :  { %5349 = vmatpush3.msra.mxu1 %v7884_v51  ;;  %5453 = vmatprep.subr.mxu0 %v5837_v0 }
 0x721   :  { %5350 = vmatprep.subr.mxu1 %v5837_v0  ;;  %5454 = vmatpush3.msra.mxu0 %v7812_v61  ;;  %v3219_v61 = vld [vmem:[#allocation10 + $0x48] sm:$0xff] }
 0x722   :  { %5351 = vmatpush3.msra.mxu1 %v7890_v46  ;;  %5455 = vmatprep.subr.mxu0 %v5837_v0 }
 0x723   :  { %5352 = vmatprep.subr.mxu1 %v5837_v0  ;;  %5456 = vmatpush3.msra.mxu0 %v7816_v2  ;;  %v3218_v2 = vld [vmem:[#allocation10 + $0x40] sm:$0xff] }
 0x724   :  { %v2708_v16 = vpop.f32.mrf.mxu1  ;;  %5353 = vmatpush3.msra.mxu1 %v7896_v58  ;;  %5457 = vmatprep.subr.mxu0 %v5837_v0 }
 0x725   :  { %v2779_v44 = vadd.f32 %v2778_v11, %v2708_v16  ;;  %5354 = vmatprep.subr.mxu1 %v5837_v0  ;;  %5458 = vmatpush3.msra.mxu0 %v7820_v26  ;;  %v3217_v26 = vld [vmem:[#allocation10 + $0x38] sm:$0xff]  ;;  %v3314_v11 = vld [vmem:[%s8001_s11] ss:$0 sm:$0xff] }
 0x726   :  { %v5234_v38 = vpop.f32.mrf.mxu1  ;;  %5355 = vmatpush3.msra.mxu1 %v7902_v17  ;;  %5459 = vmatprep.subr.mxu0 %v5837_v0 }
 0x727   :  { %v2782_v25 = vadd.f32 %v7460_v53, %v2779_v44  ;;  %5356 = vmatprep.subr.mxu1 %v5837_v0  ;;  %5460 = vmatpush3.msra.mxu0 %v7824_v33  ;;  %v3215_v33 = vld [vmem:[#allocation10 + $0x28] sm:$0xff] }
 0x728   :  { %5357 = vmatpush3.msra.mxu1 %v7909_v27  ;;  %5461 = vmatprep.subr.mxu0 %v5837_v0 }
 0x729   :  { %5564 = vtanh.f32 %v2782_v25  ;;  %5358 = vmatprep.subr.mxu1 %v5837_v0  ;;  %5462 = vmatpush3.msra.mxu0 %v7828_v42  ;;  %v3213_v42 = vld [vmem:[#allocation10 + $0x18] sm:$0xff] }
 0x72a   :  { %5359 = vmatpush3.msra.mxu1 %v5713_v55  ;;  %5463 = vmatprep.subr.mxu0 %v5837_v0 }
 0x72b   :  { %5360 = vmatprep.subr.mxu1 %v5837_v0  ;;  %5464 = vmatpush3.msra.mxu0 %v7832_v43  ;;  %v3212_v43 = vld [vmem:[#allocation10 + $0x10] sm:$0xff] }
 0x72c   :  { %5361 = vmatpush3.msra.mxu1 %v5714_v56  ;;  %5465 = vmatprep.subr.mxu0 %v5837_v0 }
 0x72d   :  { %5362 = vmatprep.subr.mxu1 %v5837_v0  ;;  %5466 = vmatpush3.msra.mxu0 %v7836_v45  ;;  %v3211_v45 = vld [vmem:[#allocation10 + $0x8] sm:$0xff] }
 0x72e   :  { %5363 = vmatpush3.msra.mxu1 %v5715_v60  ;;  %5467 = vmatprep.subr.mxu0 %v5837_v0 }
 0x72f   :  { %5364 = vmatprep.subr.mxu1 %v5837_v0  ;;  %5468 = vmatpush3.msra.mxu0 %v7840_v20  ;;  %v3210_v20 = vld [vmem:[#allocation10] sm:$0xff] }
 0x730   :  { %5365 = vmatpush3.msra.mxu1 %v5716_v4  ;;  %5469 = vmatprep.subr.mxu0 %v5837_v0 }
 0x731   :  { %5366 = vmatprep.subr.mxu1 %v5837_v0  ;;  %5470 = vmatpush3.msra.mxu0 %v7844_v22 }
 0x732   :  { %5367 = vmatpush3.msra.mxu1 %v5717_v8  ;;  %5471 = vmatprep.subr.mxu0 %v5837_v0 }
 0x733   :  { %5368 = vmatprep.subr.mxu1 %v5837_v0  ;;  %5472 = vmatpush3.msra.mxu0 %v5718_v10 }
 0x734   :  { %5369 = vmatpush3.msra.mxu1 %v5719_v12  ;;  %5473 = vmatprep.subr.mxu0 %v5837_v0 }
 0x735   :  { %5370 = vmatprep.subr.mxu1 %v5837_v0  ;;  %5474 = vmatpush3.msra.mxu0 %v5720_v24 }
 0x736   :  { %v5565_v47 = vpop.eup %5564  ;;  %5371 = vmatpush3.msra.mxu1 %v5721_v49  ;;  %5475 = vmatprep.subr.mxu0 %v5837_v0 }
 0x737   :  { %5373 = vmatmul.mubr.f32.vlgmr.msra.gmra.mxu1 %v5565_v47  ;;  %5410 = vmatprep.subr.mxu1 %v5837_v0 }
 0x738   :  { %5476 = vmatpush3.msra.mxu0 %v5722_v52  ;;  %5477 = vmatprep.mubr.msk.f32.mxu0 %vm5838_vm0, %v5837_v0 }
 0x739   :  { %5411 = vmatpush3.msra.mxu1 %v7860_v40  ;;  %5442 = vmatprep.mubr.msk.f32.mxu1 %vm5838_vm0, %v5837_v0 }
 0x73a   :  { %5412 = vmatprep.subr.mxu1 %v5837_v0 }
 0x73b   :  { %5413 = vmatpush3.msra.mxu1 %v7866_v31 }
 0x73c   :  { %5414 = vmatprep.subr.mxu1 %v5837_v0 }
 0x73d   :  { %5415 = vmatpush3.msra.mxu1 %v7872_v50 }
 0x73e   :  { %5416 = vmatprep.subr.mxu1 %v5837_v0 }
 0x73f   :  { %5417 = vmatpush3.msra.mxu1 %v7878_v62 }
 0x740   :  { %5418 = vmatprep.subr.mxu1 %v5837_v0 }
 0x741   :  { %5419 = vmatpush3.msra.mxu1 %v7884_v51 }
 0x742   :  { %5420 = vmatprep.subr.mxu1 %v5837_v0 }
 0x743   :  { %5421 = vmatpush3.msra.mxu1 %v7890_v46 }
 0x744   :  { %5422 = vmatprep.subr.mxu1 %v5837_v0 }
 0x745   :  { %5423 = vmatpush3.msra.mxu1 %v7896_v58 }
 0x746   :  { %5424 = vmatprep.subr.mxu1 %v5837_v0 }
 0x747   :  { %5425 = vmatpush3.msra.mxu1 %v7902_v17 }
 0x748   :  { %5426 = vmatprep.subr.mxu1 %v5837_v0 }
 0x749   :  { %5427 = vmatpush3.msra.mxu1 %v7909_v27 }
 0x74a   :  { %5428 = vmatprep.subr.mxu1 %v5837_v0 }
 0x74b   :  { %5429 = vmatpush3.msra.mxu1 %v5713_v55 }
 0x74c   :  { %5430 = vmatprep.subr.mxu1 %v5837_v0 }
 0x74d   :  { %5431 = vmatpush3.msra.mxu1 %v5714_v56 }
 0x74e   :  { %5432 = vmatprep.subr.mxu1 %v5837_v0 }
 0x74f   :  { %5433 = vmatpush3.msra.mxu1 %v5715_v60 }
 0x750   :  { %5434 = vmatprep.subr.mxu1 %v5837_v0 }
 0x751   :  { %5435 = vmatpush3.msra.mxu1 %v5716_v4 }
 0x752   :  { %5436 = vmatprep.subr.mxu1 %v5837_v0 }
 0x753   :  { %5437 = vmatpush3.msra.mxu1 %v5717_v8 }
 0x754   :  { %5438 = vmatprep.subr.mxu1 %v5837_v0 }
 0x755   :  { %5439 = vmatpush3.msra.mxu1 %v5719_v12 }
 0x756   :  { %5440 = vmatprep.subr.mxu1 %v5837_v0 }
 0x757   :  { %5441 = vmatpush3.msra.mxu1 %v5721_v49 }
 0x758   :  { %5480 = vmatprep.subr.mxu1 %v5837_v0 }
 0x7a9   :  { %v2920_v54 = vpop.f32.mrf.mxu0 }
 0x7ab   :  { %v5339_v1 = vpop.f32.mrf.mxu0 }
 0x7d7   :  { %v2850_v5 = vpop.f32.mrf.mxu1  ;;  %v3062_v9 = vpop.f32.mrf.mxu0 }
 0x7d8   :  { %v2921_v15 = vadd.f32 %v2920_v54, %v2850_v5 }
 0x7d9   :  { %v5304_v21 = vpop.f32.mrf.mxu1  ;;  %v5409_v23 = vpop.f32.mrf.mxu0 }
 0x7da   :  { %v2924_v6 = vadd.f32 %v7854_v32, %v2921_v15 }
 0x7dc   :  { %5566 = vtanh.f32 %v2924_v6 }
 0x7e9   :  { %v5567_v7 = vpop.eup %5566 }
 0x7ea   :  { %5478 = vmatmul.mubr.f32.vlgmr.msra.gmra.mxu0 %v5567_v7 }
 0x7f7   :  { %v2992_v59 = vpop.f32.mrf.mxu1 }
 0x7f8   :  { %v3063_v13 = vadd.f32 %v3062_v9, %v2992_v59 }
 0x7f9   :  { %v5374_v19 = vpop.f32.mrf.mxu1 }
 0x7fa   :  { %v3066_v48 = vadd.f32 %v7460_v53, %v3063_v13  ;;  %v3221_v53 = vld [vmem:[#allocation10 + $0x58] sm:$0xff] }
 0x7fc   :  { %5568 = vtanh.f32 %v3066_v48 }
 0x809   :  { %v5569_v3 = vpop.eup %5568 }
 0x80a   :  { %5443 = vmatmul.mubr.f32.vlgmr.msra.gmra.mxu1 %v5569_v3 }
 0x80b   :  { %5512 = vmatprep.mubr.msk.f32.mxu1 %vm5838_vm0, %v5837_v0  ;;  %5481 = vmatpush3.msra.mxu1 %v3225_v41 }
 0x80c   :  { %5482 = vmatprep.subr.mxu1 %v5837_v0 }
 0x80d   :  { %5483 = vmatpush3.msra.mxu1 %v3224_v57 }
 0x80e   :  { %5484 = vmatprep.subr.mxu1 %v5837_v0 }
 0x80f   :  { %5485 = vmatpush3.msra.mxu1 %v3223_v34 }
 0x810   :  { %5486 = vmatprep.subr.mxu1 %v5837_v0 }
 0x811   :  { %5487 = vmatpush3.msra.mxu1 %v3222_v63 }
 0x812   :  { %5488 = vmatprep.subr.mxu1 %v5837_v0 }
 0x813   :  { %5489 = vmatpush3.msra.mxu1 %v3221_v53 }
 0x814   :  { %5490 = vmatprep.subr.mxu1 %v5837_v0 }
 0x815   :  { %5491 = vmatpush3.msra.mxu1 %v3220_v35 }
 0x816   :  { %5492 = vmatprep.subr.mxu1 %v5837_v0 }
 0x817   :  { %5493 = vmatpush3.msra.mxu1 %v3219_v61 }
 0x818   :  { %5494 = vmatprep.subr.mxu1 %v5837_v0 }
 0x819   :  { %5495 = vmatpush3.msra.mxu1 %v3218_v2 }
 0x81a   :  { %5496 = vmatprep.subr.mxu1 %v5837_v0 }
 0x81b   :  { %5497 = vmatpush3.msra.mxu1 %v3217_v26 }
 0x81c   :  { %5498 = vmatprep.subr.mxu1 %v5837_v0 }
 0x81d   :  { %5499 = vmatpush3.msra.mxu1 %v3216_v28 }
 0x81e   :  { %5500 = vmatprep.subr.mxu1 %v5837_v0 }
 0x81f   :  { %5501 = vmatpush3.msra.mxu1 %v3215_v33 }
 0x820   :  { %5502 = vmatprep.subr.mxu1 %v5837_v0 }
 0x821   :  { %5503 = vmatpush3.msra.mxu1 %v3214_v39 }
 0x822   :  { %5504 = vmatprep.subr.mxu1 %v5837_v0 }
 0x823   :  { %5505 = vmatpush3.msra.mxu1 %v3213_v42 }
 0x824   :  { %5506 = vmatprep.subr.mxu1 %v5837_v0 }
 0x825   :  { %5507 = vmatpush3.msra.mxu1 %v3212_v43 }
 0x826   :  { %5508 = vmatprep.subr.mxu1 %v5837_v0 }
 0x827   :  { %5509 = vmatpush3.msra.mxu1 %v3211_v45 }
 0x828   :  { %5510 = vmatprep.subr.mxu1 %v5837_v0 }
 0x829   :  { %5511 = vmatpush3.msra.mxu1 %v3210_v20 }
 0x8aa   :  { %v3204_v22 = vpop.f32.mrf.mxu0 }
 0x8ac   :  { %v5479_v29 = vpop.f32.mrf.mxu0 }
 0x8ca   :  { %v3134_v37 = vpop.f32.mrf.mxu1 }
 0x8cb   :  { %v3205_v30 = vadd.f32 %v3204_v22, %v3134_v37 }
 0x8cc   :  { %v5444_v32 = vpop.f32.mrf.mxu1 }
 0x8cd   :  { %v3208_v18 = vadd.f32 %v5723_v36, %v3205_v30 }
 0x8cf   :  { %5570 = vtanh.f32 %v3208_v18 }
 0x8dc   :  { %v5571_v40 = vpop.eup %5570 }
 0x8dd   :  { %5513 = vmatmul.mubr.f32.vlgmr.msra.gmra.mxu1 %v5571_v40 }
 0x99d   :  { %v3299_v31 = vpop.f32.mrf.mxu1 }
 0x99e   :  { %v3300_v0 = vadd.f32 %v3314_v11, %v3299_v31 }
 0x99f   :  { %v5514_v14 = vpop.f32.mrf.mxu1 }
 0x9a0   :  { %3303 = vst [vmem:[%s8002_s12] sm:$0xff] %v3300_v0 }
 0x9a1   :  { %3308 = vsyncpa [#allocation4], 1 }
 0x9a2   :  { %3309 = vsyncpa [#allocation6], 1 }
 0x9a3   :  { %3310 = vsyncpa [#allocation9], 1 }

</bundles_post_ra>
